<compile_context>
chip_gen: v6e
topology: v6e:2x2x1
jax: 0.10.0
libtpu: 0.0.40
codegen_flags: <defaults>
</compile_context>

<pallas_src>
import functools

import jax
import jax.numpy as jnp
from jax.experimental import pallas as pl
from jax.experimental.pallas import tpu as pltpu

BN_EPS = 1e-5
_LANE = 128              # output channels padded to a multiple of this
_ROW_TARGET = 4096       # max rows (th * wo) per conv tile (VMEM budget may shrink it)
_EPI_ROW_TARGET = 8192   # max rows per normalize+ReLU grid step


# ---------------------------------------------------------------------------
# Hardware-aware sizing helpers
# ---------------------------------------------------------------------------
def _vmem_capacity_bytes():
    try:
        info = pltpu.get_tpu_info()
        for name in ("vmem_capacity_bytes", "vmem_size_bytes", "vmem_bytes"):
            v = getattr(info, name, None)
            if v:
                return int(v)
    except Exception:
        pass
    return 64 << 20  # conservative default (v7x per-TC VMEM)


def _vmem_limit_bytes():
    # ~75% of physical VMEM, capped at 100 MiB: ~96 MiB on v5e/v6e, 48 MiB on v7x.
    return int(max(32 << 20, min(_vmem_capacity_bytes() * 3 // 4, 100 << 20)))


def _choose_th(n, ho, wo, wp, cin, cpad, kh, kw, budget, row_target):
    """Pick the row-tile height: divisor of ho, (kh-1)|th for halo blocks, VMEM-fitting."""
    def valid(d):
        if ho % d:
            return False
        return d == ho or kh <= 1 or d % (kh - 1) == 0

    def est_bytes(d):
        bpe = 2  # bf16 operands
        xin = (d + kh - 1) * wp * cin * bpe
        wgt = kh * kw * cin * cpad * bpe
        raw = d * wo * cpad * bpe
        patches = d * wo * kh * kw * cin * bpe
        acc = d * wo * cpad * 4
        return 2 * (xin + wgt + raw) + patches + acc + (1 << 20)

    cands = [d for d in range(1, ho + 1) if valid(d)]
    fitting = [d for d in cands
               if d * wo <= row_target and est_bytes(d) <= budget]
    if not fitting:
        return min(cands)  # smallest legal tile (may be the full image for odd ho)
    best = max(fitting)
    # Prefer an even total grid (n * nt) so v7x's two TensorCores split evenly,
    # but never shrink the tile by more than 2x for it.
    even = [d for d in fitting if (n * (ho // d)) % 2 == 0]
    if even and 2 * max(even) >= best:
        best = max(even)
    return best


def _choose_rows(total, cpad, in_bytes, out_bytes, budget, row_target):
    """Row-slab size for the elementwise normalize+ReLU pass."""
    per_row = cpad * (in_bytes + out_bytes) * 2 + cpad * 8
    cap = min(total, row_target, max(8, budget // max(per_row, 1)))
    for d in range(cap, 0, -1):
        if total % d == 0 and (d % 8 == 0 or d == total):
            return d
    return total


# ---------------------------------------------------------------------------
# Kernels
# ---------------------------------------------------------------------------
def _conv_stats_kernel(*refs, th, wo, kh, kw, has_halo, use_im2col):
    """One row-tile: conv (single large-K MXU dot) + bias, plus BN partial stats."""
    if has_halo:
        xm_ref, xh_ref, w_ref, b_ref, raw_ref, stats_ref = refs
        x = jnp.concatenate([xm_ref[0], xh_ref[0]], axis=0)   # (th+kh-1, Wp, Cin)
    else:
        xm_ref, w_ref, b_ref, raw_ref, stats_ref = refs
        x = xm_ref[0]                                         # (th+kh-1, Wp, Cin)
    cin = x.shape[-1]

    cols = [x[ky:ky + th, kx:kx + wo, :].reshape(th * wo, cin)
            for ky in range(kh) for kx in range(kw)]
    w = w_ref[...]                                            # (kh*kw*cin, Cpad) bf16

    if use_im2col:
        # In-VMEM im2col -> one K = kh*kw*cin dot (no accumulator read-modify-write).
        patches = cols[0] if len(cols) == 1 else jnp.concatenate(cols, axis=-1)
        acc = jnp.dot(patches, w, preferred_element_type=jnp.float32)
    else:
        # Tiny / non-lane-aligned cin: per-tap dots, first dot initializes acc.
        acc = None
        for tap, col in enumerate(cols):
            part = jnp.dot(col, w[tap * cin:(tap + 1) * cin, :],
                           preferred_element_type=jnp.float32)
            acc = part if acc is None else acc + part

    acc = acc + b_ref[...]                                    # conv bias (1, Cpad)

    raw_ref[0] = acc.reshape(th, wo, -1).astype(raw_ref.dtype)  # bf16 raw store
    s = jnp.sum(acc, axis=0, keepdims=True)                     # per-channel partials
    sq = jnp.sum(acc * acc, axis=0, keepdims=True)
    stats_ref[0, 0] = jnp.concatenate([s, sq], axis=0)


def _norm_relu_kernel(raw_ref, scale_ref, shift_ref, o_ref):
    """y = raw * scale + shift (per-channel, precomputed), then ReLU."""
    y = raw_ref[...].astype(jnp.float32) * scale_ref[...] + shift_ref[...]
    o_ref[...] = jnp.maximum(y, 0.0).astype(o_ref.dtype)


# ---------------------------------------------------------------------------
# Per-block wrapper: Conv(k x k, stride 1, pad p) + train-mode BN + ReLU
# ---------------------------------------------------------------------------
def _conv_bn_relu_block(x, w, b, g, beta, *, padding, out_dtype, matmul_dtype,
                        row_target, vmem_limit):
    n, h, wd, cin = x.shape
    kh, kw, _, cpad = w.shape
    ho = h + 2 * padding - kh + 1
    wo = wd + 2 * padding - kw + 1
    wp = wd + 2 * padding
    hp = h + 2 * padding

    budget = vmem_limit // 2
    th = _choose_th(n, ho, wo, wp, cin, cpad, kh, kw, budget, row_target)
    nt = ho // th
    has_halo = nt > 1 and kh > 1
    use_im2col = (cin % _LANE == 0)

    # Cheap spatial zero-pad (no halo-inflated gather copy of the input).
    # TODO(synk): the pad and block-1's standalone normalize+ReLU pass could be
    # folded into this conv pass (clamped halo specs + in-kernel zero masking),
    # saving another ~2-3 HBM passes per block; kept separate for robustness.
    xp = jnp.pad(x.astype(matmul_dtype),
                 ((0, 0), (padding, padding), (padding, padding), (0, 0)))
    w_flat = w.reshape(kh * kw * cin, cpad).astype(matmul_dtype)
    b_row = b.reshape(1, cpad).astype(jnp.float32)

    kern = functools.partial(_conv_stats_kernel, th=th, wo=wo, kh=kh, kw=kw,
                             has_halo=has_halo, use_im2col=use_im2col)

    in_specs = [pl.BlockSpec((1, th if has_halo else th + kh - 1, wp, cin),
                             lambda bi, j: (bi, j, 0, 0))]
    args = [xp]
    if has_halo:
        hb = th // (kh - 1)
        in_specs.append(pl.BlockSpec((1, kh - 1, wp, cin),
                                     lambda bi, j: (bi, (j + 1) * hb, 0, 0)))
        args.append(xp)
    in_specs += [pl.BlockSpec((kh * kw * cin, cpad), lambda bi, j: (0, 0)),
                 pl.BlockSpec((1, cpad), lambda bi, j: (0, 0))]
    args += [w_flat, b_row]

    raw_dtype = matmul_dtype          # bf16 raw halves the largest HBM stream
    mm = jnp.dtype(matmul_dtype).itemsize
    cost1 = pl.CostEstimate(
        flops=2 * n * ho * wo * kh * kw * cin * cpad,
        transcendentals=0,
        bytes_accessed=(n * hp * wp * cin * mm + kh * kw * cin * cpad * mm
                        + n * ho * wo * cpad * jnp.dtype(raw_dtype).itemsize
                        + n * nt * 2 * cpad * 4))

    raw, stats = pl.pallas_call(
        kern,
        grid=(n, nt),
        out_shape=(jax.ShapeDtypeStruct((n, ho, wo, cpad), raw_dtype),
                   jax.ShapeDtypeStruct((n, nt, 2, cpad), jnp.float32)),
        in_specs=in_specs,
        out_specs=(pl.BlockSpec((1, th, wo, cpad), lambda bi, j: (bi, j, 0, 0)),
                   pl.BlockSpec((1, 1, 2, cpad), lambda bi, j: (bi, j, 0, 0))),
        compiler_params=pltpu.CompilerParams(
            dimension_semantics=("parallel", "parallel"),
            vmem_limit_bytes=vmem_limit),
        cost_estimate=cost1,
    )(*args)

    # Combine per-tile partials -> global per-channel train-mode BN statistics.
    count = float(n * ho * wo)
    ssum = jnp.sum(stats[:, :, 0, :], axis=(0, 1))
    ssq = jnp.sum(stats[:, :, 1, :], axis=(0, 1))
    mean = ssum / count
    # TODO(synk): E[x^2]-mean^2 can cancel for very large-magnitude activations;
    # switch to a Welford-style combine of the per-tile partials if that matters.
    var = jnp.maximum(ssq / count - mean * mean, 0.0)
    scale = (g * jax.lax.rsqrt(var + BN_EPS)).astype(jnp.float32)   # (cpad,)
    shift = (beta - mean * scale).astype(jnp.float32)               # (cpad,)

    # Pass 2: mem-bound normalize + ReLU over large lane-dense row slabs.
    total = n * ho * wo
    raw2 = raw.reshape(total, cpad)
    out_bytes = jnp.dtype(out_dtype).itemsize
    rb = _choose_rows(total, cpad, jnp.dtype(raw_dtype).itemsize, out_bytes,
                      budget, _EPI_ROW_TARGET)
    cost2 = pl.CostEstimate(
        flops=2 * total * cpad, transcendentals=0,
        bytes_accessed=total * cpad * (jnp.dtype(raw_dtype).itemsize + out_bytes))

    out = pl.pallas_call(
        _norm_relu_kernel,
        grid=(total // rb,),
        out_shape=jax.ShapeDtypeStruct((total, cpad), out_dtype),
        in_specs=[pl.BlockSpec((rb, cpad), lambda i: (i, 0)),
                  pl.BlockSpec((1, cpad), lambda i: (0, 0)),
                  pl.BlockSpec((1, cpad), lambda i: (0, 0))],
        out_specs=pl.BlockSpec((rb, cpad), lambda i: (i, 0)),
        compiler_params=pltpu.CompilerParams(
            dimension_semantics=("parallel",),
            vmem_limit_bytes=vmem_limit),
        cost_estimate=cost2,
    )(raw2, scale.reshape(1, cpad), shift.reshape(1, cpad))

    return out.reshape(n, ho, wo, cpad)


# ---------------------------------------------------------------------------
# Public forward pass
# ---------------------------------------------------------------------------
def unet_conv2d(x_nchw, params, *, kernel_size=3, stride=1, padding=1,
                matmul_dtype=jnp.bfloat16, row_target=_ROW_TARGET):
    """Pallas forward pass of UnetConv2D (is_batchnorm=True)."""
    if stride != 1:
        # TODO(synk): strided conv1 (non-default) is not implemented in the
        # halo-row-tile path; the module default (stride=1) is what UNet uses.
        raise NotImplementedError("unet_conv2d currently supports stride=1 only")
    assert params["w1"].shape[0] == kernel_size

    cout = params["w1"].shape[-1]
    cpad = -(-cout // _LANE) * _LANE
    # TODO(synk): for cout << 128 the raw/output HBM streams still carry the
    # 128-lane zero padding (lane-dense stores); packing W into the lane axis
    # would cut that traffic for the first UNet level.
    vmem_limit = _vmem_limit_bytes()

    def padc(a, axis):
        widths = [(0, 0)] * a.ndim
        widths[axis] = (0, cpad - a.shape[axis])
        return jnp.pad(a.astype(jnp.float32), widths)

    x = jnp.transpose(x_nchw, (0, 2, 3, 1)).astype(jnp.float32)   # NCHW -> NHWC

    # Block 1: Conv(Cin->Cout) + BN + ReLU. gamma/beta/bias of the zero-padded
    # output channels are 0, so those channels stay exactly 0 after BN+ReLU.
    h1 = _conv_bn_relu_block(
        x, padc(params["w1"], 3), padc(params["b1"], 0),
        padc(params["g1"], 0), padc(params["beta1"], 0),
        padding=padding, out_dtype=matmul_dtype, matmul_dtype=matmul_dtype,
        row_target=row_target, vmem_limit=vmem_limit)

    # Block 2: Conv(Cout->Cout) + BN + ReLU, fed directly with NHWC bf16 h1.
    w2 = padc(padc(params["w2"], 2), 3)
    h2 = _conv_bn_relu_block(
        h1, w2, padc(params["b2"], 0), padc(params["g2"], 0),
        padc(params["beta2"], 0),
        padding=padding, out_dtype=jnp.float32, matmul_dtype=matmul_dtype,
        row_target=row_target, vmem_limit=vmem_limit)

    return jnp.transpose(h2[..., :cout], (0, 3, 1, 2))            # NHWC -> NCHW


# ---------------------------------------------------------------------------
# Init (mirrors weights_init_kaiming / PyTorch defaults) and pure-JAX reference
# ---------------------------------------------------------------------------
def init_params(key, in_size, out_size, kernel_size=3):
    ks = jax.random.split(key, 6)
    fan1 = in_size * kernel_size * kernel_size
    fan2 = out_size * kernel_size * kernel_size
    w1 = jax.random.normal(ks[0], (kernel_size, kernel_size, in_size, out_size),
                           jnp.float32) * (2.0 / fan1) ** 0.5
    w2 = jax.random.normal(ks[1], (kernel_size, kernel_size, out_size, out_size),
                           jnp.float32) * (2.0 / fan2) ** 0.5
    b1 = jax.random.uniform(ks[2], (out_size,), jnp.float32,
                            -1.0 / fan1 ** 0.5, 1.0 / fan1 ** 0.5)
    b2 = jax.random.uniform(ks[3], (out_size,), jnp.float32,
                            -1.0 / fan2 ** 0.5, 1.0 / fan2 ** 0.5)
    g1 = 1.0 + 0.02 * jax.random.normal(ks[4], (out_size,), jnp.float32)
    g2 = 1.0 + 0.02 * jax.random.normal(ks[5], (out_size,), jnp.float32)
    return dict(w1=w1, b1=b1, g1=g1, beta1=jnp.zeros((out_size,), jnp.float32),
                w2=w2, b2=b2, g2=g2, beta2=jnp.zeros((out_size,), jnp.float32))


def _reference(x_nchw, params, *, padding=1, matmul_dtype=jnp.float32):
    """Pure-JAX reference (lax.conv + train-mode BN + ReLU)."""
    x = jnp.transpose(x_nchw, (0, 2, 3, 1)).astype(jnp.float32)

    def block(h, w, b, g, beta):
        y = jax.lax.conv_general_dilated(
            h.astype(matmul_dtype), w.astype(matmul_dtype),
            window_strides=(1, 1), padding=[(padding, padding)] * 2,
            dimension_numbers=("NHWC", "HWIO", "NHWC"),
            preferred_element_type=jnp.float32)
        y = y + b.reshape(1, 1, 1, -1)
        mean = jnp.mean(y, axis=(0, 1, 2), keepdims=True)
        var = jnp.mean((y - mean) ** 2, axis=(0, 1, 2), keepdims=True)
        y = (y - mean) * jax.lax.rsqrt(var + BN_EPS) * g.reshape(1, 1, 1, -1) \
            + beta.reshape(1, 1, 1, -1)
        return jnp.maximum(y, 0.0)

    h = block(x, params["w1"], params["b1"], params["g1"], params["beta1"])
    h = block(h, params["w2"], params["b2"], params["g2"], params["beta2"])
    return jnp.transpose(h, (0, 3, 1, 2))


if __name__ == "__main__":
    key = jax.random.PRNGKey(0)
    k_x, k_p, k_x2, k_p2 = jax.random.split(key, 4)

    # Primary check: UnetConv2D(in_size=4, out_size=8) on (2, 4, 16, 16).
    N, Cin, H, W = 2, 4, 16, 16
    Cout = 8
    x = jax.random.normal(k_x, (N, Cin, H, W), jnp.float32)
    params = init_params(k_p, Cin, Cout)

    fwd = jax.jit(unet_conv2d)
    out = jax.block_until_ready(fwd(x, params))
    assert out.shape == (N, Cout, H, W), out.shape

    # Tight check against a reference using the same bf16 MXU operand precision.
    ref_bf16 = jax.block_until_ready(_reference(x, params, matmul_dtype=jnp.bfloat16))
    assert jnp.allclose(out, ref_bf16, atol=2e-2, rtol=2e-2), \
        float(jnp.max(jnp.abs(out - ref_bf16)))
    # Loose check against the full-f32 module semantics (bounds bf16 matmul error).
    ref_f32 = jax.block_until_ready(_reference(x, params, matmul_dtype=jnp.float32))
    assert jnp.allclose(out, ref_f32, atol=1e-1, rtol=1e-1), \
        float(jnp.max(jnp.abs(out - ref_f32)))

    # Secondary check: force row tiling (nt > 1) to exercise the halo-BlockSpec path.
    N2, C2, H2, W2, Cout2 = 1, 3, 32, 16, 16
    x2 = jax.random.normal(k_x2, (N2, C2, H2, W2), jnp.float32)
    params2 = init_params(k_p2, C2, Cout2)
    fwd2 = jax.jit(functools.partial(unet_conv2d, row_target=128))
    out2 = jax.block_until_ready(fwd2(x2, params2))
    assert out2.shape == (N2, Cout2, H2, W2), out2.shape
    ref2 = jax.block_until_ready(_reference(x2, params2, matmul_dtype=jnp.bfloat16))
    assert jnp.allclose(out2, ref2, atol=2e-2, rtol=2e-2), \
        float(jnp.max(jnp.abs(out2 - ref2)))

    print("KERNEL_OK")
</pallas_src>

<mosaic_0001>
module attributes {stable_mosaic.version = 11 : i64} {
  func.func @_conv_stats_kernel(%arg0: i32, %arg1: i32, %arg2: memref<1x18x18x4xbf16, #tpu.memory_space<vmem>>, %arg3: memref<36x128xbf16, #tpu.memory_space<vmem>>, %arg4: memref<1x128xf32, #tpu.memory_space<vmem>>, %arg5: memref<1x16x16x128xbf16, #tpu.memory_space<vmem>>, %arg6: memref<1x1x2x128xf32, #tpu.memory_space<vmem>>) attributes {dimension_semantics = [#tpu.dimension_semantics<parallel>, #tpu.dimension_semantics<parallel>], iteration_bounds = array<i64: 2, 1>, scalar_prefetch = 0 : i64, scratch_operands = 0 : i64, tpu.core_type = #tpu.core_type<tc>, window_params = [{transform_indices = @transform_0, window_bounds = array<i64: 1, 18, 18, 4>}, {pipeline_mode = #tpu.pipeline_mode<synchronous>, transform_indices = @transform_1, window_bounds = array<i64: 36, 128>}, {pipeline_mode = #tpu.pipeline_mode<synchronous>, transform_indices = @transform_2, window_bounds = array<i64: 1, 128>}, {transform_indices = @transform_3, window_bounds = array<i64: 1, 16, 16, 128>}, {transform_indices = @transform_4, window_bounds = array<i64: 1, 1, 2, 128>}]} {
    %c0 = arith.constant 0 : index
    %c0_0 = arith.constant 0 : index
    %c0_1 = arith.constant 0 : index
    %c0_2 = arith.constant 0 : index
    %0 = vector.load %arg2[%c0, %c0_0, %c0_1, %c0_2] : memref<1x18x18x4xbf16, #tpu.memory_space<vmem>>, vector<1x18x18x4xbf16>
    %1 = vector.shape_cast %0 : vector<1x18x18x4xbf16> to vector<18x18x4xbf16>
    %2 = vector.extract_strided_slice %1 {offsets = [0, 0, 0], sizes = [16, 16, 4], strides = [1, 1, 1]} : vector<18x18x4xbf16> to vector<16x16x4xbf16>
    %3 = vector.shape_cast %2 : vector<16x16x4xbf16> to vector<256x4xbf16>
    %4 = vector.extract_strided_slice %1 {offsets = [0, 1, 0], sizes = [16, 16, 4], strides = [1, 1, 1]} : vector<18x18x4xbf16> to vector<16x16x4xbf16>
    %5 = vector.shape_cast %4 : vector<16x16x4xbf16> to vector<256x4xbf16>
    %6 = vector.extract_strided_slice %1 {offsets = [0, 2, 0], sizes = [16, 16, 4], strides = [1, 1, 1]} : vector<18x18x4xbf16> to vector<16x16x4xbf16>
    %7 = vector.shape_cast %6 : vector<16x16x4xbf16> to vector<256x4xbf16>
    %8 = vector.extract_strided_slice %1 {offsets = [1, 0, 0], sizes = [16, 16, 4], strides = [1, 1, 1]} : vector<18x18x4xbf16> to vector<16x16x4xbf16>
    %9 = vector.shape_cast %8 : vector<16x16x4xbf16> to vector<256x4xbf16>
    %10 = vector.extract_strided_slice %1 {offsets = [1, 1, 0], sizes = [16, 16, 4], strides = [1, 1, 1]} : vector<18x18x4xbf16> to vector<16x16x4xbf16>
    %11 = vector.shape_cast %10 : vector<16x16x4xbf16> to vector<256x4xbf16>
    %12 = vector.extract_strided_slice %1 {offsets = [1, 2, 0], sizes = [16, 16, 4], strides = [1, 1, 1]} : vector<18x18x4xbf16> to vector<16x16x4xbf16>
    %13 = vector.shape_cast %12 : vector<16x16x4xbf16> to vector<256x4xbf16>
    %14 = vector.extract_strided_slice %1 {offsets = [2, 0, 0], sizes = [16, 16, 4], strides = [1, 1, 1]} : vector<18x18x4xbf16> to vector<16x16x4xbf16>
    %15 = vector.shape_cast %14 : vector<16x16x4xbf16> to vector<256x4xbf16>
    %16 = vector.extract_strided_slice %1 {offsets = [2, 1, 0], sizes = [16, 16, 4], strides = [1, 1, 1]} : vector<18x18x4xbf16> to vector<16x16x4xbf16>
    %17 = vector.shape_cast %16 : vector<16x16x4xbf16> to vector<256x4xbf16>
    %18 = vector.extract_strided_slice %1 {offsets = [2, 2, 0], sizes = [16, 16, 4], strides = [1, 1, 1]} : vector<18x18x4xbf16> to vector<16x16x4xbf16>
    %19 = vector.shape_cast %18 : vector<16x16x4xbf16> to vector<256x4xbf16>
    %c0_3 = arith.constant 0 : index
    %c0_4 = arith.constant 0 : index
    %20 = vector.load %arg3[%c0_3, %c0_4] : memref<36x128xbf16, #tpu.memory_space<vmem>>, vector<36x128xbf16>
    %21 = vector.extract_strided_slice %20 {offsets = [0, 0], sizes = [4, 128], strides = [1, 1]} : vector<36x128xbf16> to vector<4x128xbf16>
    %cst = arith.constant dense<0.000000e+00> : vector<256x128xf32>
    %22 = tpu.matmul %3, %21, %cst {dimension_numbers = #tpu.dot_dimension_numbers<[1], [0], [0], [1], [0, 0, 1, 1], [], []>} : vector<256x4xbf16>, vector<4x128xbf16>, vector<256x128xf32> -> vector<256x128xf32>
    %23 = vector.extract_strided_slice %20 {offsets = [4, 0], sizes = [4, 128], strides = [1, 1]} : vector<36x128xbf16> to vector<4x128xbf16>
    %cst_5 = arith.constant dense<0.000000e+00> : vector<256x128xf32>
    %24 = tpu.matmul %5, %23, %cst_5 {dimension_numbers = #tpu.dot_dimension_numbers<[1], [0], [0], [1], [0, 0, 1, 1], [], []>} : vector<256x4xbf16>, vector<4x128xbf16>, vector<256x128xf32> -> vector<256x128xf32>
    %25 = arith.addf %22, %24 : vector<256x128xf32>
    %26 = vector.extract_strided_slice %20 {offsets = [8, 0], sizes = [4, 128], strides = [1, 1]} : vector<36x128xbf16> to vector<4x128xbf16>
    %cst_6 = arith.constant dense<0.000000e+00> : vector<256x128xf32>
    %27 = tpu.matmul %7, %26, %cst_6 {dimension_numbers = #tpu.dot_dimension_numbers<[1], [0], [0], [1], [0, 0, 1, 1], [], []>} : vector<256x4xbf16>, vector<4x128xbf16>, vector<256x128xf32> -> vector<256x128xf32>
    %28 = arith.addf %25, %27 : vector<256x128xf32>
    %29 = vector.extract_strided_slice %20 {offsets = [12, 0], sizes = [4, 128], strides = [1, 1]} : vector<36x128xbf16> to vector<4x128xbf16>
    %cst_7 = arith.constant dense<0.000000e+00> : vector<256x128xf32>
    %30 = tpu.matmul %9, %29, %cst_7 {dimension_numbers = #tpu.dot_dimension_numbers<[1], [0], [0], [1], [0, 0, 1, 1], [], []>} : vector<256x4xbf16>, vector<4x128xbf16>, vector<256x128xf32> -> vector<256x128xf32>
    %31 = arith.addf %28, %30 : vector<256x128xf32>
    %32 = vector.extract_strided_slice %20 {offsets = [16, 0], sizes = [4, 128], strides = [1, 1]} : vector<36x128xbf16> to vector<4x128xbf16>
    %cst_8 = arith.constant dense<0.000000e+00> : vector<256x128xf32>
    %33 = tpu.matmul %11, %32, %cst_8 {dimension_numbers = #tpu.dot_dimension_numbers<[1], [0], [0], [1], [0, 0, 1, 1], [], []>} : vector<256x4xbf16>, vector<4x128xbf16>, vector<256x128xf32> -> vector<256x128xf32>
    %34 = arith.addf %31, %33 : vector<256x128xf32>
    %35 = vector.extract_strided_slice %20 {offsets = [20, 0], sizes = [4, 128], strides = [1, 1]} : vector<36x128xbf16> to vector<4x128xbf16>
    %cst_9 = arith.constant dense<0.000000e+00> : vector<256x128xf32>
    %36 = tpu.matmul %13, %35, %cst_9 {dimension_numbers = #tpu.dot_dimension_numbers<[1], [0], [0], [1], [0, 0, 1, 1], [], []>} : vector<256x4xbf16>, vector<4x128xbf16>, vector<256x128xf32> -> vector<256x128xf32>
    %37 = arith.addf %34, %36 : vector<256x128xf32>
    %38 = vector.extract_strided_slice %20 {offsets = [24, 0], sizes = [4, 128], strides = [1, 1]} : vector<36x128xbf16> to vector<4x128xbf16>
    %cst_10 = arith.constant dense<0.000000e+00> : vector<256x128xf32>
    %39 = tpu.matmul %15, %38, %cst_10 {dimension_numbers = #tpu.dot_dimension_numbers<[1], [0], [0], [1], [0, 0, 1, 1], [], []>} : vector<256x4xbf16>, vector<4x128xbf16>, vector<256x128xf32> -> vector<256x128xf32>
    %40 = arith.addf %37, %39 : vector<256x128xf32>
    %41 = vector.extract_strided_slice %20 {offsets = [28, 0], sizes = [4, 128], strides = [1, 1]} : vector<36x128xbf16> to vector<4x128xbf16>
    %cst_11 = arith.constant dense<0.000000e+00> : vector<256x128xf32>
    %42 = tpu.matmul %17, %41, %cst_11 {dimension_numbers = #tpu.dot_dimension_numbers<[1], [0], [0], [1], [0, 0, 1, 1], [], []>} : vector<256x4xbf16>, vector<4x128xbf16>, vector<256x128xf32> -> vector<256x128xf32>
    %43 = arith.addf %40, %42 : vector<256x128xf32>
    %44 = vector.extract_strided_slice %20 {offsets = [32, 0], sizes = [4, 128], strides = [1, 1]} : vector<36x128xbf16> to vector<4x128xbf16>
    %cst_12 = arith.constant dense<0.000000e+00> : vector<256x128xf32>
    %45 = tpu.matmul %19, %44, %cst_12 {dimension_numbers = #tpu.dot_dimension_numbers<[1], [0], [0], [1], [0, 0, 1, 1], [], []>} : vector<256x4xbf16>, vector<4x128xbf16>, vector<256x128xf32> -> vector<256x128xf32>
    %46 = arith.addf %43, %45 : vector<256x128xf32>
    %c0_13 = arith.constant 0 : index
    %c0_14 = arith.constant 0 : index
    %47 = vector.load %arg4[%c0_13, %c0_14] : memref<1x128xf32, #tpu.memory_space<vmem>>, vector<1x128xf32>
    %48 = vector.broadcast %47 : vector<1x128xf32> to vector<256x128xf32>
    %49 = arith.addf %46, %48 : vector<256x128xf32>
    %50 = vector.shape_cast %49 : vector<256x128xf32> to vector<16x16x128xf32>
    %51 = arith.truncf %50 : vector<16x16x128xf32> to vector<16x16x128xbf16>
    %c0_15 = arith.constant 0 : index
    %c0_16 = arith.constant 0 : index
    %c0_17 = arith.constant 0 : index
    %c0_18 = arith.constant 0 : index
    %52 = vector.load %arg5[%c0_15, %c0_16, %c0_17, %c0_18] : memref<1x16x16x128xbf16, #tpu.memory_space<vmem>>, vector<1x16x16x128xbf16>
    %53 = vector.shape_cast %52 : vector<1x16x16x128xbf16> to vector<16x16x128xbf16>
    %54 = vector.shape_cast %51 : vector<16x16x128xbf16> to vector<1x16x16x128xbf16>
    tpu.vector_store %arg5[%c0_15, %c0_16, %c0_17, %c0_18], %54 {strides = array<i32>} : memref<1x16x16x128xbf16, #tpu.memory_space<vmem>>, vector<1x16x16x128xbf16>,
    %cst_19 = arith.constant dense<0.000000e+00> : vector<128xf32>
    %55 = vector.multi_reduction <add>, %49, %cst_19 [0] : vector<256x128xf32> to vector<128xf32>
    %56 = vector.shape_cast %55 : vector<128xf32> to vector<1x128xf32>
    %57 = arith.mulf %49, %49 : vector<256x128xf32>
    %cst_20 = arith.constant dense<0.000000e+00> : vector<128xf32>
    %58 = vector.multi_reduction <add>, %57, %cst_20 [0] : vector<256x128xf32> to vector<128xf32>
    %59 = vector.shape_cast %58 : vector<128xf32> to vector<1x128xf32>
    %60 = tpu.concatenate %56, %59 in 0 : vector<1x128xf32>, vector<1x128xf32> -> vector<2x128xf32>
    %c0_21 = arith.constant 0 : index
    %c0_22 = arith.constant 0 : index
    %c0_23 = arith.constant 0 : index
    %c0_24 = arith.constant 0 : index
    %61 = vector.load %arg6[%c0_21, %c0_22, %c0_23, %c0_24] : memref<1x1x2x128xf32, #tpu.memory_space<vmem>>, vector<1x1x2x128xf32>
    %62 = vector.shape_cast %61 : vector<1x1x2x128xf32> to vector<2x128xf32>
    %63 = vector.shape_cast %60 : vector<2x128xf32> to vector<1x1x2x128xf32>
    tpu.vector_store %arg6[%c0_21, %c0_22, %c0_23, %c0_24], %63 {strides = array<i32>} : memref<1x1x2x128xf32, #tpu.memory_space<vmem>>, vector<1x1x2x128xf32>,
    return
  }
  func.func @transform_0(%arg0: i32, %arg1: i32) -> (i32, i32, i32, i32) {
    %c0_i32 = arith.constant 0 : i32
    %c0_i32_0 = arith.constant 0 : i32
    %c0_i32_1 = arith.constant 0 : i32
    return %arg0, %arg1, %c0_i32, %c0_i32_0 : i32, i32, i32, i32
  }
  func.func @transform_1(%arg0: i32, %arg1: i32) -> (i32, i32) {
    %c0_i32 = arith.constant 0 : i32
    %c0_i32_0 = arith.constant 0 : i32
    %c0_i32_1 = arith.constant 0 : i32
    return %c0_i32, %c0_i32_0 : i32, i32
  }
  func.func @transform_2(%arg0: i32, %arg1: i32) -> (i32, i32) {
    %c0_i32 = arith.constant 0 : i32
    %c0_i32_0 = arith.constant 0 : i32
    %c0_i32_1 = arith.constant 0 : i32
    return %c0_i32, %c0_i32_0 : i32, i32
  }
  func.func @transform_3(%arg0: i32, %arg1: i32) -> (i32, i32, i32, i32) {
    %c0_i32 = arith.constant 0 : i32
    %c0_i32_0 = arith.constant 0 : i32
    %c0_i32_1 = arith.constant 0 : i32
    return %arg0, %arg1, %c0_i32, %c0_i32_0 : i32, i32, i32, i32
  }
  func.func @transform_4(%arg0: i32, %arg1: i32) -> (i32, i32, i32, i32) {
    %c0_i32 = arith.constant 0 : i32
    %c0_i32_0 = arith.constant 0 : i32
    %c0_i32_1 = arith.constant 0 : i32
    return %arg0, %arg1, %c0_i32, %c0_i32_0 : i32, i32, i32, i32
  }
}

module attributes {stable_mosaic.version = 11 : i64} {
  func.func @_norm_relu_kernel(%arg0: i32, %arg1: memref<512x128xbf16, #tpu.memory_space<vmem>>, %arg2: memref<1x128xf32, #tpu.memory_space<vmem>>, %arg3: memref<1x128xf32, #tpu.memory_space<vmem>>, %arg4: memref<512x128xbf16, #tpu.memory_space<vmem>>) attributes {dimension_semantics = [#tpu.dimension_semantics<parallel>], iteration_bounds = array<i64: 1>, scalar_prefetch = 0 : i64, scratch_operands = 0 : i64, tpu.core_type = #tpu.core_type<tc>, window_params = [{transform_indices = @transform_0, window_bounds = array<i64: 512, 128>}, {pipeline_mode = #tpu.pipeline_mode<synchronous>, transform_indices = @transform_1, window_bounds = array<i64: 1, 128>}, {pipeline_mode = #tpu.pipeline_mode<synchronous>, transform_indices = @transform_2, window_bounds = array<i64: 1, 128>}, {transform_indices = @transform_3, window_bounds = array<i64: 512, 128>}]} {
    %c0 = arith.constant 0 : index
    %c0_0 = arith.constant 0 : index
    %0 = vector.load %arg1[%c0, %c0_0] : memref<512x128xbf16, #tpu.memory_space<vmem>>, vector<512x128xbf16>
    %1 = arith.extf %0 : vector<512x128xbf16> to vector<512x128xf32>
    %c0_1 = arith.constant 0 : index
    %c0_2 = arith.constant 0 : index
    %2 = vector.load %arg2[%c0_1, %c0_2] : memref<1x128xf32, #tpu.memory_space<vmem>>, vector<1x128xf32>
    %3 = vector.broadcast %2 : vector<1x128xf32> to vector<512x128xf32>
    %4 = arith.mulf %1, %3 : vector<512x128xf32>
    %c0_3 = arith.constant 0 : index
    %c0_4 = arith.constant 0 : index
    %5 = vector.load %arg3[%c0_3, %c0_4] : memref<1x128xf32, #tpu.memory_space<vmem>>, vector<1x128xf32>
    %6 = vector.broadcast %5 : vector<1x128xf32> to vector<512x128xf32>
    %7 = arith.addf %4, %6 : vector<512x128xf32>
    %cst = arith.constant 0.000000e+00 : f32
    %8 = vector.broadcast %cst : f32 to vector<512x128xf32>
    %9 = arith.maximumf %7, %8 : vector<512x128xf32>
    %10 = arith.truncf %9 : vector<512x128xf32> to vector<512x128xbf16>
    %c0_5 = arith.constant 0 : index
    %c0_6 = arith.constant 0 : index
    %11 = vector.load %arg4[%c0_5, %c0_6] : memref<512x128xbf16, #tpu.memory_space<vmem>>, vector<512x128xbf16>
    tpu.vector_store %arg4[%c0_5, %c0_6], %10 {strides = array<i32>} : memref<512x128xbf16, #tpu.memory_space<vmem>>, vector<512x128xbf16>,
    return
  }
  func.func @transform_0(%arg0: i32) -> (i32, i32) {
    %c0_i32 = arith.constant 0 : i32
    %c0_i32_0 = arith.constant 0 : i32
    return %arg0, %c0_i32 : i32, i32
  }
  func.func @transform_1(%arg0: i32) -> (i32, i32) {
    %c0_i32 = arith.constant 0 : i32
    %c0_i32_0 = arith.constant 0 : i32
    %c0_i32_1 = arith.constant 0 : i32
    return %c0_i32, %c0_i32_0 : i32, i32
  }
  func.func @transform_2(%arg0: i32) -> (i32, i32) {
    %c0_i32 = arith.constant 0 : i32
    %c0_i32_0 = arith.constant 0 : i32
    %c0_i32_1 = arith.constant 0 : i32
    return %c0_i32, %c0_i32_0 : i32, i32
  }
  func.func @transform_3(%arg0: i32) -> (i32, i32) {
    %c0_i32 = arith.constant 0 : i32
    %c0_i32_0 = arith.constant 0 : i32
    return %arg0, %c0_i32 : i32, i32
  }
}

module attributes {stable_mosaic.version = 11 : i64} {
  func.func @_norm_relu_kernel(%arg0: i32, %arg1: memref<512x128xbf16, #tpu.memory_space<vmem>>, %arg2: memref<1x128xf32, #tpu.memory_space<vmem>>, %arg3: memref<1x128xf32, #tpu.memory_space<vmem>>, %arg4: memref<512x128xf32, #tpu.memory_space<vmem>>) attributes {dimension_semantics = [#tpu.dimension_semantics<parallel>], iteration_bounds = array<i64: 1>, scalar_prefetch = 0 : i64, scratch_operands = 0 : i64, tpu.core_type = #tpu.core_type<tc>, window_params = [{transform_indices = @transform_0, window_bounds = array<i64: 512, 128>}, {pipeline_mode = #tpu.pipeline_mode<synchronous>, transform_indices = @transform_1, window_bounds = array<i64: 1, 128>}, {pipeline_mode = #tpu.pipeline_mode<synchronous>, transform_indices = @transform_2, window_bounds = array<i64: 1, 128>}, {transform_indices = @transform_3, window_bounds = array<i64: 512, 128>}]} {
    %c0 = arith.constant 0 : index
    %c0_0 = arith.constant 0 : index
    %0 = vector.load %arg1[%c0, %c0_0] : memref<512x128xbf16, #tpu.memory_space<vmem>>, vector<512x128xbf16>
    %1 = arith.extf %0 : vector<512x128xbf16> to vector<512x128xf32>
    %c0_1 = arith.constant 0 : index
    %c0_2 = arith.constant 0 : index
    %2 = vector.load %arg2[%c0_1, %c0_2] : memref<1x128xf32, #tpu.memory_space<vmem>>, vector<1x128xf32>
    %3 = vector.broadcast %2 : vector<1x128xf32> to vector<512x128xf32>
    %4 = arith.mulf %1, %3 : vector<512x128xf32>
    %c0_3 = arith.constant 0 : index
    %c0_4 = arith.constant 0 : index
    %5 = vector.load %arg3[%c0_3, %c0_4] : memref<1x128xf32, #tpu.memory_space<vmem>>, vector<1x128xf32>
    %6 = vector.broadcast %5 : vector<1x128xf32> to vector<512x128xf32>
    %7 = arith.addf %4, %6 : vector<512x128xf32>
    %cst = arith.constant 0.000000e+00 : f32
    %8 = vector.broadcast %cst : f32 to vector<512x128xf32>
    %9 = arith.maximumf %7, %8 : vector<512x128xf32>
    %c0_5 = arith.constant 0 : index
    %c0_6 = arith.constant 0 : index
    %10 = vector.load %arg4[%c0_5, %c0_6] : memref<512x128xf32, #tpu.memory_space<vmem>>, vector<512x128xf32>
    tpu.vector_store %arg4[%c0_5, %c0_6], %9 {strides = array<i32>} : memref<512x128xf32, #tpu.memory_space<vmem>>, vector<512x128xf32>,
    return
  }
  func.func @transform_0(%arg0: i32) -> (i32, i32) {
    %c0_i32 = arith.constant 0 : i32
    %c0_i32_0 = arith.constant 0 : i32
    return %arg0, %c0_i32 : i32, i32
  }
  func.func @transform_1(%arg0: i32) -> (i32, i32) {
    %c0_i32 = arith.constant 0 : i32
    %c0_i32_0 = arith.constant 0 : i32
    %c0_i32_1 = arith.constant 0 : i32
    return %c0_i32, %c0_i32_0 : i32, i32
  }
  func.func @transform_2(%arg0: i32) -> (i32, i32) {
    %c0_i32 = arith.constant 0 : i32
    %c0_i32_0 = arith.constant 0 : i32
    %c0_i32_1 = arith.constant 0 : i32
    return %c0_i32, %c0_i32_0 : i32, i32
  }
  func.func @transform_3(%arg0: i32) -> (i32, i32) {
    %c0_i32 = arith.constant 0 : i32
    %c0_i32_0 = arith.constant 0 : i32
    return %arg0, %c0_i32 : i32, i32
  }
}

module attributes {stable_mosaic.version = 11 : i64} {
  func.func @_conv_stats_kernel(%arg0: i32, %arg1: i32, %arg2: memref<1x18x18x128xbf16, #tpu.memory_space<vmem>>, %arg3: memref<1152x128xbf16, #tpu.memory_space<vmem>>, %arg4: memref<1x128xf32, #tpu.memory_space<vmem>>, %arg5: memref<1x16x16x128xbf16, #tpu.memory_space<vmem>>, %arg6: memref<1x1x2x128xf32, #tpu.memory_space<vmem>>) attributes {dimension_semantics = [#tpu.dimension_semantics<parallel>, #tpu.dimension_semantics<parallel>], iteration_bounds = array<i64: 2, 1>, scalar_prefetch = 0 : i64, scratch_operands = 0 : i64, tpu.core_type = #tpu.core_type<tc>, window_params = [{transform_indices = @transform_0, window_bounds = array<i64: 1, 18, 18, 128>}, {pipeline_mode = #tpu.pipeline_mode<synchronous>, transform_indices = @transform_1, window_bounds = array<i64: 1152, 128>}, {pipeline_mode = #tpu.pipeline_mode<synchronous>, transform_indices = @transform_2, window_bounds = array<i64: 1, 128>}, {transform_indices = @transform_3, window_bounds = array<i64: 1, 16, 16, 128>}, {transform_indices = @transform_4, window_bounds = array<i64: 1, 1, 2, 128>}]} {
    %c0 = arith.constant 0 : index
    %c0_0 = arith.constant 0 : index
    %c0_1 = arith.constant 0 : index
    %c0_2 = arith.constant 0 : index
    %0 = vector.load %arg2[%c0, %c0_0, %c0_1, %c0_2] : memref<1x18x18x128xbf16, #tpu.memory_space<vmem>>, vector<1x18x18x128xbf16>
    %1 = vector.shape_cast %0 : vector<1x18x18x128xbf16> to vector<18x18x128xbf16>
    %2 = vector.extract_strided_slice %1 {offsets = [0, 0, 0], sizes = [16, 16, 128], strides = [1, 1, 1]} : vector<18x18x128xbf16> to vector<16x16x128xbf16>
    %3 = vector.shape_cast %2 : vector<16x16x128xbf16> to vector<256x128xbf16>
    %4 = vector.extract_strided_slice %1 {offsets = [0, 1, 0], sizes = [16, 16, 128], strides = [1, 1, 1]} : vector<18x18x128xbf16> to vector<16x16x128xbf16>
    %5 = vector.shape_cast %4 : vector<16x16x128xbf16> to vector<256x128xbf16>
    %6 = vector.extract_strided_slice %1 {offsets = [0, 2, 0], sizes = [16, 16, 128], strides = [1, 1, 1]} : vector<18x18x128xbf16> to vector<16x16x128xbf16>
    %7 = vector.shape_cast %6 : vector<16x16x128xbf16> to vector<256x128xbf16>
    %8 = vector.extract_strided_slice %1 {offsets = [1, 0, 0], sizes = [16, 16, 128], strides = [1, 1, 1]} : vector<18x18x128xbf16> to vector<16x16x128xbf16>
    %9 = vector.shape_cast %8 : vector<16x16x128xbf16> to vector<256x128xbf16>
    %10 = vector.extract_strided_slice %1 {offsets = [1, 1, 0], sizes = [16, 16, 128], strides = [1, 1, 1]} : vector<18x18x128xbf16> to vector<16x16x128xbf16>
    %11 = vector.shape_cast %10 : vector<16x16x128xbf16> to vector<256x128xbf16>
    %12 = vector.extract_strided_slice %1 {offsets = [1, 2, 0], sizes = [16, 16, 128], strides = [1, 1, 1]} : vector<18x18x128xbf16> to vector<16x16x128xbf16>
    %13 = vector.shape_cast %12 : vector<16x16x128xbf16> to vector<256x128xbf16>
    %14 = vector.extract_strided_slice %1 {offsets = [2, 0, 0], sizes = [16, 16, 128], strides = [1, 1, 1]} : vector<18x18x128xbf16> to vector<16x16x128xbf16>
    %15 = vector.shape_cast %14 : vector<16x16x128xbf16> to vector<256x128xbf16>
    %16 = vector.extract_strided_slice %1 {offsets = [2, 1, 0], sizes = [16, 16, 128], strides = [1, 1, 1]} : vector<18x18x128xbf16> to vector<16x16x128xbf16>
    %17 = vector.shape_cast %16 : vector<16x16x128xbf16> to vector<256x128xbf16>
    %18 = vector.extract_strided_slice %1 {offsets = [2, 2, 0], sizes = [16, 16, 128], strides = [1, 1, 1]} : vector<18x18x128xbf16> to vector<16x16x128xbf16>
    %19 = vector.shape_cast %18 : vector<16x16x128xbf16> to vector<256x128xbf16>
    %c0_3 = arith.constant 0 : index
    %c0_4 = arith.constant 0 : index
    %20 = vector.load %arg3[%c0_3, %c0_4] : memref<1152x128xbf16, #tpu.memory_space<vmem>>, vector<1152x128xbf16>
    %21 = tpu.concatenate %3, %5, %7, %9, %11, %13, %15, %17, %19 in 1 : vector<256x128xbf16>, vector<256x128xbf16>, vector<256x128xbf16>, vector<256x128xbf16>, vector<256x128xbf16>, vector<256x128xbf16>, vector<256x128xbf16>, vector<256x128xbf16>, vector<256x128xbf16> -> vector<256x1152xbf16>
    %cst = arith.constant dense<0.000000e+00> : vector<256x128xf32>
    %22 = tpu.matmul %21, %20, %cst {dimension_numbers = #tpu.dot_dimension_numbers<[1], [0], [0], [1], [0, 0, 1, 1], [], []>} : vector<256x1152xbf16>, vector<1152x128xbf16>, vector<256x128xf32> -> vector<256x128xf32>
    %c0_5 = arith.constant 0 : index
    %c0_6 = arith.constant 0 : index
    %23 = vector.load %arg4[%c0_5, %c0_6] : memref<1x128xf32, #tpu.memory_space<vmem>>, vector<1x128xf32>
    %24 = vector.broadcast %23 : vector<1x128xf32> to vector<256x128xf32>
    %25 = arith.addf %22, %24 : vector<256x128xf32>
    %26 = vector.shape_cast %25 : vector<256x128xf32> to vector<16x16x128xf32>
    %27 = arith.truncf %26 : vector<16x16x128xf32> to vector<16x16x128xbf16>
    %c0_7 = arith.constant 0 : index
    %c0_8 = arith.constant 0 : index
    %c0_9 = arith.constant 0 : index
    %c0_10 = arith.constant 0 : index
    %28 = vector.load %arg5[%c0_7, %c0_8, %c0_9, %c0_10] : memref<1x16x16x128xbf16, #tpu.memory_space<vmem>>, vector<1x16x16x128xbf16>
    %29 = vector.shape_cast %28 : vector<1x16x16x128xbf16> to vector<16x16x128xbf16>
    %30 = vector.shape_cast %27 : vector<16x16x128xbf16> to vector<1x16x16x128xbf16>
    tpu.vector_store %arg5[%c0_7, %c0_8, %c0_9, %c0_10], %30 {strides = array<i32>} : memref<1x16x16x128xbf16, #tpu.memory_space<vmem>>, vector<1x16x16x128xbf16>,
    %cst_11 = arith.constant dense<0.000000e+00> : vector<128xf32>
    %31 = vector.multi_reduction <add>, %25, %cst_11 [0] : vector<256x128xf32> to vector<128xf32>
    %32 = vector.shape_cast %31 : vector<128xf32> to vector<1x128xf32>
    %33 = arith.mulf %25, %25 : vector<256x128xf32>
    %cst_12 = arith.constant dense<0.000000e+00> : vector<128xf32>
    %34 = vector.multi_reduction <add>, %33, %cst_12 [0] : vector<256x128xf32> to vector<128xf32>
    %35 = vector.shape_cast %34 : vector<128xf32> to vector<1x128xf32>
    %36 = tpu.concatenate %32, %35 in 0 : vector<1x128xf32>, vector<1x128xf32> -> vector<2x128xf32>
    %c0_13 = arith.constant 0 : index
    %c0_14 = arith.constant 0 : index
    %c0_15 = arith.constant 0 : index
    %c0_16 = arith.constant 0 : index
    %37 = vector.load %arg6[%c0_13, %c0_14, %c0_15, %c0_16] : memref<1x1x2x128xf32, #tpu.memory_space<vmem>>, vector<1x1x2x128xf32>
    %38 = vector.shape_cast %37 : vector<1x1x2x128xf32> to vector<2x128xf32>
    %39 = vector.shape_cast %36 : vector<2x128xf32> to vector<1x1x2x128xf32>
    tpu.vector_store %arg6[%c0_13, %c0_14, %c0_15, %c0_16], %39 {strides = array<i32>} : memref<1x1x2x128xf32, #tpu.memory_space<vmem>>, vector<1x1x2x128xf32>,
    return
  }
  func.func @transform_0(%arg0: i32, %arg1: i32) -> (i32, i32, i32, i32) {
    %c0_i32 = arith.constant 0 : i32
    %c0_i32_0 = arith.constant 0 : i32
    %c0_i32_1 = arith.constant 0 : i32
    return %arg0, %arg1, %c0_i32, %c0_i32_0 : i32, i32, i32, i32
  }
  func.func @transform_1(%arg0: i32, %arg1: i32) -> (i32, i32) {
    %c0_i32 = arith.constant 0 : i32
    %c0_i32_0 = arith.constant 0 : i32
    %c0_i32_1 = arith.constant 0 : i32
    return %c0_i32, %c0_i32_0 : i32, i32
  }
  func.func @transform_2(%arg0: i32, %arg1: i32) -> (i32, i32) {
    %c0_i32 = arith.constant 0 : i32
    %c0_i32_0 = arith.constant 0 : i32
    %c0_i32_1 = arith.constant 0 : i32
    return %c0_i32, %c0_i32_0 : i32, i32
  }
  func.func @transform_3(%arg0: i32, %arg1: i32) -> (i32, i32, i32, i32) {
    %c0_i32 = arith.constant 0 : i32
    %c0_i32_0 = arith.constant 0 : i32
    %c0_i32_1 = arith.constant 0 : i32
    return %arg0, %arg1, %c0_i32, %c0_i32_0 : i32, i32, i32, i32
  }
  func.func @transform_4(%arg0: i32, %arg1: i32) -> (i32, i32, i32, i32) {
    %c0_i32 = arith.constant 0 : i32
    %c0_i32_0 = arith.constant 0 : i32
    %c0_i32_1 = arith.constant 0 : i32
    return %arg0, %arg1, %c0_i32, %c0_i32_0 : i32, i32, i32, i32
  }
}

</mosaic_0001>

<bundles_post_ra>
// kernel: unet_conv2d.5
= control target key start
LH: loop header
LB: loop body
LE: loop exit
PB: predicated region body
PF: predicated region fallthrough
CT: control target
= control target key end

     0   :  { %s1502_s0 = inlined_call_operand.vmem [shape: bf16[512,128], index: 0, kind: input, shape index: {}]   ;;  %s1503_s1 = inlined_call_operand.vmem [shape: f32[1,128], index: 1, kind: input, shape index: {}]   ;;  %s1504_s2 = inlined_call_operand.vmem [shape: f32[1,128], index: 2, kind: input, shape index: {}]   ;;  %s1505_s3 = inlined_call_operand.vmem [shape: bf16[512,128], index: 3, kind: output, shape index: {}]  }
   0x1   :  { %v803_v0 = vld [vmem:[%s1502_s0] sm:$0xff]   ;;  %v1090_v4 = vld [vmem:[%s1502_s0 + $0x8] sm:$0xff]   ;;  %v1091_v5 = vld [vmem:[%s1502_s0 + $0x10] sm:$0xff]  }
   0x2   :  { %v1178_v1 = vld [vmem:[%s1503_s1] ss:$0 sm:$0xff]  ;;  %v804_v2 = vunpack.c.l.bf16 %v803_v0  ;;  %v805_v3 = vunpack.c.h.bf16 %v803_v0  ;;  %v1092_v6 = vld [vmem:[%s1502_s0 + $0x18] sm:$0xff]   ;;  %v808_v8 = vunpack.c.l.bf16 %v1090_v4  ;;  %v809_v9 = vunpack.c.h.bf16 %v1090_v4  ;;  %v1094_v33 = vld [vmem:[%s1502_s0 + $0x28] sm:$0xff]  }
   0x3   :  { %v1192_v7 = vld [vmem:[%s1504_s2] ss:$0 sm:$0xff]  ;;  %v812_v10 = vunpack.c.l.bf16 %v1091_v5  ;;  %v813_v11 = vunpack.c.h.bf16 %v1091_v5  ;;  %v816_v14 = vunpack.c.l.bf16 %v1092_v6  ;;  %v817_v15 = vunpack.c.h.bf16 %v1092_v6  ;;  %v1095_v38 = vld [vmem:[%s1502_s0 + $0x30] sm:$0xff]   ;;  %v1096_v43 = vld [vmem:[%s1502_s0 + $0x38] sm:$0xff]  }
   0x4   :  { %v149_v12 = vmul.f32 %v804_v2, %v1178_v1  ;;  %v150_v13 = vmul.f32 %v805_v3, %v1178_v1  ;;  %v151_v16 = vmul.f32 %v808_v8, %v1178_v1  ;;  %v152_v17 = vmul.f32 %v809_v9, %v1178_v1  ;;  %v1093_v28 = vld [vmem:[%s1502_s0 + $0x20] sm:$0xff]  }
   0x5   :  { %v153_v18 = vmul.f32 %v812_v10, %v1178_v1  ;;  %v154_v19 = vmul.f32 %v813_v11, %v1178_v1  ;;  %v155_v22 = vmul.f32 %v816_v14, %v1178_v1  ;;  %v156_v23 = vmul.f32 %v817_v15, %v1178_v1  ;;  %v1097_v0 = vld [vmem:[%s1502_s0 + $0x40] sm:$0xff]   ;;  %v1098_v11 = vld [vmem:[%s1502_s0 + $0x48] sm:$0xff]  }
   0x6   :  { %v220_v20 = vadd.f32 %v1192_v7, %v149_v12  ;;  %v221_v21 = vadd.f32 %v1192_v7, %v150_v13  ;;  %v222_v24 = vadd.f32 %v1192_v7, %v151_v16  ;;  %v223_v25 = vadd.f32 %v1192_v7, %v152_v17  ;;  %v1099_v16 = vld [vmem:[%s1502_s0 + $0x50] sm:$0xff]  }
   0x7   :  { %v224_v26 = vadd.f32 %v1192_v7, %v153_v18  ;;  %v225_v27 = vadd.f32 %v1192_v7, %v154_v19  ;;  %v226_v31 = vadd.f32 %v1192_v7, %v155_v22  ;;  %v227_v32 = vadd.f32 %v1192_v7, %v156_v23 }
   0x8   :  { %v284_v29 = vmax.f32 %v220_v20, 0.0  ;;  %v285_v30 = vmax.f32 %v221_v21, 0.0  ;;  %v286_v34 = vmax.f32 %v222_v24, 0.0  ;;  %v287_v35 = vmax.f32 %v223_v25, 0.0  ;;  %v1100_v25 = vld [vmem:[%s1502_s0 + $0x58] sm:$0xff]  }
   0x9   :  { %v288_v36 = vmax.f32 %v224_v26, 0.0  ;;  %v289_v37 = vmax.f32 %v225_v27, 0.0  ;;  %v290_v40 = vmax.f32 %v226_v31, 0.0  ;;  %v291_v41 = vmax.f32 %v227_v32, 0.0 }
   0xa   :  { %v933_v39 = vpack.c.bf16 %v285_v30, %v284_v29  ;;  %v820_v42 = vunpack.c.l.bf16 %v1093_v28  ;;  %v938_v44 = vpack.c.bf16 %v287_v35, %v286_v34  ;;  %v821_v46 = vunpack.c.h.bf16 %v1093_v28 }
   0xb   :  { %v943_v45 = vpack.c.bf16 %v289_v37, %v288_v36  ;;  %v824_v47 = vunpack.c.l.bf16 %v1094_v33  ;;  %v948_v48 = vpack.c.bf16 %v291_v41, %v290_v40  ;;  %v825_v50 = vunpack.c.h.bf16 %v1094_v33 }
   0xc   :  { %934 = vst [vmem:[%s1505_s3] sm:$0xff] %v933_v39   ;;  %v157_v49 = vmul.f32 %v820_v42, %v1178_v1  ;;  %v828_v51 = vunpack.c.l.bf16 %v1095_v38  ;;  %1121 = vst [vmem:[%s1505_s3 + $0x8] sm:$0xff] %v938_v44   ;;  %v158_v52 = vmul.f32 %v821_v46, %v1178_v1  ;;  %v829_v54 = vunpack.c.h.bf16 %v1095_v38  ;;  %v1101_v38 = vld [vmem:[%s1502_s0 + $0x60] sm:$0xff]  }
   0xd   :  { %1122 = vst [vmem:[%s1505_s3 + $0x10] sm:$0xff] %v943_v45   ;;  %v159_v53 = vmul.f32 %v824_v47, %v1178_v1  ;;  %v832_v55 = vunpack.c.l.bf16 %v1096_v43  ;;  %1123 = vst [vmem:[%s1505_s3 + $0x18] sm:$0xff] %v948_v48   ;;  %v160_v57 = vmul.f32 %v825_v50, %v1178_v1  ;;  %v833_v59 = vunpack.c.h.bf16 %v1096_v43 }
   0xe   :  { %v228_v56 = vadd.f32 %v1192_v7, %v157_v49  ;;  %v161_v58 = vmul.f32 %v828_v51, %v1178_v1  ;;  %v229_v60 = vadd.f32 %v1192_v7, %v158_v52  ;;  %v162_v62 = vmul.f32 %v829_v54, %v1178_v1  ;;  %v1102_v51 = vld [vmem:[%s1502_s0 + $0x68] sm:$0xff]  }
   0xf   :  { %v230_v61 = vadd.f32 %v1192_v7, %v159_v53  ;;  %v163_v63 = vmul.f32 %v832_v55, %v1178_v1  ;;  %v231_v3 = vadd.f32 %v1192_v7, %v160_v57  ;;  %v164_v5 = vmul.f32 %v833_v59, %v1178_v1 }
  0x10   :  { %v292_v2 = vmax.f32 %v228_v56, 0.0  ;;  %v232_v4 = vadd.f32 %v1192_v7, %v161_v58  ;;  %v293_v6 = vmax.f32 %v229_v60, 0.0  ;;  %v233_v9 = vadd.f32 %v1192_v7, %v162_v62  ;;  %v1103_v60 = vld [vmem:[%s1502_s0 + $0x70] sm:$0xff]  }
  0x11   :  { %v294_v8 = vmax.f32 %v230_v61, 0.0  ;;  %v234_v10 = vadd.f32 %v1192_v7, %v163_v63  ;;  %v295_v12 = vmax.f32 %v231_v3, 0.0  ;;  %v235_v14 = vadd.f32 %v1192_v7, %v164_v5 }
  0x12   :  { %v296_v13 = vmax.f32 %v232_v4, 0.0  ;;  %v836_v15 = vunpack.c.l.bf16 %v1097_v0  ;;  %v953_v17 = vpack.c.bf16 %v293_v6, %v292_v2  ;;  %v297_v18 = vmax.f32 %v233_v9, 0.0  ;;  %v1104_v2 = vld [vmem:[%s1502_s0 + $0x78] sm:$0xff]  }
  0x13   :  { %v298_v19 = vmax.f32 %v234_v10, 0.0  ;;  %v837_v20 = vunpack.c.h.bf16 %v1097_v0  ;;  %v958_v21 = vpack.c.bf16 %v295_v12, %v294_v8  ;;  %v299_v22 = vmax.f32 %v235_v14, 0.0  ;;  %v1105_v12 = vld [vmem:[%s1502_s0 + $0x80] sm:$0xff]  }
  0x14   :  { %v165_v23 = vmul.f32 %v836_v15, %v1178_v1  ;;  %v840_v24 = vunpack.c.l.bf16 %v1098_v11  ;;  %1124 = vst [vmem:[%s1505_s3 + $0x20] sm:$0xff] %v953_v17   ;;  %v963_v26 = vpack.c.bf16 %v297_v18, %v296_v13  ;;  %v841_v28 = vunpack.c.h.bf16 %v1098_v11 }
  0x15   :  { %v166_v27 = vmul.f32 %v837_v20, %v1178_v1  ;;  %v844_v29 = vunpack.c.l.bf16 %v1099_v16  ;;  %1125 = vst [vmem:[%s1505_s3 + $0x28] sm:$0xff] %v958_v21   ;;  %v968_v30 = vpack.c.bf16 %v299_v22, %v298_v19  ;;  %v845_v33 = vunpack.c.h.bf16 %v1099_v16 }
  0x16   :  { %v236_v31 = vadd.f32 %v1192_v7, %v165_v23  ;;  %v167_v32 = vmul.f32 %v840_v24, %v1178_v1  ;;  %1126 = vst [vmem:[%s1505_s3 + $0x30] sm:$0xff] %v963_v26   ;;  %v168_v35 = vmul.f32 %v841_v28, %v1178_v1  ;;  %v848_v37 = vunpack.c.l.bf16 %v1100_v25 }
  0x17   :  { %v237_v34 = vadd.f32 %v1192_v7, %v166_v27  ;;  %v169_v36 = vmul.f32 %v844_v29, %v1178_v1  ;;  %1127 = vst [vmem:[%s1505_s3 + $0x38] sm:$0xff] %v968_v30   ;;  %v170_v41 = vmul.f32 %v845_v33, %v1178_v1  ;;  %v849_v42 = vunpack.c.h.bf16 %v1100_v25  ;;  %v1106_v29 = vld [vmem:[%s1502_s0 + $0x88] sm:$0xff]  }
  0x18   :  { %v300_v39 = vmax.f32 %v236_v31, 0.0  ;;  %v238_v40 = vadd.f32 %v1192_v7, %v167_v32  ;;  %v239_v44 = vadd.f32 %v1192_v7, %v168_v35  ;;  %v171_v46 = vmul.f32 %v848_v37, %v1178_v1 }
  0x19   :  { %v301_v43 = vmax.f32 %v237_v34, 0.0  ;;  %v240_v45 = vadd.f32 %v1192_v7, %v169_v36  ;;  %v241_v48 = vadd.f32 %v1192_v7, %v170_v41  ;;  %v172_v49 = vmul.f32 %v849_v42, %v1178_v1  ;;  %v1107_v34 = vld [vmem:[%s1502_s0 + $0x90] sm:$0xff]  }
  0x1a   :  { %v302_v47 = vmax.f32 %v238_v40, 0.0  ;;  %v852_v50 = vunpack.c.l.bf16 %v1101_v38  ;;  %v303_v53 = vmax.f32 %v239_v44, 0.0  ;;  %v242_v55 = vadd.f32 %v1192_v7, %v171_v46 }
  0x1b   :  { %v973_v52 = vpack.c.bf16 %v301_v43, %v300_v39  ;;  %v304_v54 = vmax.f32 %v240_v45, 0.0  ;;  %v305_v56 = vmax.f32 %v241_v48, 0.0  ;;  %v243_v57 = vadd.f32 %v1192_v7, %v172_v49  ;;  %v1108_v43 = vld [vmem:[%s1502_s0 + $0x98] sm:$0xff]  }
  0x1c   :  { %v853_v58 = vunpack.c.h.bf16 %v1101_v38  ;;  %v173_v59 = vmul.f32 %v852_v50, %v1178_v1  ;;  %v978_v61 = vpack.c.bf16 %v303_v53, %v302_v47  ;;  %v306_v62 = vmax.f32 %v242_v55, 0.0 }
  0x1d   :  { %1128 = vst [vmem:[%s1505_s3 + $0x40] sm:$0xff] %v973_v52   ;;  %v856_v63 = vunpack.c.l.bf16 %v1102_v51  ;;  %v857_v0 = vunpack.c.h.bf16 %v1102_v51  ;;  %v983_v3 = vpack.c.bf16 %v305_v56, %v304_v54  ;;  %v307_v4 = vmax.f32 %v243_v57, 0.0  ;;  %v1109_v56 = vld [vmem:[%s1502_s0 + $0xa0] sm:$0xff]  }
  0x1e   :  { %v174_v5 = vmul.f32 %v853_v58, %v1178_v1  ;;  %v244_v6 = vadd.f32 %v1192_v7, %v173_v59  ;;  %1129 = vst [vmem:[%s1505_s3 + $0x48] sm:$0xff] %v978_v61   ;;  %v860_v10 = vunpack.c.l.bf16 %v1103_v60  ;;  %v861_v11 = vunpack.c.h.bf16 %v1103_v60 }
  0x1f   :  { %v175_v8 = vmul.f32 %v856_v63, %v1178_v1  ;;  %v176_v9 = vmul.f32 %v857_v0, %v1178_v1  ;;  %1130 = vst [vmem:[%s1505_s3 + $0x50] sm:$0xff] %v983_v3   ;;  %v988_v13 = vpack.c.bf16 %v307_v4, %v306_v62  ;;  %v864_v16 = vunpack.c.l.bf16 %v1104_v2 }
  0x20   :  { %v245_v14 = vadd.f32 %v1192_v7, %v174_v5  ;;  %v308_v15 = vmax.f32 %v244_v6, 0.0  ;;  %v177_v19 = vmul.f32 %v860_v10, %v1178_v1  ;;  %v178_v20 = vmul.f32 %v861_v11, %v1178_v1 }
  0x21   :  { %v246_v17 = vadd.f32 %v1192_v7, %v175_v8  ;;  %v247_v18 = vadd.f32 %v1192_v7, %v176_v9  ;;  %1131 = vst [vmem:[%s1505_s3 + $0x58] sm:$0xff] %v988_v13   ;;  %v865_v22 = vunpack.c.h.bf16 %v1104_v2  ;;  %v179_v23 = vmul.f32 %v864_v16, %v1178_v1  ;;  %v1110_v2 = vld [vmem:[%s1502_s0 + $0xa8] sm:$0xff]   ;;  %v1111_v16 = vld [vmem:[%s1502_s0 + $0xb0] sm:$0xff]  }
  0x22   :  { %v309_v21 = vmax.f32 %v245_v14, 0.0  ;;  %v868_v24 = vunpack.c.l.bf16 %v1105_v12  ;;  %v248_v27 = vadd.f32 %v1192_v7, %v177_v19  ;;  %v249_v28 = vadd.f32 %v1192_v7, %v178_v20 }
  0x23   :  { %v310_v25 = vmax.f32 %v246_v17, 0.0  ;;  %v311_v26 = vmax.f32 %v247_v18, 0.0  ;;  %v180_v31 = vmul.f32 %v865_v22, %v1178_v1  ;;  %v250_v32 = vadd.f32 %v1192_v7, %v179_v23 }
  0x24   :  { %v993_v30 = vpack.c.bf16 %v309_v21, %v308_v15  ;;  %v869_v33 = vunpack.c.h.bf16 %v1105_v12  ;;  %v312_v36 = vmax.f32 %v248_v27, 0.0  ;;  %v313_v37 = vmax.f32 %v249_v28, 0.0  ;;  %v1112_v21 = vld [vmem:[%s1502_s0 + $0xb8] sm:$0xff]  }
  0x25   :  { %v998_v35 = vpack.c.bf16 %v311_v26, %v310_v25  ;;  %v181_v38 = vmul.f32 %v868_v24, %v1178_v1  ;;  %v251_v39 = vadd.f32 %v1192_v7, %v180_v31  ;;  %v314_v40 = vmax.f32 %v250_v32, 0.0 }
  0x26   :  { %1132 = vst [vmem:[%s1505_s3 + $0x60] sm:$0xff] %v993_v30   ;;  %v182_v41 = vmul.f32 %v869_v33, %v1178_v1  ;;  %v872_v42 = vunpack.c.l.bf16 %v1106_v29  ;;  %v1003_v44 = vpack.c.bf16 %v313_v37, %v312_v36  ;;  %v873_v46 = vunpack.c.h.bf16 %v1106_v29 }
  0x27   :  { %1133 = vst [vmem:[%s1505_s3 + $0x68] sm:$0xff] %v998_v35   ;;  %v252_v45 = vadd.f32 %v1192_v7, %v181_v38  ;;  %v876_v47 = vunpack.c.l.bf16 %v1107_v34  ;;  %v315_v48 = vmax.f32 %v251_v39, 0.0  ;;  %v877_v51 = vunpack.c.h.bf16 %v1107_v34  ;;  %v1113_v34 = vld [vmem:[%s1502_s0 + $0xc0] sm:$0xff]  }
  0x28   :  { %v253_v49 = vadd.f32 %v1192_v7, %v182_v41  ;;  %v183_v50 = vmul.f32 %v872_v42, %v1178_v1  ;;  %1134 = vst [vmem:[%s1505_s3 + $0x70] sm:$0xff] %v1003_v44   ;;  %v184_v53 = vmul.f32 %v873_v46, %v1178_v1  ;;  %v880_v55 = vunpack.c.l.bf16 %v1108_v43 }
  0x29   :  { %v316_v52 = vmax.f32 %v252_v45, 0.0  ;;  %v185_v54 = vmul.f32 %v876_v47, %v1178_v1  ;;  %v1008_v57 = vpack.c.bf16 %v315_v48, %v314_v40  ;;  %v186_v60 = vmul.f32 %v877_v51, %v1178_v1  ;;  %v1114_v47 = vld [vmem:[%s1502_s0 + $0xc8] sm:$0xff]  }
  0x2a   :  { %v317_v58 = vmax.f32 %v253_v49, 0.0  ;;  %v254_v59 = vadd.f32 %v1192_v7, %v183_v50  ;;  %v255_v61 = vadd.f32 %v1192_v7, %v184_v53  ;;  %v881_v63 = vunpack.c.h.bf16 %v1108_v43 }
  0x2b   :  { %v256_v62 = vadd.f32 %v1192_v7, %v185_v54  ;;  %v187_v0 = vmul.f32 %v880_v55, %v1178_v1  ;;  %1135 = vst [vmem:[%s1505_s3 + $0x78] sm:$0xff] %v1008_v57   ;;  %v257_v5 = vadd.f32 %v1192_v7, %v186_v60  ;;  %v884_v6 = vunpack.c.l.bf16 %v1109_v56 }
  0x2c   :  { %v1013_v3 = vpack.c.bf16 %v317_v58, %v316_v52  ;;  %v318_v4 = vmax.f32 %v254_v59, 0.0  ;;  %v319_v8 = vmax.f32 %v255_v61, 0.0  ;;  %v188_v10 = vmul.f32 %v881_v63, %v1178_v1  ;;  %v1115_v52 = vld [vmem:[%s1502_s0 + $0xd0] sm:$0xff]   ;;  %v1116_v61 = vld [vmem:[%s1502_s0 + $0xd8] sm:$0xff]  }
  0x2d   :  { %v320_v9 = vmax.f32 %v256_v62, 0.0  ;;  %v258_v11 = vadd.f32 %v1192_v7, %v187_v0  ;;  %v321_v12 = vmax.f32 %v257_v5, 0.0  ;;  %v885_v13 = vunpack.c.h.bf16 %v1109_v56 }
  0x2e   :  { %1136 = vst [vmem:[%s1505_s3 + $0x80] sm:$0xff] %v1013_v3   ;;  %v189_v14 = vmul.f32 %v884_v6, %v1178_v1  ;;  %v888_v15 = vunpack.c.l.bf16 %v1110_v2  ;;  %v1018_v17 = vpack.c.bf16 %v319_v8, %v318_v4  ;;  %v259_v18 = vadd.f32 %v1192_v7, %v188_v10 }
  0x2f   :  { %v322_v19 = vmax.f32 %v258_v11, 0.0  ;;  %v889_v20 = vunpack.c.h.bf16 %v1110_v2  ;;  %v1023_v22 = vpack.c.bf16 %v321_v12, %v320_v9  ;;  %v190_v23 = vmul.f32 %v885_v13, %v1178_v1  ;;  %v1117_v12 = vld [vmem:[%s1502_s0 + $0xe0] sm:$0xff]  }
  0x30   :  { %v260_v24 = vadd.f32 %v1192_v7, %v189_v14  ;;  %v191_v25 = vmul.f32 %v888_v15, %v1178_v1  ;;  %1137 = vst [vmem:[%s1505_s3 + $0x88] sm:$0xff] %v1018_v17   ;;  %v323_v26 = vmax.f32 %v259_v18, 0.0  ;;  %v892_v28 = vunpack.c.l.bf16 %v1111_v16 }
  0x31   :  { %v192_v27 = vmul.f32 %v889_v20, %v1178_v1  ;;  %v893_v29 = vunpack.c.h.bf16 %v1111_v16  ;;  %1138 = vst [vmem:[%s1505_s3 + $0x90] sm:$0xff] %v1023_v22   ;;  %v261_v30 = vadd.f32 %v1192_v7, %v190_v23  ;;  %v896_v33 = vunpack.c.l.bf16 %v1112_v21 }
  0x32   :  { %v324_v31 = vmax.f32 %v260_v24, 0.0  ;;  %v262_v32 = vadd.f32 %v1192_v7, %v191_v25  ;;  %v1028_v35 = vpack.c.bf16 %v323_v26, %v322_v19  ;;  %v193_v37 = vmul.f32 %v892_v28, %v1178_v1 }
  0x33   :  { %v263_v36 = vadd.f32 %v1192_v7, %v192_v27  ;;  %v194_v38 = vmul.f32 %v893_v29, %v1178_v1  ;;  %v325_v39 = vmax.f32 %v261_v30, 0.0  ;;  %v897_v41 = vunpack.c.h.bf16 %v1112_v21  ;;  %v1118_v21 = vld [vmem:[%s1502_s0 + $0xe8] sm:$0xff]  }
  0x34   :  { %v326_v40 = vmax.f32 %v262_v32, 0.0  ;;  %v195_v42 = vmul.f32 %v896_v33, %v1178_v1  ;;  %1139 = vst [vmem:[%s1505_s3 + $0x98] sm:$0xff] %v1028_v35   ;;  %v264_v44 = vadd.f32 %v1192_v7, %v193_v37  ;;  %v900_v46 = vunpack.c.l.bf16 %v1113_v34 }
  0x35   :  { %v327_v43 = vmax.f32 %v263_v36, 0.0  ;;  %v265_v45 = vadd.f32 %v1192_v7, %v194_v38  ;;  %v1033_v48 = vpack.c.bf16 %v325_v39, %v324_v31  ;;  %v196_v49 = vmul.f32 %v897_v41, %v1178_v1  ;;  %v1120_v39 = vld [vmem:[%s1502_s0 + $0xf8] sm:$0xff]  }
  0x36   :  { %v266_v50 = vadd.f32 %v1192_v7, %v195_v42  ;;  %v901_v51 = vunpack.c.h.bf16 %v1113_v34  ;;  %v328_v54 = vmax.f32 %v264_v44, 0.0  ;;  %v197_v56 = vmul.f32 %v900_v46, %v1178_v1  ;;  %v1119_v34 = vld [vmem:[%s1502_s0 + $0xf0] sm:$0xff]  }
  0x37   :  { %v1038_v53 = vpack.c.bf16 %v327_v43, %v326_v40  ;;  %v329_v55 = vmax.f32 %v265_v45, 0.0  ;;  %1140 = vst [vmem:[%s1505_s3 + $0xa0] sm:$0xff] %v1033_v48   ;;  %v267_v57 = vadd.f32 %v1192_v7, %v196_v49  ;;  %v904_v60 = vunpack.c.l.bf16 %v1114_v47 }
  0x38   :  { %v330_v58 = vmax.f32 %v266_v50, 0.0  ;;  %v198_v59 = vmul.f32 %v901_v51, %v1178_v1  ;;  %v268_v63 = vadd.f32 %v1192_v7, %v197_v56  ;;  %v905_v0 = vunpack.c.h.bf16 %v1114_v47 }
  0x39   :  { %1141 = vst [vmem:[%s1505_s3 + $0xa8] sm:$0xff] %v1038_v53   ;;  %v1043_v62 = vpack.c.bf16 %v329_v55, %v328_v54  ;;  %v908_v2 = vunpack.c.l.bf16 %v1115_v52  ;;  %v331_v3 = vmax.f32 %v267_v57, 0.0  ;;  %v199_v5 = vmul.f32 %v904_v60, %v1178_v1 }
  0x3a   :  { %v269_v4 = vadd.f32 %v1192_v7, %v198_v59  ;;  %v909_v6 = vunpack.c.h.bf16 %v1115_v52  ;;  %v332_v8 = vmax.f32 %v268_v63, 0.0  ;;  %v200_v9 = vmul.f32 %v905_v0, %v1178_v1 }
  0x3b   :  { %1142 = vst [vmem:[%s1505_s3 + $0xb0] sm:$0xff] %v1043_v62   ;;  %v201_v10 = vmul.f32 %v908_v2, %v1178_v1  ;;  %v912_v11 = vunpack.c.l.bf16 %v1116_v61  ;;  %v1048_v13 = vpack.c.bf16 %v331_v3, %v330_v58  ;;  %v270_v15 = vadd.f32 %v1192_v7, %v199_v5 }
  0x3c   :  { %v333_v14 = vmax.f32 %v269_v4, 0.0  ;;  %v202_v16 = vmul.f32 %v909_v6, %v1178_v1  ;;  %v271_v17 = vadd.f32 %v1192_v7, %v200_v9  ;;  %v913_v19 = vunpack.c.h.bf16 %v1116_v61 }
  0x3d   :  { %v272_v18 = vadd.f32 %v1192_v7, %v201_v10  ;;  %v203_v20 = vmul.f32 %v912_v11, %v1178_v1  ;;  %1143 = vst [vmem:[%s1505_s3 + $0xb8] sm:$0xff] %v1048_v13   ;;  %v334_v23 = vmax.f32 %v270_v15, 0.0  ;;  %v916_v25 = vunpack.c.l.bf16 %v1117_v12 }
  0x3e   :  { %v1053_v22 = vpack.c.bf16 %v333_v14, %v332_v8  ;;  %v273_v24 = vadd.f32 %v1192_v7, %v202_v16  ;;  %v335_v26 = vmax.f32 %v271_v17, 0.0  ;;  %v204_v28 = vmul.f32 %v913_v19, %v1178_v1 }
  0x3f   :  { %v336_v27 = vmax.f32 %v272_v18, 0.0  ;;  %v274_v29 = vadd.f32 %v1192_v7, %v203_v20  ;;  %v917_v31 = vunpack.c.h.bf16 %v1117_v12  ;;  %v205_v32 = vmul.f32 %v916_v25, %v1178_v1 }
  0x40   :  { %1144 = vst [vmem:[%s1505_s3 + $0xc0] sm:$0xff] %v1053_v22   ;;  %v337_v30 = vmax.f32 %v273_v24, 0.0  ;;  %v920_v33 = vunpack.c.l.bf16 %v1118_v21  ;;  %v1058_v35 = vpack.c.bf16 %v335_v26, %v334_v23  ;;  %v275_v36 = vadd.f32 %v1192_v7, %v204_v28 }
  0x41   :  { %v338_v37 = vmax.f32 %v274_v29, 0.0  ;;  %v921_v38 = vunpack.c.h.bf16 %v1118_v21  ;;  %v206_v41 = vmul.f32 %v917_v31, %v1178_v1  ;;  %v276_v42 = vadd.f32 %v1192_v7, %v205_v32 }
  0x42   :  { %v1063_v40 = vpack.c.bf16 %v337_v30, %v336_v27  ;;  %v207_v43 = vmul.f32 %v920_v33, %v1178_v1  ;;  %1145 = vst [vmem:[%s1505_s3 + $0xc8] sm:$0xff] %v1058_v35   ;;  %v339_v44 = vmax.f32 %v275_v36, 0.0  ;;  %v924_v46 = vunpack.c.l.bf16 %v1119_v34 }
  0x43   :  { %v208_v45 = vmul.f32 %v921_v38, %v1178_v1  ;;  %v925_v47 = vunpack.c.h.bf16 %v1119_v34  ;;  %v277_v48 = vadd.f32 %v1192_v7, %v206_v41  ;;  %v340_v49 = vmax.f32 %v276_v42, 0.0 }
  0x44   :  { %1146 = vst [vmem:[%s1505_s3 + $0xd0] sm:$0xff] %v1063_v40   ;;  %v278_v50 = vadd.f32 %v1192_v7, %v207_v43  ;;  %v928_v51 = vunpack.c.l.bf16 %v1120_v39  ;;  %v1068_v52 = vpack.c.bf16 %v339_v44, %v338_v37  ;;  %v209_v54 = vmul.f32 %v924_v46, %v1178_v1 }
  0x45   :  { %v279_v53 = vadd.f32 %v1192_v7, %v208_v45  ;;  %v210_v55 = vmul.f32 %v925_v47, %v1178_v1  ;;  %v341_v56 = vmax.f32 %v277_v48, 0.0  ;;  %v929_v58 = vunpack.c.h.bf16 %v1120_v39 }
  0x46   :  { %v342_v57 = vmax.f32 %v278_v50, 0.0  ;;  %v211_v59 = vmul.f32 %v928_v51, %v1178_v1  ;;  %1147 = vst [vmem:[%s1505_s3 + $0xd8] sm:$0xff] %v1068_v52   ;;  %v280_v61 = vadd.f32 %v1192_v7, %v209_v54 }
  0x47   :  { %v343_v60 = vmax.f32 %v279_v53, 0.0  ;;  %v281_v62 = vadd.f32 %v1192_v7, %v210_v55  ;;  %v1073_v63 = vpack.c.bf16 %v341_v56, %v340_v49  ;;  %v212_v0 = vmul.f32 %v929_v58, %v1178_v1 }
  0x48   :  { %v282_v2 = vadd.f32 %v1192_v7, %v211_v59  ;;  %v344_v4 = vmax.f32 %v280_v61, 0.0 }
  0x49   :  { %v1078_v3 = vpack.c.bf16 %v343_v60, %v342_v57  ;;  %v345_v5 = vmax.f32 %v281_v62, 0.0  ;;  %1148 = vst [vmem:[%s1505_s3 + $0xe0] sm:$0xff] %v1073_v63   ;;  %v283_v6 = vadd.f32 %v1192_v7, %v212_v0 }
  0x4a   :  { %v346_v8 = vmax.f32 %v282_v2, 0.0 }
  0x4b   :  { %1149 = vst [vmem:[%s1505_s3 + $0xe8] sm:$0xff] %v1078_v3   ;;  %v1083_v9 = vpack.c.bf16 %v345_v5, %v344_v4  ;;  %v347_v10 = vmax.f32 %v283_v6, 0.0 }
  0x4d   :  { %1150 = vst [vmem:[%s1505_s3 + $0xf0] sm:$0xff] %v1083_v9   ;;  %v1088_v1 = vpack.c.bf16 %v347_v10, %v346_v8 }
  0x4f   :  { %1151 = vst [vmem:[%s1505_s3 + $0xf8] sm:$0xff] %v1088_v1  }

// kernel: unet_conv2d.7
= control target key start
LH: loop header
LB: loop body
LE: loop exit
PB: predicated region body
PF: predicated region fallthrough
CT: control target
= control target key end

     0   :  { %s1023_s0 = inlined_call_operand.vmem [shape: bf16[512,128], index: 0, kind: input, shape index: {}]   ;;  %s1024_s1 = inlined_call_operand.vmem [shape: f32[1,128], index: 1, kind: input, shape index: {}]   ;;  %s1025_s2 = inlined_call_operand.vmem [shape: f32[1,128], index: 2, kind: input, shape index: {}]   ;;  %s1026_s3 = inlined_call_operand.vmem [shape: f32[512,128], index: 3, kind: output, shape index: {}]  }
   0x1   :  { %v419_v0 = vld [vmem:[%s1023_s0] sm:$0xff]   ;;  %v546_v4 = vld [vmem:[%s1023_s0 + $0x8] sm:$0xff]   ;;  %v547_v5 = vld [vmem:[%s1023_s0 + $0x10] sm:$0xff]  }
   0x2   :  { %v603_v1 = vld [vmem:[%s1024_s1] ss:$0 sm:$0xff]  ;;  %v420_v2 = vunpack.c.l.bf16 %v419_v0  ;;  %v421_v3 = vunpack.c.h.bf16 %v419_v0  ;;  %v548_v6 = vld [vmem:[%s1023_s0 + $0x18] sm:$0xff]   ;;  %v424_v8 = vunpack.c.l.bf16 %v546_v4  ;;  %v425_v9 = vunpack.c.h.bf16 %v546_v4  ;;  %v550_v33 = vld [vmem:[%s1023_s0 + $0x28] sm:$0xff]  }
   0x3   :  { %v617_v7 = vld [vmem:[%s1025_s2] ss:$0 sm:$0xff]  ;;  %v428_v10 = vunpack.c.l.bf16 %v547_v5  ;;  %v429_v11 = vunpack.c.h.bf16 %v547_v5  ;;  %v432_v14 = vunpack.c.l.bf16 %v548_v6  ;;  %v433_v15 = vunpack.c.h.bf16 %v548_v6  ;;  %v551_v34 = vld [vmem:[%s1023_s0 + $0x30] sm:$0xff]   ;;  %v552_v39 = vld [vmem:[%s1023_s0 + $0x38] sm:$0xff]  }
   0x4   :  { %v149_v12 = vmul.f32 %v420_v2, %v603_v1  ;;  %v150_v13 = vmul.f32 %v421_v3, %v603_v1  ;;  %v151_v16 = vmul.f32 %v424_v8, %v603_v1  ;;  %v152_v17 = vmul.f32 %v425_v9, %v603_v1  ;;  %v549_v28 = vld [vmem:[%s1023_s0 + $0x20] sm:$0xff]   ;;  %v554_v6 = vld [vmem:[%s1023_s0 + $0x48] sm:$0xff]   ;;  %v555_v8 = vld [vmem:[%s1023_s0 + $0x50] sm:$0xff]  }
   0x5   :  { %v153_v18 = vmul.f32 %v428_v10, %v603_v1  ;;  %v154_v19 = vmul.f32 %v429_v11, %v603_v1  ;;  %v155_v22 = vmul.f32 %v432_v14, %v603_v1  ;;  %v156_v23 = vmul.f32 %v433_v15, %v603_v1  ;;  %v553_v0 = vld [vmem:[%s1023_s0 + $0x40] sm:$0xff]  }
   0x6   :  { %v220_v20 = vadd.f32 %v617_v7, %v149_v12  ;;  %v221_v21 = vadd.f32 %v617_v7, %v150_v13  ;;  %v222_v24 = vadd.f32 %v617_v7, %v151_v16  ;;  %v223_v25 = vadd.f32 %v617_v7, %v152_v17  ;;  %v556_v13 = vld [vmem:[%s1023_s0 + $0x58] sm:$0xff]  }
   0x7   :  { %v224_v26 = vadd.f32 %v617_v7, %v153_v18  ;;  %v225_v27 = vadd.f32 %v617_v7, %v154_v19  ;;  %v226_v31 = vadd.f32 %v617_v7, %v155_v22  ;;  %v227_v32 = vadd.f32 %v617_v7, %v156_v23 }
   0x8   :  { %v284_v29 = vmax.f32 %v220_v20, 0.0  ;;  %v285_v30 = vmax.f32 %v221_v21, 0.0  ;;  %v286_v35 = vmax.f32 %v222_v24, 0.0  ;;  %v287_v36 = vmax.f32 %v223_v25, 0.0 }
   0x9   :  { %v288_v37 = vmax.f32 %v224_v26, 0.0  ;;  %v289_v38 = vmax.f32 %v225_v27, 0.0  ;;  %v290_v40 = vmax.f32 %v226_v31, 0.0  ;;  %v291_v41 = vmax.f32 %v227_v32, 0.0 }
   0xa   :  { %348 = vst [vmem:[%s1026_s3] sm:$0xff] %v284_v29  ;;  %349 = vst [vmem:[%s1026_s3 + $0x8] sm:$0xff] %v285_v30  ;;  %v436_v42 = vunpack.c.l.bf16 %v549_v28  ;;  %v437_v43 = vunpack.c.h.bf16 %v549_v28  ;;  %v440_v44 = vunpack.c.l.bf16 %v550_v33  ;;  %v441_v45 = vunpack.c.h.bf16 %v550_v33 }
   0xb   :  { %350 = vst [vmem:[%s1026_s3 + $0x10] sm:$0xff] %v286_v35  ;;  %351 = vst [vmem:[%s1026_s3 + $0x18] sm:$0xff] %v287_v36  ;;  %v444_v46 = vunpack.c.l.bf16 %v551_v34  ;;  %v445_v47 = vunpack.c.h.bf16 %v551_v34  ;;  %v448_v50 = vunpack.c.l.bf16 %v552_v39  ;;  %v449_v51 = vunpack.c.h.bf16 %v552_v39 }
   0xc   :  { %352 = vst [vmem:[%s1026_s3 + $0x20] sm:$0xff] %v288_v37  ;;  %353 = vst [vmem:[%s1026_s3 + $0x28] sm:$0xff] %v289_v38  ;;  %v157_v48 = vmul.f32 %v436_v42, %v603_v1  ;;  %v158_v49 = vmul.f32 %v437_v43, %v603_v1  ;;  %v159_v52 = vmul.f32 %v440_v44, %v603_v1  ;;  %v452_v16 = vunpack.c.l.bf16 %v553_v0  ;;  %v557_v38 = vld [vmem:[%s1023_s0 + $0x60] sm:$0xff]   ;;  %v558_v43 = vld [vmem:[%s1023_s0 + $0x68] sm:$0xff]  }
   0xd   :  { %354 = vst [vmem:[%s1026_s3 + $0x30] sm:$0xff] %v290_v40  ;;  %355 = vst [vmem:[%s1026_s3 + $0x38] sm:$0xff] %v291_v41  ;;  %v160_v53 = vmul.f32 %v441_v45, %v603_v1  ;;  %v161_v54 = vmul.f32 %v444_v46, %v603_v1  ;;  %v162_v55 = vmul.f32 %v445_v47, %v603_v1  ;;  %v453_v17 = vunpack.c.h.bf16 %v553_v0  ;;  %v559_v44 = vld [vmem:[%s1023_s0 + $0x70] sm:$0xff]  }
   0xe   :  { %v228_v56 = vadd.f32 %v617_v7, %v157_v48  ;;  %v229_v57 = vadd.f32 %v617_v7, %v158_v49  ;;  %v163_v58 = vmul.f32 %v448_v50, %v603_v1  ;;  %v164_v59 = vmul.f32 %v449_v51, %v603_v1  ;;  %v560_v49 = vld [vmem:[%s1023_s0 + $0x78] sm:$0xff]  }
   0xf   :  { %v230_v60 = vadd.f32 %v617_v7, %v159_v52  ;;  %v231_v61 = vadd.f32 %v617_v7, %v160_v53  ;;  %v232_v62 = vadd.f32 %v617_v7, %v161_v54  ;;  %v233_v63 = vadd.f32 %v617_v7, %v162_v55 }
  0x10   :  { %v292_v2 = vmax.f32 %v228_v56, 0.0  ;;  %v293_v3 = vmax.f32 %v229_v57, 0.0  ;;  %v234_v4 = vadd.f32 %v617_v7, %v163_v58  ;;  %v235_v5 = vadd.f32 %v617_v7, %v164_v59 }
  0x11   :  { %v294_v9 = vmax.f32 %v230_v60, 0.0  ;;  %v295_v10 = vmax.f32 %v231_v61, 0.0  ;;  %v296_v11 = vmax.f32 %v232_v62, 0.0  ;;  %v297_v12 = vmax.f32 %v233_v63, 0.0 }
  0x12   :  { %356 = vst [vmem:[%s1026_s3 + $0x40] sm:$0xff] %v292_v2  ;;  %357 = vst [vmem:[%s1026_s3 + $0x48] sm:$0xff] %v293_v3  ;;  %v298_v14 = vmax.f32 %v234_v4, 0.0  ;;  %v299_v15 = vmax.f32 %v235_v5, 0.0  ;;  %v456_v18 = vunpack.c.l.bf16 %v554_v6  ;;  %v457_v19 = vunpack.c.h.bf16 %v554_v6 }
  0x13   :  { %358 = vst [vmem:[%s1026_s3 + $0x50] sm:$0xff] %v294_v9  ;;  %359 = vst [vmem:[%s1026_s3 + $0x58] sm:$0xff] %v295_v10  ;;  %v460_v20 = vunpack.c.l.bf16 %v555_v8  ;;  %v461_v21 = vunpack.c.h.bf16 %v555_v8  ;;  %v165_v22 = vmul.f32 %v452_v16, %v603_v1  ;;  %v166_v23 = vmul.f32 %v453_v17, %v603_v1  ;;  %v562_v17 = vld [vmem:[%s1023_s0 + $0x88] sm:$0xff]  }
  0x14   :  { %360 = vst [vmem:[%s1026_s3 + $0x60] sm:$0xff] %v296_v11  ;;  %361 = vst [vmem:[%s1026_s3 + $0x68] sm:$0xff] %v297_v12  ;;  %v464_v24 = vunpack.c.l.bf16 %v556_v13  ;;  %v465_v25 = vunpack.c.h.bf16 %v556_v13  ;;  %v167_v26 = vmul.f32 %v456_v18, %v603_v1  ;;  %v168_v27 = vmul.f32 %v457_v19, %v603_v1  ;;  %v561_v12 = vld [vmem:[%s1023_s0 + $0x80] sm:$0xff]   ;;  %v563_v18 = vld [vmem:[%s1023_s0 + $0x90] sm:$0xff]  }
  0x15   :  { %362 = vst [vmem:[%s1026_s3 + $0x70] sm:$0xff] %v298_v14  ;;  %363 = vst [vmem:[%s1026_s3 + $0x78] sm:$0xff] %v299_v15  ;;  %v169_v28 = vmul.f32 %v460_v20, %v603_v1  ;;  %v170_v29 = vmul.f32 %v461_v21, %v603_v1  ;;  %v236_v30 = vadd.f32 %v617_v7, %v165_v22  ;;  %v468_v52 = vunpack.c.l.bf16 %v557_v38 }
  0x16   :  { %v237_v31 = vadd.f32 %v617_v7, %v166_v23  ;;  %v171_v32 = vmul.f32 %v464_v24, %v603_v1  ;;  %v172_v33 = vmul.f32 %v465_v25, %v603_v1  ;;  %v238_v34 = vadd.f32 %v617_v7, %v167_v26  ;;  %v564_v23 = vld [vmem:[%s1023_s0 + $0x98] sm:$0xff]  }
  0x17   :  { %v239_v35 = vadd.f32 %v617_v7, %v168_v27  ;;  %v240_v36 = vadd.f32 %v617_v7, %v169_v28  ;;  %v241_v37 = vadd.f32 %v617_v7, %v170_v29  ;;  %v300_v39 = vmax.f32 %v236_v30, 0.0 }
  0x18   :  { %v301_v40 = vmax.f32 %v237_v31, 0.0  ;;  %v242_v41 = vadd.f32 %v617_v7, %v171_v32  ;;  %v243_v42 = vadd.f32 %v617_v7, %v172_v33  ;;  %v302_v45 = vmax.f32 %v238_v34, 0.0 }
  0x19   :  { %v303_v46 = vmax.f32 %v239_v35, 0.0  ;;  %v304_v47 = vmax.f32 %v240_v36, 0.0  ;;  %v305_v48 = vmax.f32 %v241_v37, 0.0  ;;  %364 = vst [vmem:[%s1026_s3 + $0x80] sm:$0xff] %v300_v39  ;;  %v469_v53 = vunpack.c.h.bf16 %v557_v38 }
  0x1a   :  { %365 = vst [vmem:[%s1026_s3 + $0x88] sm:$0xff] %v301_v40  ;;  %v306_v50 = vmax.f32 %v242_v41, 0.0  ;;  %v307_v51 = vmax.f32 %v243_v42, 0.0  ;;  %366 = vst [vmem:[%s1026_s3 + $0x90] sm:$0xff] %v302_v45  ;;  %v472_v54 = vunpack.c.l.bf16 %v558_v43  ;;  %v473_v55 = vunpack.c.h.bf16 %v558_v43 }
  0x1b   :  { %367 = vst [vmem:[%s1026_s3 + $0x98] sm:$0xff] %v303_v46  ;;  %368 = vst [vmem:[%s1026_s3 + $0xa0] sm:$0xff] %v304_v47  ;;  %v476_v56 = vunpack.c.l.bf16 %v559_v44  ;;  %v477_v57 = vunpack.c.h.bf16 %v559_v44  ;;  %v173_v58 = vmul.f32 %v468_v52, %v603_v1  ;;  %v174_v59 = vmul.f32 %v469_v53, %v603_v1  ;;  %v566_v53 = vld [vmem:[%s1023_s0 + $0xa8] sm:$0xff]  }
  0x1c   :  { %369 = vst [vmem:[%s1026_s3 + $0xa8] sm:$0xff] %v305_v48  ;;  %370 = vst [vmem:[%s1026_s3 + $0xb0] sm:$0xff] %v306_v50  ;;  %v480_v60 = vunpack.c.l.bf16 %v560_v49  ;;  %v481_v61 = vunpack.c.h.bf16 %v560_v49  ;;  %v175_v62 = vmul.f32 %v472_v54, %v603_v1  ;;  %v176_v63 = vmul.f32 %v473_v55, %v603_v1  ;;  %v565_v48 = vld [vmem:[%s1023_s0 + $0xa0] sm:$0xff]   ;;  %v567_v54 = vld [vmem:[%s1023_s0 + $0xb0] sm:$0xff]  }
  0x1d   :  { %371 = vst [vmem:[%s1026_s3 + $0xb8] sm:$0xff] %v307_v51  ;;  %v177_v0 = vmul.f32 %v476_v56, %v603_v1  ;;  %v178_v2 = vmul.f32 %v477_v57, %v603_v1  ;;  %v244_v3 = vadd.f32 %v617_v7, %v173_v58  ;;  %v245_v4 = vadd.f32 %v617_v7, %v174_v59  ;;  %v568_v59 = vld [vmem:[%s1023_s0 + $0xb8] sm:$0xff]  }
  0x1e   :  { %v179_v5 = vmul.f32 %v480_v60, %v603_v1  ;;  %v180_v6 = vmul.f32 %v481_v61, %v603_v1  ;;  %v246_v8 = vadd.f32 %v617_v7, %v175_v62  ;;  %v247_v9 = vadd.f32 %v617_v7, %v176_v63 }
  0x1f   :  { %v248_v10 = vadd.f32 %v617_v7, %v177_v0  ;;  %v249_v11 = vadd.f32 %v617_v7, %v178_v2  ;;  %v308_v13 = vmax.f32 %v244_v3, 0.0  ;;  %v309_v14 = vmax.f32 %v245_v4, 0.0 }
  0x20   :  { %v250_v15 = vadd.f32 %v617_v7, %v179_v5  ;;  %v251_v16 = vadd.f32 %v617_v7, %v180_v6  ;;  %v310_v19 = vmax.f32 %v246_v8, 0.0  ;;  %v311_v20 = vmax.f32 %v247_v9, 0.0 }
  0x21   :  { %v312_v21 = vmax.f32 %v248_v10, 0.0  ;;  %v313_v22 = vmax.f32 %v249_v11, 0.0  ;;  %372 = vst [vmem:[%s1026_s3 + $0xc0] sm:$0xff] %v308_v13  ;;  %373 = vst [vmem:[%s1026_s3 + $0xc8] sm:$0xff] %v309_v14  ;;  %v484_v26 = vunpack.c.l.bf16 %v561_v12  ;;  %v485_v27 = vunpack.c.h.bf16 %v561_v12 }
  0x22   :  { %v314_v24 = vmax.f32 %v250_v15, 0.0  ;;  %v315_v25 = vmax.f32 %v251_v16, 0.0  ;;  %374 = vst [vmem:[%s1026_s3 + $0xd0] sm:$0xff] %v310_v19  ;;  %375 = vst [vmem:[%s1026_s3 + $0xd8] sm:$0xff] %v311_v20  ;;  %v488_v28 = vunpack.c.l.bf16 %v562_v17  ;;  %v489_v29 = vunpack.c.h.bf16 %v562_v17 }
  0x23   :  { %376 = vst [vmem:[%s1026_s3 + $0xe0] sm:$0xff] %v312_v21  ;;  %377 = vst [vmem:[%s1026_s3 + $0xe8] sm:$0xff] %v313_v22  ;;  %v492_v30 = vunpack.c.l.bf16 %v563_v18  ;;  %v493_v31 = vunpack.c.h.bf16 %v563_v18  ;;  %v181_v32 = vmul.f32 %v484_v26, %v603_v1  ;;  %v182_v33 = vmul.f32 %v485_v27, %v603_v1  ;;  %v569_v22 = vld [vmem:[%s1023_s0 + $0xc0] sm:$0xff]   ;;  %v570_v27 = vld [vmem:[%s1023_s0 + $0xc8] sm:$0xff]  }
  0x24   :  { %378 = vst [vmem:[%s1026_s3 + $0xf0] sm:$0xff] %v314_v24  ;;  %379 = vst [vmem:[%s1026_s3 + $0xf8] sm:$0xff] %v315_v25  ;;  %v496_v34 = vunpack.c.l.bf16 %v564_v23  ;;  %v497_v35 = vunpack.c.h.bf16 %v564_v23  ;;  %v183_v36 = vmul.f32 %v488_v28, %v603_v1  ;;  %v184_v37 = vmul.f32 %v489_v29, %v603_v1  ;;  %v571_v28 = vld [vmem:[%s1023_s0 + $0xd0] sm:$0xff]  }
  0x25   :  { %v185_v38 = vmul.f32 %v492_v30, %v603_v1  ;;  %v186_v39 = vmul.f32 %v493_v31, %v603_v1  ;;  %v252_v40 = vadd.f32 %v617_v7, %v181_v32  ;;  %v253_v41 = vadd.f32 %v617_v7, %v182_v33  ;;  %v572_v33 = vld [vmem:[%s1023_s0 + $0xd8] sm:$0xff]  }
  0x26   :  { %v187_v42 = vmul.f32 %v496_v34, %v603_v1  ;;  %v188_v43 = vmul.f32 %v497_v35, %v603_v1  ;;  %v254_v44 = vadd.f32 %v617_v7, %v183_v36  ;;  %v255_v45 = vadd.f32 %v617_v7, %v184_v37 }
  0x27   :  { %v256_v46 = vadd.f32 %v617_v7, %v185_v38  ;;  %v257_v47 = vadd.f32 %v617_v7, %v186_v39  ;;  %v316_v49 = vmax.f32 %v252_v40, 0.0  ;;  %v317_v50 = vmax.f32 %v253_v41, 0.0 }
  0x28   :  { %v258_v51 = vadd.f32 %v617_v7, %v187_v42  ;;  %v259_v52 = vadd.f32 %v617_v7, %v188_v43  ;;  %v318_v55 = vmax.f32 %v254_v44, 0.0  ;;  %v319_v56 = vmax.f32 %v255_v45, 0.0 }
  0x29   :  { %v320_v57 = vmax.f32 %v256_v46, 0.0  ;;  %v321_v58 = vmax.f32 %v257_v47, 0.0  ;;  %380 = vst [vmem:[%s1026_s3 + $0x100] sm:$0xff] %v316_v49  ;;  %381 = vst [vmem:[%s1026_s3 + $0x108] sm:$0xff] %v317_v50  ;;  %v500_v62 = vunpack.c.l.bf16 %v565_v48  ;;  %v501_v63 = vunpack.c.h.bf16 %v565_v48 }
  0x2a   :  { %v322_v60 = vmax.f32 %v258_v51, 0.0  ;;  %v323_v61 = vmax.f32 %v259_v52, 0.0  ;;  %382 = vst [vmem:[%s1026_s3 + $0x110] sm:$0xff] %v318_v55  ;;  %383 = vst [vmem:[%s1026_s3 + $0x118] sm:$0xff] %v319_v56  ;;  %v504_v0 = vunpack.c.l.bf16 %v566_v53  ;;  %v505_v2 = vunpack.c.h.bf16 %v566_v53 }
  0x2b   :  { %384 = vst [vmem:[%s1026_s3 + $0x120] sm:$0xff] %v320_v57  ;;  %385 = vst [vmem:[%s1026_s3 + $0x128] sm:$0xff] %v321_v58  ;;  %v508_v3 = vunpack.c.l.bf16 %v567_v54  ;;  %v509_v4 = vunpack.c.h.bf16 %v567_v54  ;;  %v189_v5 = vmul.f32 %v500_v62, %v603_v1  ;;  %v190_v6 = vmul.f32 %v501_v63, %v603_v1  ;;  %v573_v58 = vld [vmem:[%s1023_s0 + $0xe0] sm:$0xff]   ;;  %v574_v63 = vld [vmem:[%s1023_s0 + $0xe8] sm:$0xff]  }
  0x2c   :  { %386 = vst [vmem:[%s1026_s3 + $0x130] sm:$0xff] %v322_v60  ;;  %387 = vst [vmem:[%s1026_s3 + $0x138] sm:$0xff] %v323_v61  ;;  %v512_v8 = vunpack.c.l.bf16 %v568_v59  ;;  %v513_v9 = vunpack.c.h.bf16 %v568_v59  ;;  %v191_v10 = vmul.f32 %v504_v0, %v603_v1  ;;  %v192_v11 = vmul.f32 %v505_v2, %v603_v1  ;;  %v575_v0 = vld [vmem:[%s1023_s0 + $0xf0] sm:$0xff]  }
  0x2d   :  { %v193_v12 = vmul.f32 %v508_v3, %v603_v1  ;;  %v194_v13 = vmul.f32 %v509_v4, %v603_v1  ;;  %v260_v14 = vadd.f32 %v617_v7, %v189_v5  ;;  %v261_v15 = vadd.f32 %v617_v7, %v190_v6  ;;  %v576_v6 = vld [vmem:[%s1023_s0 + $0xf8] sm:$0xff]  }
  0x2e   :  { %v195_v16 = vmul.f32 %v512_v8, %v603_v1  ;;  %v196_v17 = vmul.f32 %v513_v9, %v603_v1  ;;  %v262_v18 = vadd.f32 %v617_v7, %v191_v10  ;;  %v263_v19 = vadd.f32 %v617_v7, %v192_v11 }
  0x2f   :  { %v264_v20 = vadd.f32 %v617_v7, %v193_v12  ;;  %v265_v21 = vadd.f32 %v617_v7, %v194_v13  ;;  %v324_v23 = vmax.f32 %v260_v14, 0.0  ;;  %v325_v24 = vmax.f32 %v261_v15, 0.0 }
  0x30   :  { %v266_v25 = vadd.f32 %v617_v7, %v195_v16  ;;  %v267_v26 = vadd.f32 %v617_v7, %v196_v17  ;;  %v326_v29 = vmax.f32 %v262_v18, 0.0  ;;  %v327_v30 = vmax.f32 %v263_v19, 0.0 }
  0x31   :  { %v328_v31 = vmax.f32 %v264_v20, 0.0  ;;  %v329_v32 = vmax.f32 %v265_v21, 0.0  ;;  %388 = vst [vmem:[%s1026_s3 + $0x140] sm:$0xff] %v324_v23  ;;  %389 = vst [vmem:[%s1026_s3 + $0x148] sm:$0xff] %v325_v24  ;;  %v516_v36 = vunpack.c.l.bf16 %v569_v22  ;;  %v517_v37 = vunpack.c.h.bf16 %v569_v22 }
  0x32   :  { %v330_v34 = vmax.f32 %v266_v25, 0.0  ;;  %v331_v35 = vmax.f32 %v267_v26, 0.0  ;;  %390 = vst [vmem:[%s1026_s3 + $0x150] sm:$0xff] %v326_v29  ;;  %391 = vst [vmem:[%s1026_s3 + $0x158] sm:$0xff] %v327_v30  ;;  %v520_v38 = vunpack.c.l.bf16 %v570_v27  ;;  %v521_v39 = vunpack.c.h.bf16 %v570_v27 }
  0x33   :  { %392 = vst [vmem:[%s1026_s3 + $0x160] sm:$0xff] %v328_v31  ;;  %393 = vst [vmem:[%s1026_s3 + $0x168] sm:$0xff] %v329_v32  ;;  %v524_v40 = vunpack.c.l.bf16 %v571_v28  ;;  %v525_v41 = vunpack.c.h.bf16 %v571_v28  ;;  %v197_v42 = vmul.f32 %v516_v36, %v603_v1  ;;  %v198_v43 = vmul.f32 %v517_v37, %v603_v1 }
  0x34   :  { %394 = vst [vmem:[%s1026_s3 + $0x170] sm:$0xff] %v330_v34  ;;  %395 = vst [vmem:[%s1026_s3 + $0x178] sm:$0xff] %v331_v35  ;;  %v528_v44 = vunpack.c.l.bf16 %v572_v33  ;;  %v529_v45 = vunpack.c.h.bf16 %v572_v33  ;;  %v199_v46 = vmul.f32 %v520_v38, %v603_v1  ;;  %v200_v47 = vmul.f32 %v521_v39, %v603_v1 }
  0x35   :  { %v201_v48 = vmul.f32 %v524_v40, %v603_v1  ;;  %v202_v49 = vmul.f32 %v525_v41, %v603_v1  ;;  %v268_v50 = vadd.f32 %v617_v7, %v197_v42  ;;  %v269_v51 = vadd.f32 %v617_v7, %v198_v43 }
  0x36   :  { %v203_v52 = vmul.f32 %v528_v44, %v603_v1  ;;  %v204_v53 = vmul.f32 %v529_v45, %v603_v1  ;;  %v270_v54 = vadd.f32 %v617_v7, %v199_v46  ;;  %v271_v55 = vadd.f32 %v617_v7, %v200_v47 }
  0x37   :  { %v272_v56 = vadd.f32 %v617_v7, %v201_v48  ;;  %v273_v57 = vadd.f32 %v617_v7, %v202_v49  ;;  %v332_v59 = vmax.f32 %v268_v50, 0.0  ;;  %v333_v60 = vmax.f32 %v269_v51, 0.0 }
  0x38   :  { %v274_v61 = vadd.f32 %v617_v7, %v203_v52  ;;  %v275_v62 = vadd.f32 %v617_v7, %v204_v53  ;;  %v334_v2 = vmax.f32 %v270_v54, 0.0  ;;  %v335_v3 = vmax.f32 %v271_v55, 0.0 }
  0x39   :  { %v336_v4 = vmax.f32 %v272_v56, 0.0  ;;  %v337_v5 = vmax.f32 %v273_v57, 0.0  ;;  %396 = vst [vmem:[%s1026_s3 + $0x180] sm:$0xff] %v332_v59  ;;  %397 = vst [vmem:[%s1026_s3 + $0x188] sm:$0xff] %v333_v60  ;;  %v532_v10 = vunpack.c.l.bf16 %v573_v58  ;;  %v533_v11 = vunpack.c.h.bf16 %v573_v58 }
  0x3a   :  { %v338_v8 = vmax.f32 %v274_v61, 0.0  ;;  %v339_v9 = vmax.f32 %v275_v62, 0.0  ;;  %398 = vst [vmem:[%s1026_s3 + $0x190] sm:$0xff] %v334_v2  ;;  %399 = vst [vmem:[%s1026_s3 + $0x198] sm:$0xff] %v335_v3  ;;  %v536_v12 = vunpack.c.l.bf16 %v574_v63  ;;  %v537_v13 = vunpack.c.h.bf16 %v574_v63 }
  0x3b   :  { %400 = vst [vmem:[%s1026_s3 + $0x1a0] sm:$0xff] %v336_v4  ;;  %401 = vst [vmem:[%s1026_s3 + $0x1a8] sm:$0xff] %v337_v5  ;;  %v540_v14 = vunpack.c.l.bf16 %v575_v0  ;;  %v541_v15 = vunpack.c.h.bf16 %v575_v0  ;;  %v205_v16 = vmul.f32 %v532_v10, %v603_v1  ;;  %v206_v17 = vmul.f32 %v533_v11, %v603_v1 }
  0x3c   :  { %402 = vst [vmem:[%s1026_s3 + $0x1b0] sm:$0xff] %v338_v8  ;;  %403 = vst [vmem:[%s1026_s3 + $0x1b8] sm:$0xff] %v339_v9  ;;  %v544_v18 = vunpack.c.l.bf16 %v576_v6  ;;  %v545_v19 = vunpack.c.h.bf16 %v576_v6  ;;  %v207_v20 = vmul.f32 %v536_v12, %v603_v1  ;;  %v208_v21 = vmul.f32 %v537_v13, %v603_v1 }
  0x3d   :  { %v209_v22 = vmul.f32 %v540_v14, %v603_v1  ;;  %v210_v23 = vmul.f32 %v541_v15, %v603_v1  ;;  %v276_v24 = vadd.f32 %v617_v7, %v205_v16  ;;  %v277_v25 = vadd.f32 %v617_v7, %v206_v17 }
  0x3e   :  { %v211_v26 = vmul.f32 %v544_v18, %v603_v1  ;;  %v212_v27 = vmul.f32 %v545_v19, %v603_v1  ;;  %v278_v28 = vadd.f32 %v617_v7, %v207_v20  ;;  %v279_v29 = vadd.f32 %v617_v7, %v208_v21 }
  0x3f   :  { %v280_v30 = vadd.f32 %v617_v7, %v209_v22  ;;  %v281_v31 = vadd.f32 %v617_v7, %v210_v23  ;;  %v340_v32 = vmax.f32 %v276_v24, 0.0  ;;  %v341_v33 = vmax.f32 %v277_v25, 0.0 }
  0x40   :  { %v282_v34 = vadd.f32 %v617_v7, %v211_v26  ;;  %v283_v35 = vadd.f32 %v617_v7, %v212_v27  ;;  %v342_v36 = vmax.f32 %v278_v28, 0.0  ;;  %v343_v37 = vmax.f32 %v279_v29, 0.0 }
  0x41   :  { %v344_v38 = vmax.f32 %v280_v30, 0.0  ;;  %v345_v39 = vmax.f32 %v281_v31, 0.0  ;;  %404 = vst [vmem:[%s1026_s3 + $0x1c0] sm:$0xff] %v340_v32  ;;  %405 = vst [vmem:[%s1026_s3 + $0x1c8] sm:$0xff] %v341_v33 }
  0x42   :  { %v346_v1 = vmax.f32 %v282_v34, 0.0  ;;  %v347_v40 = vmax.f32 %v283_v35, 0.0  ;;  %406 = vst [vmem:[%s1026_s3 + $0x1d0] sm:$0xff] %v342_v36  ;;  %407 = vst [vmem:[%s1026_s3 + $0x1d8] sm:$0xff] %v343_v37 }
  0x43   :  { %408 = vst [vmem:[%s1026_s3 + $0x1e0] sm:$0xff] %v344_v38  ;;  %409 = vst [vmem:[%s1026_s3 + $0x1e8] sm:$0xff] %v345_v39 }
  0x44   :  { %410 = vst [vmem:[%s1026_s3 + $0x1f0] sm:$0xff] %v346_v1  ;;  %411 = vst [vmem:[%s1026_s3 + $0x1f8] sm:$0xff] %v347_v40 }

// kernel: unet_conv2d.4
= control target key start
LH: loop header
LB: loop body
LE: loop exit
PB: predicated region body
PF: predicated region fallthrough
CT: control target
= control target key end

     0   :  { %s4385_s15 = smov 0   ;;  %s4387_s16 = smov 0   ;;  %s5871_s0 = inlined_call_operand.vmem [shape: bf16[2,18,18,4], index: 0, kind: input, shape index: {}]   ;;  %s5872_s1 = inlined_call_operand.vmem [shape: bf16[36,128], index: 1, kind: input, shape index: {}]   ;;  %s5873_s2 = inlined_call_operand.vmem [shape: f32[1,128], index: 2, kind: input, shape index: {}]   ;;  %s5874_s3 = inlined_call_operand.vmem [shape: bf16[2,16,16,128], index: 3, kind: output, shape index: {0}]   ;;  %s5875_s4 = inlined_call_operand.vmem [shape: f32[2,1,2,128], index: 4, kind: output, shape index: {1}]  }
   0x1   :  { %s4389_s17 = smov 0  }
   0x2 LB: > { %s27_s18 = sadd.s32 1, %s4354_s16  ;;  %p3430_p0 = scmp.ge.s32.totalorder %s4358_s17, 1  ;;  %s4358_s17 = sphi %s4389_s17, %s15_s17   ;;  %s4354_s16 = sphi %s4387_s16, %s6053_s16   ;;  %s4350_s15 = sphi %s4385_s15, %s6052_s15  }
   0x3   : > { %p29_p1 = scmp.ge.s32.totalorder %s27_s18, 2  ;;  %p189_p2 = scmp.lt.s32.totalorder %s4358_s17, 3 }
   0x5   : > { %s6055_s18 = smov (%p29_p1, %s27_s18), 0  ;;  %p190_p3 = pnand %p3430_p0, %p189_p2 }
   0x7   : > { %193 = sbr.rel (%p190_p3) target bundleno = 576 (0x240), region = 32 }
   0xc   : > { %v934_v0 = vld [vmem:[%s5872_s1] sm:$0xf]  ;;  %p233_p4 = scmp.lt.s32.totalorder %s4350_s15, 1  ;;  %v935_v2 = vld [vmem:[%s5872_s1 + $0x4] sm:$0xf]  ;;  %vm1040_vm0 = vcmask 1041408  }
   0xd   : > { %v3469_v1 = vcombine.low %v934_v0, %v934_v0  ;;  %v3551_v3 = vcombine.low %v935_v2, %v935_v2  ;;  %vm316_vm1 = vsmask.f32 3328  ;;  %vm317_vm2 = vsmask.f32 7440 }
   0xe   : > { %s6057_s15 = smov (!%p233_p4, %s4350_s15), 1  ;;  %v4421_v6 = vsel %vm1040_vm0, %v934_v0, 0  ;;  %v4426_v8 = vsel %vm1040_vm0, %v935_v2, 0  ;;  %vm991_vm3 = vcmask 31744   ;;  %vm4467_vm4 = vmor %vm316_vm1, %vm317_vm2  ;;  %v5919_v35 = vmov 0 }
   0xf   : > { %v990_v4 = vrot.slane %v3469_v1, 2  ;;  %s4289_s23 = smul.u32 216, %s6057_s15  ;;  %v4423_v7 = vrot.slane %v3551_v3, 2  ;;  %v5920_v35 = vsel %vm4467_vm4, 4294967295, %v5919_v35  ;;  %vm751_vm5 = vcmask 1042432   ;;  %s3690_s9 = sshll.u32 %s6057_s15, 7 }
  0x10   : > { %5921 = vst [vmem:[#allocation2_spill] sm:$0xff] %v5920_v35  ;;  %vm752_vm6 = vcmask 1046532   ;;  %s5748_s12 = scalar_lea.vmem %s5874_s3, %s3690_s9  ;;  %s3434_s13 = sshll.u32 %s6057_s15, 1  ;;  %vm3286_vm8 = vcmask 1040384  }
  0x11   : > { %4280 = vmatprep.subr.msk.bf16.mxu1 %vm1040_vm0, %v990_v4  ;;  %4279 = vmatprep.subr.msk.bf16.mxu0 %vm1040_vm0, %v990_v4  ;;  %v1042_v5 = vsel %vm1040_vm0, %v990_v4, 0  ;;  %s4418_s26 = scalar_lea.vmem %s5871_s0, %s4289_s23  ;;  %vm4785_vm7 = vmor %vm751_vm5, %vm752_vm6  ;;  %s260_s20 = scalar_lea.vmem %s5875_s4, %s3434_s13 }
  0x12   : > { %4278 = vmatpush3.bf16.msra.mxu1 %v1042_v5  ;;  %3972 = vmatpush3.bf16.msra.mxu0 %v1042_v5  ;;  %v4429_v9 = vld [vmem:[%s4418_s26] sm:$0xf]  ;;  %v4432_v10 = vld [vmem:[%s4418_s26 + $0x4] sm:$0xf]  ;;  %v4435_v11 = vld [vmem:[%s4418_s26 + $0x8] sm:$0x1] }
  0x13   : > { %4281 = vmatprep.subr.msk.bf16.mxu1 %vm1040_vm0, %v934_v0  ;;  %4282 = vmatprep.subr.msk.bf16.mxu0 %vm1040_vm0, %v935_v2  ;;  %v320_v12 = vshrl.u32 %v4429_v9, 16  ;;  %v323_v13 = vshll.u32 %v4429_v9, 16  ;;  %v329_v14 = vshll.u32 %v4432_v10, 16  ;;  %v333_v15 = vshrl.u32 %v4432_v10, 16  ;;  %v4444_v16 = vld [vmem:[%s4418_s26 + $0x60] sm:$0xf] }
  0x14   : > { %v339_v17 = vshll.u32 %v4435_v11, 16  ;;  %v4449_v19 = vld [vmem:[%s4418_s26 + $0x64] sm:$0xf]  ;;  %v4452_v20 = vld [vmem:[%s4418_s26 + $0x68] sm:$0x1]  ;;  %v512_v26 = vshrl.u32 %v4444_v16, 16 }
  0x15   : > { %v322_v21 = vrot.slane %v320_v12, 4  ;;  %v325_v22 = vrot.slane %v323_v13, 5  ;;  %v331_v23 = vrot.slane %v329_v14, 5  ;;  %v335_v24 = vrot.slane %v333_v15, 4  ;;  %v4460_v33 = vld [vmem:[%s4418_s26 + $0xc] sm:$0xf] }
  0x16   : > { %v341_v25 = vrot.slane %v339_v17, 5  ;;  %v515_v27 = vshll.u32 %v4444_v16, 16  ;;  %v521_v28 = vshll.u32 %v4449_v19, 16  ;;  %v525_v31 = vshrl.u32 %v4449_v19, 16  ;;  %v4463_v34 = vld [vmem:[%s4418_s26 + $0x10] sm:$0xf] }
  0x17   : > { %v326_v29 = vor.u32 %v325_v22, %v322_v21  ;;  %v336_v30 = vor.u32 %v335_v24, %v331_v23  ;;  %v531_v32 = vshll.u32 %v4452_v20, 16  ;;  %v514_v36 = vrot.slane %v512_v26, 4  ;;  %v4474_v45 = vld [vmem:[%s4418_s26 + $0x14] sm:$0x1]  ;;  %v4485_v57 = vld [vmem:[%s4418_s26 + $0x6c] sm:$0xf] }
  0x18   : > { %v517_v37 = vrot.slane %v515_v27, 5  ;;  %v523_v38 = vrot.slane %v521_v28, 5  ;;  %v527_v42 = vrot.slane %v525_v31, 4  ;;  %v344_v46 = vshrl.u32 %v4460_v33, 16  ;;  %5922 = vst [vmem:[#allocation3_spill] sm:$0xff] %v4485_v57 }
  0x19   : > { %v327_v40 = vrot.slane %v326_v29, 4  ;;  %v337_v41 = vrot.slane %v336_v30, 4  ;;  %v533_v43 = vrot.slane %v531_v32, 5  ;;  %v347_v47 = vshll.u32 %v4460_v33, 16  ;;  %v4489_v62 = vld [vmem:[%s4418_s26 + $0x70] sm:$0xf] }
  0x1a   : > { %v518_v44 = vor.u32 %v517_v37, %v514_v36  ;;  %v353_v48 = vshll.u32 %v4463_v34, 16  ;;  %v528_v51 = vor.u32 %v527_v42, %v523_v38  ;;  %v357_v52 = vshrl.u32 %v4463_v34, 16  ;;  %v4497_v3 = vld [vmem:[%s4418_s26 + $0x74] sm:$0x1]  ;;  %v4503_v14 = vld [vmem:[%s4418_s26 + $0x18] sm:$0xf] }
  0x1b   : > { %v332_v49 = vsel %vm4467_vm4, %v327_v40, %v331_v23  ;;  %v342_v50 = vsel %vm4467_vm4, %v337_v41, %v341_v25  ;;  %v346_v55 = vrot.slane %v344_v46, 4  ;;  %v349_v56 = vrot.slane %v347_v47, 5  ;;  %5923 = vst [vmem:[#allocation4_spill] sm:$0xff] %v4497_v3  ;;  %v4512_v27 = vld [vmem:[%s4418_s26 + $0x1c] sm:$0xf] }
  0x1c   : > { %v3453_v53 = vcombine.low %v332_v49, %v342_v50  ;;  %v519_v54 = vrot.slane %v518_v44, 4  ;;  %v529_v58 = vrot.slane %v528_v51, 4  ;;  %v355_v59 = vrot.slane %v353_v48, 5  ;;  %v4519_v31 = vld [vmem:[%s4418_s26 + $0x20] sm:$0x1] }
  0x1d   : > { %v359_v60 = vrot.slane %v357_v52, 4  ;;  %v363_v61 = vshll.u32 %v4474_v45, 16  ;;  %v350_v0 = vor.u32 %v349_v56, %v346_v55  ;;  %v536_v13 = vshrl.u32 %v4485_v57, 16  ;;  %v4526_v41 = vld [vmem:[%s4418_s26 + $0x78] sm:$0xf] }
  0x1e   : > { %3973 = vmatprep.mubr.msk.bf16.mxu0 %vm991_vm3, %v3453_v53  ;;  %v524_v63 = vsel %vm4467_vm4, %v519_v54, %v523_v38  ;;  %v534_v4 = vsel %vm4467_vm4, %v529_v58, %v533_v43  ;;  %v539_v21 = vshll.u32 %v4485_v57, 16  ;;  %v545_v22 = vshll.u32 %v4489_v62, 16  ;;  %5925 = vst [vmem:[#allocation6_spill] sm:$0xff] %v4526_v41  ;;  %v4534_v47 = vld [vmem:[%s5872_s1 + $0x8] sm:$0xf] }
  0x1f   : > { %v360_v5 = vor.u32 %v359_v60, %v355_v59  ;;  %v365_v12 = vrot.slane %v363_v61, 5  ;;  %v4505_v15 = vcombine.low %v524_v63, %v534_v4  ;;  %v351_v17 = vrot.slane %v350_v0, 4  ;;  %v4539_v52 = vld [vmem:[%s4418_s26 + $0x7c] sm:$0xf]  ;;  %v4547_v63 = vld [vmem:[%s4418_s26 + $0x80] sm:$0x1] }
  0x20   : > { %v538_v24 = vrot.slane %v536_v13, 4  ;;  %v549_v25 = vshrl.u32 %v4489_v62, 16  ;;  %v555_v26 = vshll.u32 %v4497_v3, 16  ;;  %v541_v29 = vrot.slane %v539_v21, 5  ;;  %5927 = vst [vmem:[#allocation8_spill] sm:$0xff] %v4539_v52  ;;  %5928 = vst [vmem:[#allocation9_spill] sm:$0xff] %v4547_v63 }
  0x21   : > { %5924 = vst [vmem:[#allocation5_spill] sm:$0xff] %v4505_v15  ;;  %v361_v23 = vrot.slane %v360_v5, 4  ;;  %3989 = vmatprep.mubr.msk.bf16.mxu1 %vm991_vm3, %v4505_v15  ;;  %v356_v28 = vsel %vm4467_vm4, %v351_v17, %v355_v59  ;;  %v547_v30 = vrot.slane %v545_v22, 5  ;;  %v368_v32 = vshrl.u32 %v4503_v14, 16  ;;  %v4553_v13 = vld [vmem:[%s4418_s26 + $0x24] sm:$0xf] }
  0x22   : > { %v551_v37 = vrot.slane %v549_v25, 4  ;;  %v557_v38 = vrot.slane %v555_v26, 5  ;;  %v371_v40 = vshll.u32 %v4503_v14, 16  ;;  %v542_v43 = vor.u32 %v541_v29, %v538_v24 }
  0x23   : > { %v366_v36 = vsel %vm4467_vm4, %v361_v23, %v365_v12  ;;  %v370_v44 = vrot.slane %v368_v32, 4  ;;  %v377_v46 = vshll.u32 %v4512_v27, 16  ;;  %v381_v50 = vshrl.u32 %v4512_v27, 16  ;;  %v4561_v23 = vld [vmem:[%s4418_s26 + $0x28] sm:$0xf] }
  0x24   : > { %v4528_v42 = vcombine.low %v356_v28, %v366_v36  ;;  %v552_v48 = vor.u32 %v551_v37, %v547_v30  ;;  %v373_v49 = vrot.slane %v371_v40, 5  ;;  %v387_v51 = vshll.u32 %v4519_v31, 16  ;;  %v4569_v36 = vld [vmem:[%s4418_s26 + $0x2c] sm:$0x1] }
  0x25   : > { %v543_v53 = vrot.slane %v542_v43, 4  ;;  %v379_v54 = vrot.slane %v377_v46, 5  ;;  %v560_v55 = vshrl.u32 %v4526_v41, 16  ;;  %v563_v56 = vshll.u32 %v4526_v41, 16  ;;  %v4577_v46 = vld [vmem:[%s4418_s26 + $0x84] sm:$0xf] }
  0x26   : > { %5926 = vst [vmem:[#allocation7_spill] sm:$0xff] %v4528_v42  ;;  %3974 = vmatmul.mubr.msk.bf16.vlgmr.msra.gmra.mxu0 %vm991_vm3, %v4528_v42  ;;  %v553_v58 = vrot.slane %v552_v48, 4  ;;  %v374_v59 = vor.u32 %v373_v49, %v370_v44  ;;  %v383_v60 = vrot.slane %v381_v50, 4  ;;  %v389_v61 = vrot.slane %v387_v51, 5  ;;  %v4724_v42 = vld [vmem:[%s4418_s26 + $0xb0] sm:$0x1] }
  0x27   : > { %4040 = vmatpush3.bf16.msra.mxu0 %v4426_v8  ;;  %v548_v0 = vsel %vm4467_vm4, %v543_v53, %v547_v30  ;;  %v562_v4 = vrot.slane %v560_v55, 4  ;;  %v565_v5 = vrot.slane %v563_v56, 5  ;;  %v569_v12 = vshll.u32 %v4539_v52, 16  ;;  %v4584_v53 = vld [vmem:[%s4418_s26 + $0x88] sm:$0xf]  ;;  %5940 = vst [vmem:[#allocation21_spill] sm:$0xff] %v4724_v42 }
  0x28   : > { %4284 = vmatprep.subr.msk.bf16.mxu0 %vm1040_vm0, %v4534_v47  ;;  %v558_v8 = vsel %vm4467_vm4, %v553_v58, %v557_v38  ;;  %v375_v17 = vrot.slane %v374_v59, 4  ;;  %v384_v21 = vor.u32 %v383_v60, %v379_v54  ;;  %v573_v22 = vshrl.u32 %v4539_v52, 16  ;;  %v4746_v52 = vld [vmem:[%s4418_s26 + $0x5c] sm:$0x1] }
  0x29   : > { %v4563_v24 = vcombine.low %v548_v0, %v558_v8  ;;  %v566_v25 = vor.u32 %v565_v5, %v562_v4  ;;  %v571_v26 = vrot.slane %v569_v12, 5  ;;  %v579_v28 = vshll.u32 %v4547_v63, 16 }
  0x2a   : > { %v380_v29 = vsel %vm4467_vm4, %v375_v17, %v379_v54  ;;  %v385_v30 = vrot.slane %v384_v21, 4  ;;  %v575_v32 = vrot.slane %v573_v22, 4  ;;  %v392_v37 = vshrl.u32 %v4553_v13, 16  ;;  %v4603_v17 = vld [vmem:[%s4418_s26 + $0x30] sm:$0xf] }
  0x2b   : > { %5929 = vst [vmem:[#allocation10_spill] sm:$0xff] %v4563_v24  ;;  %3990 = vmatmul.mubr.msk.bf16.vlgmr.msra.gmra.mxu1 %vm991_vm3, %v4563_v24  ;;  %v567_v38 = vrot.slane %v566_v25, 4  ;;  %v581_v40 = vrot.slane %v579_v28, 5  ;;  %v395_v43 = vshll.u32 %v4553_v13, 16  ;;  %v401_v44 = vshll.u32 %v4561_v23, 16 }
  0x2c   : > { %4006 = vmatpush3.bf16.msra.mxu1 %v4421_v6  ;;  %v390_v48 = vsel %vm4467_vm4, %v385_v30, %v389_v61  ;;  %v576_v49 = vor.u32 %v575_v32, %v571_v26  ;;  %v394_v50 = vrot.slane %v392_v37, 4  ;;  %v405_v51 = vshrl.u32 %v4561_v23, 16  ;;  %v4594_v61 = vld [vmem:[%s4418_s26 + $0x8c] sm:$0x1]  ;;  %v4608_v28 = vld [vmem:[%s4418_s26 + $0x34] sm:$0xf] }
  0x2d   : > { %v4586_v54 = vcombine.low %v380_v29, %v390_v48  ;;  %v572_v55 = vsel %vm4467_vm4, %v567_v38, %v571_v26  ;;  %v397_v56 = vrot.slane %v395_v43, 5  ;;  %v403_v58 = vrot.slane %v401_v44, 5  ;;  %4283 = vmatprep.subr.msk.bf16.mxu1 %vm1040_vm0, %v4423_v7 }
  0x2e   : > { %v577_v6 = vrot.slane %v576_v49, 4  ;;  %v407_v59 = vrot.slane %v405_v51, 4  ;;  %v411_v60 = vshll.u32 %v4569_v36, 16  ;;  %v584_v0 = vshrl.u32 %v4577_v46, 16 }
  0x2f   : > { %5930 = vst [vmem:[#allocation11_spill] sm:$0xff] %v4586_v54  ;;  %3977 = vmatprep.mubr.msk.bf16.mxu0 %vm991_vm3, %v4586_v54  ;;  %v398_v4 = vor.u32 %v397_v56, %v394_v50  ;;  %v587_v5 = vshll.u32 %v4577_v46, 16  ;;  %v593_v12 = vshll.u32 %v4584_v53, 16  ;;  %v597_v8 = vshrl.u32 %v4584_v53, 16  ;;  %v4619_v50 = vld [vmem:[%s4418_s26 + $0x38] sm:$0x1] }
  0x30   : > { %v582_v21 = vsel %vm4467_vm4, %v577_v6, %v581_v40  ;;  %v408_v22 = vor.u32 %v407_v59, %v403_v58  ;;  %v413_v25 = vrot.slane %v411_v60, 5  ;;  %v586_v26 = vrot.slane %v584_v0, 4  ;;  %v4624_v56 = vld [vmem:[%s4418_s26 + $0x90] sm:$0xf] }
  0x31   : > { %v4610_v29 = vcombine.low %v572_v55, %v582_v21  ;;  %v399_v30 = vrot.slane %v398_v4, 4  ;;  %v589_v32 = vrot.slane %v587_v5, 5  ;;  %v595_v37 = vrot.slane %v593_v12, 5  ;;  %v4629_v4 = vld [vmem:[%s4418_s26 + $0x94] sm:$0xf] }
  0x32   : > { %v409_v38 = vrot.slane %v408_v22, 4  ;;  %v599_v43 = vrot.slane %v597_v8, 4  ;;  %v603_v44 = vshll.u32 %v4594_v61, 16  ;;  %v416_v48 = vshrl.u32 %v4603_v17, 16 }
  0x33   : > { %5931 = vst [vmem:[#allocation12_spill] sm:$0xff] %v4610_v29  ;;  %3993 = vmatprep.mubr.msk.bf16.mxu1 %vm991_vm3, %v4610_v29  ;;  %v404_v40 = vsel %vm4467_vm4, %v399_v30, %v403_v58  ;;  %v590_v49 = vor.u32 %v589_v32, %v586_v26  ;;  %v419_v51 = vshll.u32 %v4603_v17, 16  ;;  %v425_v55 = vshll.u32 %v4608_v28, 16  ;;  %v4675_v29 = vld [vmem:[%s4418_s26 + $0xa0] sm:$0xf] }
  0x34   : > { %v414_v6 = vsel %vm4467_vm4, %v409_v38, %v413_v25  ;;  %v600_v59 = vor.u32 %v599_v43, %v595_v37  ;;  %v605_v60 = vrot.slane %v603_v44, 5  ;;  %v418_v0 = vrot.slane %v416_v48, 4  ;;  %v4641_v38 = vld [vmem:[%s4418_s26 + $0x98] sm:$0x1]  ;;  %v4646_v48 = vld [vmem:[%s4418_s26 + $0x3c] sm:$0xf] }
  0x35   : > { %v4631_v58 = vcombine.low %v404_v40, %v414_v6  ;;  %v591_v5 = vrot.slane %v590_v49, 4  ;;  %v421_v12 = vrot.slane %v419_v51, 5  ;;  %v427_v8 = vrot.slane %v425_v55, 5  ;;  %v4651_v6 = vld [vmem:[%s4418_s26 + $0x40] sm:$0xf] }
  0x36   : > { %v601_v21 = vrot.slane %v600_v59, 4  ;;  %v429_v22 = vshrl.u32 %v4608_v28, 16  ;;  %v435_v26 = vshll.u32 %v4619_v50, 16  ;;  %v608_v25 = vshrl.u32 %v4624_v56, 16 }
  0x37   : > { %5932 = vst [vmem:[#allocation13_spill] sm:$0xff] %v4631_v58  ;;  %3978 = vmatmul.mubr.msk.bf16.gmra.mxu0 %vm991_vm3, %v4631_v58  ;;  %v596_v30 = vsel %vm4467_vm4, %v591_v5, %v595_v37  ;;  %v422_v32 = vor.u32 %v421_v12, %v418_v0  ;;  %v611_v43 = vshll.u32 %v4624_v56, 16  ;;  %v617_v44 = vshll.u32 %v4629_v4, 16 }
  0x38   : > { %v606_v40 = vsel %vm4467_vm4, %v601_v21, %v605_v60  ;;  %v431_v49 = vrot.slane %v429_v22, 4  ;;  %v437_v51 = vrot.slane %v435_v26, 5  ;;  %v610_v55 = vrot.slane %v608_v25, 4  ;;  %v4663_v22 = vld [vmem:[%s4418_s26 + $0x44] sm:$0x1] }
  0x39   : > { %v4653_v37 = vcombine.low %v596_v30, %v606_v40  ;;  %v423_v59 = vrot.slane %v422_v32, 4  ;;  %v613_v0 = vrot.slane %v611_v43, 5  ;;  %v619_v5 = vrot.slane %v617_v44, 5  ;;  %v4668_v30 = vld [vmem:[%s4418_s26 + $0x9c] sm:$0xf] }
  0x3a   : > { %v432_v12 = vor.u32 %v431_v49, %v427_v8  ;;  %v621_v39 = vshrl.u32 %v4629_v4, 16  ;;  %v627_v2 = vshll.u32 %v4641_v38, 16  ;;  %v440_v18 = vshrl.u32 %v4646_v48, 16 }
  0x3b   : > { %5933 = vst [vmem:[#allocation14_spill] sm:$0xff] %v4653_v37  ;;  %3994 = vmatmul.mubr.msk.bf16.gmra.mxu1 %vm991_vm3, %v4653_v37  ;;  %v428_v60 = vsel %vm4467_vm4, %v423_v59, %v427_v8  ;;  %v614_v21 = vor.u32 %v613_v0, %v610_v55  ;;  %v443_v26 = vshll.u32 %v4646_v48, 16  ;;  %v449_v25 = vshll.u32 %v4651_v6, 16 }
  0x3c   : > { %v433_v32 = vrot.slane %v432_v12, 4  ;;  %v623_v43 = vrot.slane %v621_v39, 4  ;;  %v629_v44 = vrot.slane %v627_v2, 5  ;;  %v442_v40 = vrot.slane %v440_v18, 4 }
  0x3d   : > { %v615_v49 = vrot.slane %v614_v21, 4  ;;  %v445_v1 = vrot.slane %v443_v26, 5  ;;  %v451_v37 = vrot.slane %v449_v25, 5  ;;  %v453_v8 = vshrl.u32 %v4651_v6, 16  ;;  %v4683_v26 = vld [vmem:[%s4418_s26 + $0xa4] sm:$0x1] }
  0x3e   : > { %v438_v55 = vsel %vm4467_vm4, %v433_v32, %v437_v51  ;;  %v624_v59 = vor.u32 %v623_v43, %v619_v5  ;;  %v459_v0 = vshll.u32 %v4663_v22, 16  ;;  %v632_v12 = vshrl.u32 %v4668_v30, 16  ;;  %5935 = vst [vmem:[#allocation16_spill] sm:$0xff] %v4683_v26  ;;  %v4686_v25 = vld [vmem:[%s4418_s26 + $0x48] sm:$0xf] }
  0x3f   : > { %v4678_v39 = vcombine.low %v428_v60, %v438_v55  ;;  %v620_v18 = vsel %vm4467_vm4, %v615_v49, %v619_v5  ;;  %v446_v2 = vor.u32 %v445_v1, %v442_v40  ;;  %v455_v21 = vrot.slane %v453_v8, 4 }
  0x40   : > { %v625_v51 = vrot.slane %v624_v59, 4  ;;  %v461_v32 = vrot.slane %v459_v0, 5  ;;  %v634_v43 = vrot.slane %v632_v12, 4  ;;  %v635_v24 = vshll.u32 %v4668_v30, 16  ;;  %v4697_v59 = vld [vmem:[%s4418_s26 + $0x4c] sm:$0xf] }
  0x41   : > { %5934 = vst [vmem:[#allocation15_spill] sm:$0xff] %v4678_v39  ;;  %3981 = vmatprep.mubr.msk.bf16.mxu0 %vm991_vm3, %v4678_v39  ;;  %v447_v60 = vrot.slane %v446_v2, 4  ;;  %v456_v55 = vor.u32 %v455_v21, %v451_v37  ;;  %v641_v5 = vshll.u32 %v4675_v29, 16  ;;  %v645_v1 = vshrl.u32 %v4675_v29, 16  ;;  %v4705_v39 = vld [vmem:[%s4418_s26 + $0x50] sm:$0x1] }
  0x42   : > { %v630_v40 = vsel %vm4467_vm4, %v625_v51, %v629_v44  ;;  %v637_v49 = vrot.slane %v635_v24, 5  ;;  %v651_v8 = vshll.u32 %v4683_v26, 16  ;;  %v464_v0 = vshrl.u32 %v4686_v25, 16  ;;  %v4708_v51 = vld [vmem:[%s4418_s26 + $0xa8] sm:$0xf] }
  0x43   : > { %v4700_v12 = vcombine.low %v620_v18, %v630_v40  ;;  %v452_v2 = vsel %vm4467_vm4, %v447_v60, %v451_v37  ;;  %v457_v21 = vrot.slane %v456_v55, 4  ;;  %v643_v15 = vrot.slane %v641_v5, 5  ;;  %5937 = vst [vmem:[#allocation18_spill] sm:$0xff] %v4708_v51 }
  0x44   : > { %v638_v58 = vor.u32 %v637_v49, %v634_v43  ;;  %v647_v54 = vrot.slane %v645_v1, 4  ;;  %v653_v44 = vrot.slane %v651_v8, 5  ;;  %v466_v24 = vrot.slane %v464_v0, 4  ;;  %v4721_v49 = vld [vmem:[%s4418_s26 + $0xac] sm:$0xf] }
  0x45   : > { %5936 = vst [vmem:[#allocation17_spill] sm:$0xff] %v4700_v12  ;;  %3997 = vmatprep.mubr.msk.bf16.mxu1 %vm991_vm3, %v4700_v12  ;;  %v462_v18 = vsel %vm4467_vm4, %v457_v21, %v461_v32  ;;  %v467_v37 = vshll.u32 %v4686_v25, 16  ;;  %v473_v60 = vshll.u32 %v4697_v59, 16  ;;  %v477_v55 = vshrl.u32 %v4697_v59, 16  ;;  %5939 = vst [vmem:[#allocation20_spill] sm:$0xff] %v4721_v49 }
  0x46   : > { %v4717_v5 = vcombine.low %v452_v2, %v462_v18  ;;  %v639_v43 = vrot.slane %v638_v58, 4  ;;  %v648_v1 = vor.u32 %v647_v54, %v643_v15  ;;  %v483_v40 = vshll.u32 %v4705_v39, 16 }
  0x47   : > { %v469_v8 = vrot.slane %v467_v37, 5  ;;  %v475_v0 = vrot.slane %v473_v60, 5  ;;  %v479_v12 = vrot.slane %v477_v55, 4  ;;  %v656_v32 = vshrl.u32 %v4708_v51, 16  ;;  %v4734_v55 = vld [vmem:[%s4418_s26 + $0x54] sm:$0xf] }
  0x48   : > { %5938 = vst [vmem:[#allocation19_spill] sm:$0xff] %v4717_v5  ;;  %3982 = vmatmul.mubr.msk.bf16.gmra.mxu0 %vm991_vm3, %v4717_v5  ;;  %v644_v58 = vsel %vm4467_vm4, %v639_v43, %v643_v15  ;;  %v649_v54 = vrot.slane %v648_v1, 4  ;;  %v485_v2 = vrot.slane %v483_v40, 5  ;;  %v659_v21 = vshll.u32 %v4708_v51, 16  ;;  %v4741_v1 = vld [vmem:[%s4418_s26 + $0x58] sm:$0xf] }
  0x49   : > { %v470_v18 = vor.u32 %v469_v8, %v466_v24  ;;  %v480_v63 = vor.u32 %v479_v12, %v475_v0  ;;  %v658_v37 = vrot.slane %v656_v32, 4  ;;  %v665_v60 = vshll.u32 %v4721_v49, 16 }
  0x4a   : > { %v654_v5 = vsel %vm4467_vm4, %v649_v54, %v653_v44  ;;  %v661_v41 = vrot.slane %v659_v21, 5  ;;  %v669_v15 = vshrl.u32 %v4721_v49, 16  ;;  %v675_v43 = vshll.u32 %v4724_v42, 16 }
  0x4b   : > { %v4743_v12 = vcombine.low %v644_v58, %v654_v5  ;;  %v471_v24 = vrot.slane %v470_v18, 4  ;;  %v481_v40 = vrot.slane %v480_v63, 4  ;;  %v667_v8 = vrot.slane %v665_v60, 5 }
  0x4c   : > { %v662_v32 = vor.u32 %v661_v41, %v658_v37  ;;  %v671_v3 = vrot.slane %v669_v15, 4  ;;  %v677_v57 = vrot.slane %v675_v43, 5  ;;  %v488_v44 = vshrl.u32 %v4734_v55, 16  ;;  %v4758_v41 = vld [vmem:[%s4418_s26 + $0xb4] sm:$0xf] }
  0x4d   : > { %5941 = vst [vmem:[#allocation22_spill] sm:$0xff] %v4743_v12  ;;  %3998 = vmatmul.mubr.msk.bf16.gmra.mxu1 %vm991_vm3, %v4743_v12  ;;  %v476_v54 = vsel %vm4467_vm4, %v471_v24, %v475_v0  ;;  %v486_v5 = vsel %vm4467_vm4, %v481_v40, %v485_v2  ;;  %v491_v63 = vshll.u32 %v4734_v55, 16  ;;  %v497_v58 = vshll.u32 %v4741_v1, 16  ;;  %5942 = vst [vmem:[#allocation23_spill] sm:$0xff] %v4758_v41  ;;  %v4763_v15 = vld [vmem:[%s4418_s26 + $0xb8] sm:$0xf] }
  0x4e   : > { %v4760_v21 = vcombine.low %v476_v54, %v486_v5  ;;  %v663_v18 = vrot.slane %v662_v32, 4  ;;  %v672_v37 = vor.u32 %v671_v3, %v667_v8  ;;  %v490_v60 = vrot.slane %v488_v44, 4 }
  0x4f   : > { %v493_v43 = vrot.slane %v491_v63, 5  ;;  %v499_v12 = vrot.slane %v497_v58, 5  ;;  %v501_v0 = vshrl.u32 %v4741_v1, 16  ;;  %v507_v2 = vshll.u32 %v4746_v52, 16  ;;  %v4774_v63 = vld [vmem:[%s4418_s26 + $0xbc] sm:$0x1] }
  0x50   : > { %5943 = vst [vmem:[#allocation24_spill] sm:$0xff] %v4760_v21  ;;  %3985 = vmatprep.mubr.msk.bf16.mxu0 %vm991_vm3, %v4760_v21  ;;  %v668_v24 = vsel %vm4467_vm4, %v663_v18, %v667_v8  ;;  %v673_v40 = vrot.slane %v672_v37, 4  ;;  %v680_v32 = vshrl.u32 %v4758_v41, 16  ;;  %v683_v3 = vshll.u32 %v4758_v41, 16 }
  0x51   : > { %v494_v44 = vor.u32 %v493_v43, %v490_v60  ;;  %v503_v54 = vrot.slane %v501_v0, 4  ;;  %v509_v5 = vrot.slane %v507_v2, 5  ;;  %v689_v58 = vshll.u32 %v4763_v15, 16 }
  0x52   : > { %v678_v42 = vsel %vm4467_vm4, %v673_v40, %v677_v57  ;;  %v682_v51 = vrot.slane %v680_v32, 4  ;;  %v685_v21 = vrot.slane %v683_v3, 5  ;;  %v693_v49 = vshrl.u32 %v4763_v15, 16 }
  0x53   : > { %v4780_v8 = vcombine.low %v668_v24, %v678_v42  ;;  %v495_v18 = vrot.slane %v494_v44, 4  ;;  %v504_v37 = vor.u32 %v503_v54, %v499_v12  ;;  %v691_v26 = vrot.slane %v689_v58, 5 }
  0x54   : > { %v686_v41 = vor.u32 %v685_v21, %v682_v51  ;;  %v695_v60 = vrot.slane %v693_v49, 4  ;;  %v699_v43 = vshll.u32 %v4774_v63, 16  ;;  %v3435_v57 = vrot.slane %v4429_v9, 9 }
  0x55   : > { %4001 = vmatprep.mubr.msk.bf16.mxu1 %vm991_vm3, %v4780_v8  ;;  %v500_v42 = vsel %vm4467_vm4, %v495_v18, %v499_v12  ;;  %v505_v2 = vrot.slane %v504_v37, 4  ;;  %v756_v51 = vrot.slane %v4432_v10, 5  ;;  %v4797_v49 = vcombine.low %v4460_v33, %v4463_v34 }
  0x56   : > { %v687_v21 = vrot.slane %v686_v41, 4  ;;  %v696_v24 = vor.u32 %v695_v60, %v691_v26  ;;  %v701_v40 = vrot.slane %v699_v43, 5  ;;  %v3436_v32 = vrot.slane %v4460_v33, 9 }
  0x57   : > { %v510_v3 = vsel %vm4467_vm4, %v505_v2, %v509_v5  ;;  %v757_v44 = vsel %vm4785_vm7, %v3435_v57, %v756_v51  ;;  %v758_v54 = vrot.slane %v756_v51, 4  ;;  %v5946_v12 = vrot.slane %v4463_v34, 5 }
  0x58   : > { %v4806_v18 = vcombine.low %v500_v42, %v510_v3  ;;  %v692_v37 = vsel %vm4467_vm4, %v687_v21, %v691_v26  ;;  %v697_v41 = vrot.slane %v696_v24, 4  ;;  %v5948_v5 = vrot.slane %v4435_v11, 5 }
  0x59   : > { %v765_v58 = vrot.slane %v5946_v12, 4  ;;  %v5947_v60 = vmov %v5946_v12  ;;  %v5949_v57 = vrot.slane %v4474_v45, 5  ;;  %v4824_v2 = vcombine.low %v4503_v14, %v4512_v27 }
  0x5a   : > { %v764_v33 = vsel %vm4785_vm7, %v3436_v32, %v5947_v60  ;;  %v760_v43 = vsel %vm4785_vm7, %v758_v54, %v5948_v5  ;;  %v3437_v26 = vrot.slane %v4503_v14, 9  ;;  %3986 = vmatmul.mubr.msk.bf16.gmra.mxu0 %vm991_vm3, %v4806_v18  ;;  %v702_v11 = vsel %vm4467_vm4, %v697_v41, %v701_v40 }
  0x5b   : > { %v767_v42 = vsel %vm4785_vm7, %v765_v58, %v5949_v57  ;;  %v3518_v34 = vcombine.low %v757_v44, %v760_v43  ;;  %v770_v45 = vrot.slane %v4512_v27, 5  ;;  %v4834_v21 = vcombine.low %v692_v37, %v702_v11 }
  0x5c   : > { %v4831_v51 = vcombine.low %v764_v33, %v767_v42  ;;  %v773_v24 = vrot.slane %v4519_v31, 5  ;;  %v3586_v14 = vcombine.low %v4534_v47, %v4534_v47  ;;  %v777_v40 = vrot.slane %v4561_v23, 5  ;;  %v4873_v42 = vld [vmem:[%s5872_s1 + $0xc] sm:$0xf] }
  0x5d   : > { %5950 = vst [vmem:[#allocation25_spill] sm:$0xff] %v4834_v21  ;;  %4041 = vmatprep.mubr.msk.bf16.mxu0 %vm991_vm3, %v3518_v34  ;;  %v771_v32 = vsel %vm4785_vm7, %v3437_v26, %v770_v45  ;;  %v772_v3 = vrot.slane %v770_v45, 4  ;;  %4002 = vmatmul.mubr.msk.bf16.gmra.mxu1 %vm991_vm3, %v4834_v21  ;;  %v3438_v27 = vrot.slane %v4553_v13, 9  ;;  %v3439_v44 = vrot.slane %v4603_v17, 9 }
  0x5e   : > { %v784_v31 = vrot.slane %v4608_v28, 5  ;;  %v5951_v54 = vcombine.low %v4429_v9, %v4432_v10  ;;  %v779_v58 = vrot.slane %v777_v40, 4  ;;  %v780_v37 = vrot.slane %v4569_v36, 5 }
  0x5f   : > { %v774_v12 = vsel %vm4785_vm7, %v772_v3, %v773_v24  ;;  %v787_v41 = vrot.slane %v4619_v50, 5  ;;  %v4858_v5 = vrot.slane %v3586_v14, 2  ;;  %v1970_v43 = vsel %vm1040_vm0, %v4534_v47, 0 }
  0x60   : > { %4007 = vmatprep.mubr.msk.bf16.mxu1 %vm991_vm3, %v5951_v54  ;;  %v4856_v60 = vcombine.low %v771_v32, %v774_v12  ;;  %v786_v33 = vrot.slane %v784_v31, 4  ;;  %v791_v9 = vrot.slane %v4651_v6, 5  ;;  %v1768_v10 = vsel %vm1040_vm0, %v4423_v7, 0 }
  0x61   : > { %v778_v57 = vsel %vm4785_vm7, %v3438_v27, %v777_v40  ;;  %v785_v36 = vsel %vm4785_vm7, %v3439_v44, %v784_v31  ;;  %v798_v50 = vrot.slane %v4697_v59, 5  ;;  %v781_v47 = vsel %vm4785_vm7, %v779_v58, %v780_v37 }
  0x62   : > { %4042 = vmatmul.mubr.msk.bf16.vlgmr.msra.gmra.mxu0 %vm991_vm3, %v4831_v51  ;;  %v788_v7 = vsel %vm4785_vm7, %v786_v33, %v787_v41  ;;  %v3440_v26 = vrot.slane %v4646_v48, 9  ;;  %v794_v11 = vrot.slane %v4663_v22, 5  ;;  %v793_v34 = vrot.slane %v791_v9, 4 }
  0x63   : > { %4108 = vmatpush3.bf16.msra.mxu0 %v1970_v43  ;;  %4045 = vmatprep.mubr.msk.bf16.mxu0 %vm991_vm3, %v4856_v60  ;;  %v3441_v45 = vrot.slane %v4686_v25, 9  ;;  %v800_v24 = vrot.slane %v798_v50, 4  ;;  %v801_v14 = vrot.slane %v4705_v39, 5  ;;  %v4893_v22 = vcombine.low %v778_v57, %v781_v47 }
  0x64   : > { %4286 = vmatprep.subr.msk.bf16.mxu0 %vm1040_vm0, %v4873_v42  ;;  %v4895_v32 = vcombine.low %v785_v36, %v788_v7  ;;  %v792_v3 = vsel %vm4785_vm7, %v3440_v26, %v791_v9  ;;  %v795_v39 = vsel %vm4785_vm7, %v793_v34, %v794_v11  ;;  %v805_v44 = vrot.slane %v4741_v1, 5 }
  0x65   : > { %4008 = vmatmul.mubr.msk.bf16.vlgmr.msra.gmra.mxu1 %vm991_vm3, %v4797_v49  ;;  %v799_v40 = vsel %vm4785_vm7, %v3441_v45, %v798_v50  ;;  %v802_v27 = vsel %vm4785_vm7, %v800_v24, %v801_v14  ;;  %v815_v31 = vrot.slane %v4452_v20, 5  ;;  %v3442_v54 = vrot.slane %v4734_v55, 9  ;;  %v5952_v45 = vld [vmem:[#allocation16_spill] sm:$0xff] }
  0x66   : > { %4074 = vmatpush3.bf16.msra.mxu1 %v1768_v10  ;;  %4011 = vmatprep.mubr.msk.bf16.mxu1 %vm991_vm3, %v4824_v2  ;;  %v3443_v12 = vrot.slane %v4444_v16, 9  ;;  %v812_v58 = vrot.slane %v4449_v19, 5  ;;  %v4914_v37 = vcombine.low %v4553_v13, %v4561_v23  ;;  %v4918_v41 = vcombine.low %v4603_v17, %v4608_v28  ;;  %v5953_v14 = vld [vmem:[#allocation20_spill] sm:$0xff] }
  0x67   : > { %4285 = vmatprep.subr.msk.bf16.mxu1 %vm1040_vm0, %v4858_v5  ;;  %v4922_v33 = vcombine.low %v4646_v48, %v4651_v6  ;;  %v4926_v20 = vcombine.low %v4686_v25, %v4697_v59  ;;  %v4930_v43 = vcombine.low %v792_v3, %v795_v39  ;;  %v4932_v9 = vcombine.low %v799_v40, %v802_v27  ;;  %v5954_v3 = vld [vmem:[#allocation18_spill] sm:$0xff] }
  0x68   : > { %v808_v13 = vrot.slane %v4746_v52, 5  ;;  %v4937_v23 = vcombine.low %v4577_v46, %v4584_v53  ;;  %v807_v17 = vrot.slane %v805_v44, 4  ;;  %v3446_v28 = vrot.slane %v4577_v46, 9 }
  0x69   : > { %v833_v48 = vrot.slane %v4584_v53, 5  ;;  %v836_v6 = vrot.slane %v4594_v61, 5  ;;  %v806_v25 = vsel %vm4785_vm7, %v3442_v54, %v805_v44  ;;  %v813_v52 = vsel %vm4785_vm7, %v3443_v12, %v812_v58  ;;  %v5955_v44 = vld [vmem:[#allocation21_spill] sm:$0xff] }
  0x6a   : > { %4046 = vmatmul.mubr.msk.bf16.gmra.mxu0 %vm991_vm3, %v4893_v22  ;;  %v814_v59 = vrot.slane %v812_v58, 4  ;;  %v4950_v10 = vcombine.low %v4624_v56, %v4629_v4  ;;  %v3447_v61 = vrot.slane %v4624_v56, 9  ;;  %v840_v57 = vrot.slane %v4629_v4, 5 }
  0x6b   : > { %4049 = vmatprep.mubr.msk.bf16.mxu0 %vm991_vm3, %v4895_v32  ;;  %v834_v46 = vsel %vm4785_vm7, %v3446_v28, %v833_v48  ;;  %v835_v53 = vrot.slane %v833_v48, 4  ;;  %v819_v36 = vrot.slane %v4489_v62, 5  ;;  %v843_v50 = vrot.slane %v4641_v38, 5 }
  0x6c   : > { %v4964_v47 = vcombine.low %v4668_v30, %v4675_v29  ;;  %v3448_v7 = vrot.slane %v4668_v30, 9  ;;  %v809_v26 = vsel %vm4785_vm7, %v807_v17, %v808_v13  ;;  %v841_v4 = vsel %vm4785_vm7, %v3447_v61, %v840_v57  ;;  %v5956_v13 = vld [vmem:[#allocation23_spill] sm:$0xff]  ;;  %v5957_v61 = vld [vmem:[#allocation8_spill] sm:$0xff] }
  0x6d   : > { %4012 = vmatmul.mubr.msk.bf16.gmra.mxu1 %vm991_vm3, %v4914_v37  ;;  %v837_v56 = vsel %vm4785_vm7, %v835_v53, %v836_v6  ;;  %v842_v11 = vrot.slane %v840_v57, 4  ;;  %v847_v38 = vrot.slane %v4675_v29, 5  ;;  %v850_v24 = vrot.slane %v5952_v45, 5 }
  0x6e   : > { %4015 = vmatprep.mubr.msk.bf16.mxu1 %vm991_vm3, %v4918_v41  ;;  %v4973_v34 = vcombine.low %v834_v46, %v837_v56  ;;  %v4979_v39 = vcombine.low %v5954_v3, %v5953_v14  ;;  %v3449_v40 = vrot.slane %v5954_v3, 9  ;;  %v854_v27 = vrot.slane %v5953_v14, 5  ;;  %v5959_v14 = vld [vmem:[#allocation4_spill] sm:$0xff] }
  0x6f   : > { %v844_v30 = vsel %vm4785_vm7, %v842_v11, %v843_v50  ;;  %v857_v54 = vrot.slane %v5955_v44, 5  ;;  %v848_v29 = vsel %vm4785_vm7, %v3448_v7, %v847_v38  ;;  %v849_v58 = vrot.slane %v847_v38, 4 }
  0x70   : > { %v4988_v12 = vcombine.low %v841_v4, %v844_v30  ;;  %v4994_v17 = vcombine.low %v5956_v13, %v4763_v15  ;;  %v855_v28 = vsel %vm4785_vm7, %v3449_v40, %v854_v27  ;;  %v856_v48 = vrot.slane %v854_v27, 4  ;;  %v5960_v40 = vld [vmem:[#allocation6_spill] sm:$0xff] }
  0x71   : > { %v3450_v6 = vrot.slane %v5956_v13, 9  ;;  %v861_v46 = vrot.slane %v4763_v15, 5  ;;  %v816_v53 = vsel %vm4785_vm7, %v814_v59, %v815_v31  ;;  %v826_v57 = vrot.slane %v5957_v61, 5  ;;  %v5958_v59 = vld [vmem:[#allocation3_spill] sm:$0xff] }
  0x72   : > { %4050 = vmatmul.mubr.msk.bf16.gmra.mxu0 %vm991_vm3, %v4930_v43  ;;  %v851_v50 = vsel %vm4785_vm7, %v849_v58, %v850_v24  ;;  %v864_v7 = vrot.slane %v4774_v63, 5  ;;  %v858_v4 = vsel %vm4785_vm7, %v856_v48, %v857_v54  ;;  %v5018_v31 = vcombine.low %v806_v25, %v809_v26  ;;  %v5961_v54 = vld [vmem:[#allocation9_spill] sm:$0xff] }
  0x73   : > { %4053 = vmatprep.mubr.msk.bf16.mxu0 %vm991_vm3, %v4932_v9  ;;  %v5010_v56 = vcombine.low %v848_v29, %v851_v50  ;;  %v862_v15 = vsel %vm4785_vm7, %v3450_v6, %v861_v46  ;;  %v863_v11 = vrot.slane %v861_v46, 4  ;;  %v3444_v38 = vrot.slane %v5958_v59, 9  ;;  %v5097_v6 = vld [vmem:[%s4418_s26 + $0xc0] sm:$0xf]  ;;  %v312_v46 = vld [vmem:[%s4418_s26 + $0xc8] sm:$0x1] }
  0x74   : > { %v5021_v63 = vcombine.low %v855_v28, %v858_v4  ;;  %v5023_v45 = vcombine.low %v813_v52, %v816_v53  ;;  %v821_v24 = vrot.slane %v819_v36, 4  ;;  %v822_v3 = vrot.slane %v5959_v14, 5  ;;  %v5962_v4 = vld [vmem:[#allocation7_spill] sm:$0xff] }
  0x75   : > { %4016 = vmatmul.mubr.msk.bf16.gmra.mxu1 %vm991_vm3, %v4922_v33  ;;  %v865_v30 = vsel %vm4785_vm7, %v863_v11, %v864_v7  ;;  %v3445_v27 = vrot.slane %v5960_v40, 9  ;;  %v828_v44 = vrot.slane %v826_v57, 4  ;;  %v829_v29 = vrot.slane %v5961_v54, 5  ;;  %v5971_v54 = vld [vmem:[#allocation14_spill] sm:$0xff] }
  0x76   : > { %4019 = vmatprep.mubr.msk.bf16.mxu1 %vm991_vm3, %v4926_v20  ;;  %v5030_v58 = vcombine.low %v862_v15, %v865_v30  ;;  %v5034_v25 = vcombine.low %v4734_v55, %v4741_v1  ;;  %v5040_v52 = vcombine.low %v4444_v16, %v4449_v19  ;;  %v820_v26 = vsel %vm4785_vm7, %v3444_v38, %v819_v36  ;;  %v938_v38 = vld [vmem:[%s5872_s1 + $0x10] sm:$0x3]  ;;  %v5964_v30 = vld [vmem:[#allocation13_spill] sm:$0xff] }
  0x77   : > { %v823_v13 = vsel %vm4785_vm7, %v821_v24, %v822_v3  ;;  %v827_v55 = vsel %vm4785_vm7, %v3445_v27, %v826_v57  ;;  %v830_v1 = vsel %vm4785_vm7, %v828_v44, %v829_v29  ;;  %v5062_v36 = vcombine.low %v5958_v59, %v4489_v62  ;;  %v5091_v62 = vld [vmem:[%s4418_s26 + $0xc4] sm:$0xf]  ;;  %v5963_v24 = vld [vmem:[#allocation11_spill] sm:$0xff]  ;;  %v5970_v44 = vld [vmem:[#allocation12_spill] sm:$0xff] }
  0x78   : > { %v5056_v16 = vcombine.low %v820_v26, %v823_v13  ;;  %v5058_v19 = vcombine.low %v827_v55, %v830_v1  ;;  %v5068_v28 = vcombine.low %v5960_v40, %v5957_v61  ;;  %v895_v48 = vrot.slane %v5091_v62, 5  ;;  %v5968_v40 = vld [vmem:[#allocation5_spill] sm:$0xff]  ;;  %v5969_v27 = vld [vmem:[#allocation10_spill] sm:$0xff] }
  0x79   : > { %v3451_v53 = vrot.slane %v5097_v6, 9  ;;  %v898_v57 = vrot.slane %v312_v46, 5  ;;  %v3621_v11 = vcombine.low %v4873_v42, %v4873_v42  ;;  %v2378_v59 = vsel %vm1040_vm0, %v4873_v42, 0  ;;  %v5967_v42 = vld [vmem:[#allocation24_spill] sm:$0xff] }
  0x7a   : > { %4054 = vmatmul.mubr.msk.bf16.gmra.mxu0 %vm991_vm3, %v5018_v31  ;;  %v897_v61 = vrot.slane %v895_v48, 4  ;;  %v2176_v14 = vsel %vm1040_vm0, %v4858_v5, 0  ;;  %v5966_v5 = vld [vmem:[#allocation19_spill] sm:$0xff]  ;;  %v867_v29 = vshrl.u32 %v5097_v6, 16  ;;  %v870_v26 = vshll.u32 %v5097_v6, 16 }
  0x7b   : > { %4057 = vmatprep.mubr.msk.bf16.mxu0 %vm991_vm3, %v5023_v45  ;;  %v896_v50 = vsel %vm4785_vm7, %v3451_v53, %v895_v48  ;;  %v2579_v3 = vrot.slane %v3621_v11, 2  ;;  %v880_v13 = vshrl.u32 %v5091_v62, 16  ;;  %v876_v55 = vshll.u32 %v5091_v62, 16 }
  0x7c   : > { %v899_v7 = vsel %vm4785_vm7, %v897_v61, %v898_v57  ;;  %v869_v1 = vrot.slane %v867_v29, 4  ;;  %v872_v48 = vrot.slane %v870_v26, 5  ;;  %v5972_v57 = vld [vmem:[#allocation17_spill] sm:$0xff]  ;;  %v886_v11 = vshll.u32 %v312_v46, 16 }
  0x7d   : > { %4020 = vmatmul.mubr.msk.bf16.gmra.mxu1 %vm991_vm3, %v5034_v25  ;;  %v5109_v15 = vcombine.low %v896_v50, %v899_v7  ;;  %v878_v53 = vrot.slane %v876_v55, 5  ;;  %v882_v61 = vrot.slane %v880_v13, 4  ;;  %v5973_v50 = vld [vmem:[#allocation22_spill] sm:$0xff]  ;;  %v3550_v55 = vcombine.low %v5097_v6, %v5091_v62 }
  0x7e   : > { %4023 = vmatprep.mubr.msk.bf16.mxu1 %vm991_vm3, %v5040_v52  ;;  %v873_v7 = vor.u32 %v872_v48, %v869_v1  ;;  %v888_v29 = vrot.slane %v886_v11, 5  ;;  %v2786_v1 = vsel %vm1040_vm0, %v938_v38, 0  ;;  %v2584_v48 = vsel %vm1040_vm0, %v2579_v3, 0  ;;  %v5300_v11 = vld [vmem:[%s4418_s26 + $0xd0] sm:$0xf] }
  0x82   : > { %4058 = vmatmul.mubr.msk.bf16.gmra.mxu0 %vm991_vm3, %v5056_v16 }
  0x83   : > { %4061 = vmatprep.mubr.msk.bf16.mxu0 %vm991_vm3, %v5058_v19 }
  0x85   : > { %4024 = vmatmul.mubr.msk.bf16.gmra.mxu1 %vm991_vm3, %v5062_v36 }
  0x86   : > { %4027 = vmatprep.mubr.msk.bf16.mxu1 %vm991_vm3, %v5068_v28 }
  0x8a   : > { %4062 = vmatmul.mubr.msk.bf16.gmra.mxu0 %vm991_vm3, %v4973_v34 }
  0x8b   : > { %4065 = vmatprep.mubr.msk.bf16.mxu0 %vm991_vm3, %v4988_v12 }
  0x8d   : > { %4028 = vmatmul.mubr.msk.bf16.gmra.mxu1 %vm991_vm3, %v4937_v23 }
  0x8e   : > { %4031 = vmatprep.mubr.msk.bf16.mxu1 %vm991_vm3, %v4950_v10 }
  0x92   : > { %4066 = vmatmul.mubr.msk.bf16.gmra.mxu0 %vm991_vm3, %v5010_v56 }
  0x93   : > { %4069 = vmatprep.mubr.msk.bf16.mxu0 %vm991_vm3, %v5021_v63 }
  0x95   : > { %4032 = vmatmul.mubr.msk.bf16.gmra.mxu1 %vm991_vm3, %v4964_v47 }
  0x96   : > { %4035 = vmatprep.mubr.msk.bf16.mxu1 %vm991_vm3, %v4979_v39 }
  0x9a   : > { %4070 = vmatmul.mubr.msk.bf16.gmra.mxu0 %vm991_vm3, %v5030_v58 }
  0x9b   : > { %4109 = vmatprep.mubr.msk.bf16.mxu0 %vm991_vm3, %v5962_v4  ;;  %v883_v4 = vor.u32 %v882_v61, %v878_v53 }
  0x9d   : > { %4036 = vmatmul.mubr.msk.bf16.gmra.mxu1 %vm991_vm3, %v4994_v17 }
  0x9e   : > { %4075 = vmatprep.mubr.msk.bf16.mxu1 %vm991_vm3, %v4797_v49  ;;  %v5965_v49 = vld [vmem:[#allocation15_spill] sm:$0xff] }
  0xa2   : > { %4110 = vmatmul.mubr.msk.bf16.vlgmr.msra.gmra.mxu0 %vm991_vm3, %v5963_v24 }
  0xa3   : > { %4176 = vmatpush3.bf16.msra.mxu0 %v2378_v59  ;;  %4113 = vmatprep.mubr.msk.bf16.mxu0 %vm991_vm3, %v5964_v30  ;;  %v874_v59 = vrot.slane %v873_v7, 4 }
  0xa4   : > { %4288 = vmatprep.subr.msk.bf16.mxu0 %vm1040_vm0, %v938_v38 }
  0xa5   : > { %4076 = vmatmul.mubr.msk.bf16.vlgmr.msra.gmra.mxu1 %vm991_vm3, %v4824_v2  ;;  %v879_v26 = vsel %vm4467_vm4, %v874_v59, %v878_v53 }
  0xa6   : > { %4142 = vmatpush3.bf16.msra.mxu1 %v2176_v14  ;;  %4079 = vmatprep.mubr.msk.bf16.mxu1 %vm991_vm3, %v4914_v37  ;;  %v884_v14 = vrot.slane %v883_v4, 4 }
  0xa7   : > { %4287 = vmatprep.subr.msk.bf16.mxu1 %vm1040_vm0, %v2579_v3 }
  0xa8   : > { %v889_v46 = vsel %vm4467_vm4, %v884_v14, %v888_v29 }
  0xa9   : > { %v5190_v13 = vcombine.low %v879_v26, %v889_v46 }
  0xaa   : > { %4114 = vmatmul.mubr.msk.bf16.gmra.mxu0 %vm991_vm3, %v5965_v49 }
  0xab   : > { %4117 = vmatprep.mubr.msk.bf16.mxu0 %vm991_vm3, %v5966_v5  ;;  %5974 = vst [vmem:[#allocation16_spill] sm:$0xff] %v5190_v13 }
  0xad   : > { %4080 = vmatmul.mubr.msk.bf16.gmra.mxu1 %vm991_vm3, %v4918_v41 }
  0xae   : > { %4083 = vmatprep.mubr.msk.bf16.mxu1 %vm991_vm3, %v4922_v33 }
  0xb2   : > { %4118 = vmatmul.mubr.msk.bf16.gmra.mxu0 %vm991_vm3, %v5967_v42 }
  0xb3   : > { %4121 = vmatprep.mubr.msk.bf16.mxu0 %vm991_vm3, %v4806_v18 }
  0xb5   : > { %4084 = vmatmul.mubr.msk.bf16.gmra.mxu1 %vm991_vm3, %v4926_v20 }
  0xb6   : > { %4087 = vmatprep.mubr.msk.bf16.mxu1 %vm991_vm3, %v5034_v25 }
  0xba   : > { %4122 = vmatmul.mubr.msk.bf16.gmra.mxu0 %vm991_vm3, %v5968_v40 }
  0xbb   : > { %4125 = vmatprep.mubr.msk.bf16.mxu0 %vm991_vm3, %v5969_v27 }
  0xbd   : > { %4088 = vmatmul.mubr.msk.bf16.gmra.mxu1 %vm991_vm3, %v5040_v52 }
  0xbe   : > { %4091 = vmatprep.mubr.msk.bf16.mxu1 %vm991_vm3, %v5062_v36 }
  0xc2   : > { %4126 = vmatmul.mubr.msk.bf16.gmra.mxu0 %vm991_vm3, %v5970_v44 }
  0xc3   : > { %4129 = vmatprep.mubr.msk.bf16.mxu0 %vm991_vm3, %v5971_v54 }
  0xc5   : > { %4092 = vmatmul.mubr.msk.bf16.gmra.mxu1 %vm991_vm3, %v5068_v28 }
  0xc6   : > { %4095 = vmatprep.mubr.msk.bf16.mxu1 %vm991_vm3, %v4937_v23 }
  0xca   : > { %4130 = vmatmul.mubr.msk.bf16.gmra.mxu0 %vm991_vm3, %v5972_v57 }
  0xcb   : > { %4133 = vmatprep.mubr.msk.bf16.mxu0 %vm991_vm3, %v5973_v50 }
  0xcd   : > { %4096 = vmatmul.mubr.msk.bf16.gmra.mxu1 %vm991_vm3, %v4950_v10 }
  0xce   : > { %4099 = vmatprep.mubr.msk.bf16.mxu1 %vm991_vm3, %v4964_v47 }
  0xd2   : > { %4134 = vmatmul.mubr.msk.bf16.gmra.mxu0 %vm991_vm3, %v4780_v8 }
  0xd3   : > { %4137 = vmatprep.mubr.msk.bf16.mxu0 %vm991_vm3, %v4834_v21 }
  0xd5   : > { %4100 = vmatmul.mubr.msk.bf16.gmra.mxu1 %vm991_vm3, %v4979_v39 }
  0xd6   : > { %4103 = vmatprep.mubr.msk.bf16.mxu1 %vm991_vm3, %v4994_v17 }
  0xda   : > { %4138 = vmatmul.mubr.msk.bf16.gmra.mxu0 %vm991_vm3, %v5190_v13 }
  0xdb   : > { %4177 = vmatprep.mubr.msk.bf16.mxu0 %vm991_vm3, %v4824_v2 }
  0xdd   : > { %4104 = vmatmul.mubr.msk.bf16.gmra.mxu1 %vm991_vm3, %v3550_v55 }
  0xde   : > { %4143 = vmatprep.mubr.msk.bf16.mxu1 %vm991_vm3, %v4831_v51 }
  0xe2   : > { %4178 = vmatmul.mubr.msk.bf16.vlgmr.msra.gmra.mxu0 %vm991_vm3, %v4914_v37 }
  0xe3   : > { %4244 = vmatpush3.bf16.msra.mxu0 %v2786_v1  ;;  %4181 = vmatprep.mubr.msk.bf16.mxu0 %vm991_vm3, %v4918_v41 }
  0xe5   : > { %4144 = vmatmul.mubr.msk.bf16.vlgmr.msra.gmra.mxu1 %vm991_vm3, %v4856_v60 }
  0xe6   : > { %4210 = vmatpush3.bf16.msra.mxu1 %v2584_v48  ;;  %4147 = vmatprep.mubr.msk.bf16.mxu1 %vm991_vm3, %v4893_v22  ;;  %v5213_v2 = vpop.f32.mrf.mxu0 }
  0xe8   : > { %v5223_v37 = vpop.f32.mrf.mxu0 }
  0xea   : > { %4182 = vmatmul.mubr.msk.bf16.gmra.mxu0 %vm991_vm3, %v4922_v33  ;;  %v5229_v33 = vpop.f32.mrf.mxu0 }
  0xeb   : > { %4185 = vmatprep.mubr.msk.bf16.mxu0 %vm991_vm3, %v4926_v20  ;;  %v5219_v51 = vpop.f32.mrf.mxu1 }
  0xec   : > { %v5239_v62 = vpop.f32.mrf.mxu0 }
  0xed   : > { %4148 = vmatmul.mubr.msk.bf16.gmra.mxu1 %vm991_vm3, %v4895_v32  ;;  %v5225_v41 = vpop.f32.mrf.mxu1 }
  0xee   : > { %4151 = vmatprep.mubr.msk.bf16.mxu1 %vm991_vm3, %v4930_v43 }
  0xef   : > { %v5235_v20 = vpop.f32.mrf.mxu1 }
  0xf1   : > { %v5241_v6 = vpop.f32.mrf.mxu1 }
  0xf2   : > { %4186 = vmatmul.mubr.msk.bf16.gmra.mxu0 %vm991_vm3, %v5034_v25 }
  0xf3   : > { %4189 = vmatprep.mubr.msk.bf16.mxu0 %vm991_vm3, %v5040_v52 }
  0xf5   : > { %4152 = vmatmul.mubr.msk.bf16.gmra.mxu1 %vm991_vm3, %v4932_v9 }
  0xf6   : > { %4155 = vmatprep.mubr.msk.bf16.mxu1 %vm991_vm3, %v5018_v31 }
  0xf7   : > { %v5245_v25 = vpop.f32.mrf.mxu0 }
  0xf9   : > { %v5255_v38 = vpop.f32.mrf.mxu0 }
  0xfa   : > { %4190 = vmatmul.mubr.msk.bf16.gmra.mxu0 %vm991_vm3, %v5062_v36 }
  0xfb   : > { %4193 = vmatprep.mubr.msk.bf16.mxu0 %vm991_vm3, %v5068_v28  ;;  %v5251_v52 = vpop.f32.mrf.mxu1  ;;  %v5261_v36 = vpop.f32.mrf.mxu0 }
  0xfd   : > { %4156 = vmatmul.mubr.msk.bf16.gmra.mxu1 %vm991_vm3, %v5023_v45  ;;  %v5257_v3 = vpop.f32.mrf.mxu1  ;;  %v5271_v53 = vpop.f32.mrf.mxu0 }
  0xfe   : > { %4159 = vmatprep.mubr.msk.bf16.mxu1 %vm991_vm3, %v5056_v16 }
  0xff   : > { %v5267_v28 = vpop.f32.mrf.mxu1 }
 0x101   : > { %v5273_v61 = vpop.f32.mrf.mxu1 }
 0x102   : > { %4194 = vmatmul.mubr.msk.bf16.gmra.mxu0 %vm991_vm3, %v4937_v23 }
 0x103   : > { %4197 = vmatprep.mubr.msk.bf16.mxu0 %vm991_vm3, %v4950_v10 }
 0x105   : > { %4160 = vmatmul.mubr.msk.bf16.gmra.mxu1 %vm991_vm3, %v5058_v19 }
 0x106   : > { %4163 = vmatprep.mubr.msk.bf16.mxu1 %vm991_vm3, %v4973_v34 }
 0x108   : > { %v5277_v23 = vpop.f32.mrf.mxu0 }
 0x10a   : > { %4198 = vmatmul.mubr.msk.bf16.gmra.mxu0 %vm991_vm3, %v4964_v47  ;;  %v5287_v7 = vpop.f32.mrf.mxu0 }
 0x10b   : > { %4201 = vmatprep.mubr.msk.bf16.mxu0 %vm991_vm3, %v4979_v39  ;;  %v5297_v39 = vld [vmem:[%s4418_s26 + $0xcc] sm:$0xf] }
 0x10c   : > { %v5293_v47 = vpop.f32.mrf.mxu0 }
 0x10d   : > { %4164 = vmatmul.mubr.msk.bf16.gmra.mxu1 %vm991_vm3, %v4988_v12  ;;  %v5283_v10 = vpop.f32.mrf.mxu1 }
 0x10e   : > { %5975 = vst [vmem:[#allocation20_spill] sm:$0xff] %v5283_v10  ;;  %4167 = vmatprep.mubr.msk.bf16.mxu1 %vm991_vm3, %v5010_v56  ;;  %v5306_v14 = vpop.f32.mrf.mxu0 }
 0x10f   : > { %v5289_v4 = vpop.f32.mrf.mxu1 }
 0x110   : > { %5976 = vst [vmem:[#allocation18_spill] sm:$0xff] %v5289_v4 }
 0x111   : > { %v5304_v59 = vpop.f32.mrf.mxu1 }
 0x112   : > { %4202 = vmatmul.mubr.msk.bf16.gmra.mxu0 %vm991_vm3, %v4994_v17  ;;  %5977 = vst [vmem:[#allocation21_spill] sm:$0xff] %v5304_v59  ;;  %v3603_v17 = vcombine.low %v5297_v39, %v5300_v11 }
 0x113   : > { %4205 = vmatprep.mubr.msk.bf16.mxu0 %vm991_vm3, %v3550_v55  ;;  %v5312_v29 = vpop.f32.mrf.mxu1 }
 0x114   : > { %5978 = vst [vmem:[#allocation23_spill] sm:$0xff] %v5312_v29 }
 0x115   : > { %4168 = vmatmul.mubr.msk.bf16.gmra.mxu1 %vm991_vm3, %v5021_v63 }
 0x116   : > { %4171 = vmatprep.mubr.msk.bf16.mxu1 %vm991_vm3, %v5030_v58 }
 0x11a   : > { %v5314_v26 = vpop.f32.mrf.mxu0  ;;  %4206 = vmatmul.mubr.msk.bf16.gmra.mxu0 %vm991_vm3, %v3603_v17 }
 0x11b   : > { %4245 = vmatprep.mubr.msk.bf16.mxu0 %vm991_vm3, %v4856_v60 }
 0x11c   : > { %v5319_v46 = vpop.f32.mrf.mxu0 }
 0x11d   : > { %v5321_v55 = vpop.f32.mrf.mxu1  ;;  %4172 = vmatmul.mubr.msk.bf16.gmra.mxu1 %vm991_vm3, %v5109_v15 }
 0x11e   : > { %5979 = vst [vmem:[#allocation8_spill] sm:$0xff] %v5321_v55  ;;  %v5325_v1 = vpop.f32.mrf.mxu0  ;;  %4211 = vmatprep.mubr.msk.bf16.mxu1 %vm991_vm3, %v5963_v24 }
 0x11f   : > { %v5329_v48 = vpop.f32.mrf.mxu1 }
 0x120   : > { %5980 = vst [vmem:[#allocation3_spill] sm:$0xff] %v5329_v48  ;;  %v5331_v29 = vpop.f32.mrf.mxu0 }
 0x121   : > { %v5333_v17 = vpop.f32.mrf.mxu1 }
 0x122   : > { %5981 = vst [vmem:[#allocation4_spill] sm:$0xff] %v5333_v17  ;;  %v4043_v59 = vpop.f32.mrf.mxu0  ;;  %4246 = vmatmul.mubr.msk.bf16.vlgmr.msra.gmra.mxu0 %vm991_vm3, %v4893_v22 }
 0x123   : > { %v5337_v60 = vpop.f32.mrf.mxu1  ;;  %4249 = vmatprep.mubr.msk.bf16.mxu0 %vm991_vm3, %v4895_v32 }
 0x124   : > { %5982 = vst [vmem:[#allocation6_spill] sm:$0xff] %v5337_v60  ;;  %v1598_v55 = vpop.f32.mrf.mxu0 }
 0x125   : > { %v4009_v4 = vpop.f32.mrf.mxu1  ;;  %4212 = vmatmul.mubr.msk.bf16.vlgmr.msra.gmra.mxu1 %vm991_vm3, %v5964_v30 }
 0x126   : > { %v1347_v24 = vadd.f32 %v4009_v4, %v5213_v2  ;;  %v4044_v48 = vpop.f32.mrf.mxu0  ;;  %4215 = vmatprep.mubr.msk.bf16.mxu1 %vm991_vm3, %v5965_v49 }
 0x127   : > { %v1338_v17 = vpop.f32.mrf.mxu1 }
 0x128   : > { %v5346_v13 = vadd.f32 %v4043_v59, %v1347_v24  ;;  %v1339_v22 = vadd.f32 %v1338_v17, %v5223_v37  ;;  %v1601_v60 = vpop.f32.mrf.mxu0 }
 0x129   : > { %v4010_v10 = vpop.f32.mrf.mxu1 }
 0x12a   : > { %v5349_v35 = vadd.f32 %v1598_v55, %v1339_v22  ;;  %v1350_v32 = vadd.f32 %v4010_v10, %v5229_v33  ;;  %v4047_v21 = vpop.f32.mrf.mxu0  ;;  %4250 = vmatmul.mubr.msk.bf16.gmra.mxu0 %vm991_vm3, %v4930_v43 }
 0x12b   : > { %v1341_v30 = vpop.f32.mrf.mxu1  ;;  %4253 = vmatprep.mubr.msk.bf16.mxu0 %vm991_vm3, %v4932_v9 }
 0x12c   : > { %v5356_v49 = vadd.f32 %v4044_v48, %v1350_v32  ;;  %v1342_v2 = vadd.f32 %v1341_v30, %v5239_v62  ;;  %v1614_v4 = vpop.f32.mrf.mxu0 }
 0x12d   : > { %v4013_v37 = vpop.f32.mrf.mxu1  ;;  %4216 = vmatmul.mubr.msk.bf16.gmra.mxu1 %vm991_vm3, %v5966_v5 }
 0x12e   : > { %v5361_v59 = vadd.f32 %v1601_v60, %v1342_v2  ;;  %v1363_v33 = vadd.f32 %v4013_v37, %v5245_v25  ;;  %v4048_v10 = vpop.f32.mrf.mxu0  ;;  %4219 = vmatprep.mubr.msk.bf16.mxu1 %vm991_vm3, %v5967_v42 }
 0x12f   : > { %v1354_v43 = vpop.f32.mrf.mxu1 }
 0x130   : > { %v5366_v55 = vadd.f32 %v4047_v21, %v1363_v33  ;;  %v1355_v9 = vadd.f32 %v1354_v43, %v5255_v38  ;;  %v1617_v48 = vpop.f32.mrf.mxu0 }
 0x131   : > { %v4014_v62 = vpop.f32.mrf.mxu1 }
 0x132   : > { %v5369_v17 = vadd.f32 %v1614_v4, %v1355_v9  ;;  %v1366_v24 = vadd.f32 %v4014_v62, %v5261_v36  ;;  %v4051_v5 = vpop.f32.mrf.mxu0  ;;  %4254 = vmatmul.mubr.msk.bf16.gmra.mxu0 %vm991_vm3, %v5018_v31 }
 0x133   : > { %v1357_v25 = vpop.f32.mrf.mxu1  ;;  %4257 = vmatprep.mubr.msk.bf16.mxu0 %vm991_vm3, %v5023_v45 }
 0x134   : > { %v5376_v42 = vadd.f32 %v4048_v10, %v1366_v24  ;;  %v1358_v21 = vadd.f32 %v1357_v25, %v5271_v53  ;;  %v1630_v60 = vpop.f32.mrf.mxu0 }
 0x135   : > { %v4017_v38 = vpop.f32.mrf.mxu1  ;;  %4220 = vmatmul.mubr.msk.bf16.gmra.mxu1 %vm991_vm3, %v4806_v18 }
 0x136   : > { %v5381_v22 = vadd.f32 %v1617_v48, %v1358_v21  ;;  %v1379_v36 = vadd.f32 %v4017_v38, %v5277_v23  ;;  %v4052_v32 = vpop.f32.mrf.mxu0  ;;  %4223 = vmatprep.mubr.msk.bf16.mxu1 %vm991_vm3, %v5968_v40 }
 0x137   : > { %v1370_v31 = vpop.f32.mrf.mxu1 }
 0x138   : > { %v5386_v30 = vadd.f32 %v4051_v5, %v1379_v36  ;;  %v1371_v45 = vadd.f32 %v1370_v31, %v5287_v7  ;;  %v1633_v2 = vpop.f32.mrf.mxu0 }
 0x139   : > { %v4018_v53 = vpop.f32.mrf.mxu1 }
 0x13a   : > { %v5389_v4 = vadd.f32 %v1630_v60, %v1371_v45  ;;  %v1382_v37 = vadd.f32 %v4018_v53, %v5293_v47  ;;  %v4055_v18 = vpop.f32.mrf.mxu0  ;;  %4258 = vmatmul.mubr.msk.bf16.gmra.mxu0 %vm991_vm3, %v5056_v16  ;;  %v904_v60 = vshll.u32 %v5297_v39, 16 }
 0x13b   : > { %v1373_v23 = vpop.f32.mrf.mxu1  ;;  %4261 = vmatprep.mubr.msk.bf16.mxu0 %vm991_vm3, %v5058_v19 }
 0x13c   : > { %v5396_v40 = vadd.f32 %v4052_v32, %v1382_v37  ;;  %v1374_v33 = vadd.f32 %v1373_v23, %v5306_v14  ;;  %v1646_v10 = vpop.f32.mrf.mxu0  ;;  %v906_v53 = vrot.slane %v904_v60, 5 }
 0x13d   : > { %v4021_v7 = vpop.f32.mrf.mxu1  ;;  %4224 = vmatmul.mubr.msk.bf16.gmra.mxu1 %vm991_vm3, %v5969_v27 }
 0x13e   : > { %v5401_v43 = vadd.f32 %v1633_v2, %v1374_v33  ;;  %v1395_v47 = vadd.f32 %v4021_v7, %v5314_v26  ;;  %v4056_v9 = vpop.f32.mrf.mxu0  ;;  %4227 = vmatprep.mubr.msk.bf16.mxu1 %vm991_vm3, %v5970_v44 }
 0x13f   : > { %v1386_v16 = vpop.f32.mrf.mxu1 }
 0x140   : > { %v5406_v48 = vadd.f32 %v4055_v18, %v1395_v47  ;;  %v1387_v19 = vadd.f32 %v1386_v16, %v5319_v46  ;;  %v1649_v62 = vpop.f32.mrf.mxu0  ;;  %v901_v46 = vshrl.u32 %v5297_v39, 16 }
 0x141   : > { %v4022_v14 = vpop.f32.mrf.mxu1 }
 0x142   : > { %v5409_v24 = vadd.f32 %v1646_v10, %v1387_v19  ;;  %v1398_v5 = vadd.f32 %v4022_v14, %v5325_v1  ;;  %v4059_v27 = vpop.f32.mrf.mxu0  ;;  %4262 = vmatmul.mubr.msk.bf16.gmra.mxu0 %vm991_vm3, %v4973_v34  ;;  %v910_v1 = vshll.u32 %v5300_v11, 16  ;;  %v914_v34 = vshrl.u32 %v5300_v11, 16 }
 0x143   : > { %v1389_v26 = vpop.f32.mrf.mxu1  ;;  %4265 = vmatprep.mubr.msk.bf16.mxu0 %vm991_vm3, %v4988_v12 }
 0x144   : > { %v5416_v44 = vadd.f32 %v4056_v9, %v1398_v5  ;;  %v1390_v25 = vadd.f32 %v1389_v26, %v5331_v29  ;;  %v1662_v21 = vpop.f32.mrf.mxu0  ;;  %v912_v18 = vrot.slane %v910_v1, 5  ;;  %v916_v23 = vrot.slane %v914_v34, 4 }
 0x145   : > { %v4025_v38 = vpop.f32.mrf.mxu1  ;;  %4228 = vmatmul.mubr.msk.bf16.gmra.mxu1 %vm991_vm3, %v5971_v54  ;;  %v903_v54 = vrot.slane %v901_v46, 4  ;;  %v3452_v5 = vrot.slane %v5297_v39, 9 }
 0x146   : > { %v5425_v36 = vadd.f32 %v1649_v62, %v1390_v25  ;;  %v1411_v12 = vadd.f32 %v4025_v38, %v5219_v51  ;;  %v4060_v32 = vpop.f32.mrf.mxu0  ;;  %4231 = vmatprep.mubr.msk.bf16.mxu1 %vm991_vm3, %v5972_v57  ;;  %v929_v57 = vrot.slane %v5300_v11, 5 }
 0x147   : > { %v1402_v29 = vpop.f32.mrf.mxu1 }
 0x148   : > { %v5430_v31 = vadd.f32 %v4059_v27, %v1411_v12  ;;  %v1403_v45 = vadd.f32 %v1402_v29, %v5225_v41  ;;  %v1665_v2 = vpop.f32.mrf.mxu0  ;;  %v315_v41 = vld [vmem:[%s4418_s26 + $0xd4] sm:$0x1] }
 0x149   : > { %v4026_v37 = vpop.f32.mrf.mxu1  ;;  %v920_v14 = vshll.u32 %v315_v41, 16  ;;  %v932_v26 = vrot.slane %v315_v41, 5 }
 0x14a   : > { %v5433_v33 = vadd.f32 %v1662_v21, %v1403_v45  ;;  %v1414_v51 = vadd.f32 %v4026_v37, %v5235_v20  ;;  %v4063_v10 = vpop.f32.mrf.mxu0  ;;  %4266 = vmatmul.mubr.msk.bf16.gmra.mxu0 %vm991_vm3, %v5010_v56  ;;  %v907_v20 = vor.u32 %v906_v53, %v903_v54 }
 0x14b   : > { %v1405_v7 = vpop.f32.mrf.mxu1  ;;  %4269 = vmatprep.mubr.msk.bf16.mxu0 %vm991_vm3, %v5021_v63  ;;  %v917_v63 = vor.u32 %v916_v23, %v912_v18  ;;  %v922_v39 = vrot.slane %v920_v14, 5 }
 0x14c   : > { %v5442_v47 = vadd.f32 %v4060_v32, %v1414_v51  ;;  %v1406_v9 = vadd.f32 %v1405_v7, %v5241_v6  ;;  %v1678_v16 = vpop.f32.mrf.mxu0  ;;  %v931_v6 = vrot.slane %v929_v57, 4  ;;  %v908_v60 = vrot.slane %v907_v20, 4  ;;  %v5986_v51 = vld [vmem:[#allocation16_spill] sm:$0xff]  ;;  %v5987_v7 = vld [vmem:[#allocation18_spill] sm:$0xff]  ;;  %v5988_v20 = vld [vmem:[#allocation21_spill] sm:$0xff] }
 0x14d   : > { %v4029_v19 = vpop.f32.mrf.mxu1  ;;  %4232 = vmatmul.mubr.msk.bf16.gmra.mxu1 %vm991_vm3, %v5973_v50 }
 0x14e   : > { %v5447_v62 = vadd.f32 %v1665_v2, %v1406_v9  ;;  %v1427_v56 = vadd.f32 %v4029_v19, %v5251_v52  ;;  %v4064_v11 = vpop.f32.mrf.mxu0  ;;  %4235 = vmatprep.mubr.msk.bf16.mxu1 %vm991_vm3, %v4780_v8  ;;  %v918_v8 = vrot.slane %v917_v63, 4  ;;  %v933_v12 = vsel %vm4785_vm7, %v931_v6, %v932_v26  ;;  %v5983_v2 = vld [vmem:[#allocation25_spill] sm:$0xff] }
 0x14f   : > { %v1418_v27 = vpop.f32.mrf.mxu1  ;;  %v913_v54 = vsel %vm4467_vm4, %v908_v60, %v912_v18 }
 0x150   : > { %v5453_v25 = vadd.f32 %v4063_v10, %v1427_v56  ;;  %v1419_v50 = vadd.f32 %v1418_v27, %v5257_v3  ;;  %v1681_v21 = vpop.f32.mrf.mxu0  ;;  %v930_v3 = vsel %vm4785_vm7, %v3452_v5, %v929_v57  ;;  %v923_v0 = vsel %vm4467_vm4, %v918_v8, %v922_v39  ;;  %v5989_v5 = vld [vmem:[#allocation23_spill] sm:$0xff] }
 0x151   : > { %v4030_v46 = vpop.f32.mrf.mxu1  ;;  %v3620_v18 = vcombine.low %v913_v54, %v923_v0  ;;  %v5991_v8 = vld [vmem:[#allocation3_spill] sm:$0xff]  ;;  %v5993_v54 = vld [vmem:[#allocation6_spill] sm:$0xff] }
 0x152   : > { %v5456_v38 = vadd.f32 %v1678_v16, %v1419_v50  ;;  %v1430_v52 = vadd.f32 %v4030_v46, %v5267_v28  ;;  %v4067_v1 = vpop.f32.mrf.mxu0  ;;  %4270 = vmatmul.mubr.msk.bf16.gmra.mxu0 %vm991_vm3, %v5030_v58 }
 0x153   : > { %v1421_v34 = vpop.f32.mrf.mxu1  ;;  %4273 = vmatprep.mubr.msk.bf16.mxu0 %vm991_vm3, %v5109_v15  ;;  %v5985_v15 = vld [vmem:[#allocation20_spill] sm:$0xff] }
 0x154   : > { %v5467_v32 = vadd.f32 %v4064_v11, %v1430_v52  ;;  %v1422_v28 = vadd.f32 %v1421_v34, %v5273_v61  ;;  %v1694_v29 = vpop.f32.mrf.mxu0  ;;  %v3638_v61 = vcombine.low %v930_v3, %v933_v12 }
 0x155   : > { %v4033_v45 = vpop.f32.mrf.mxu1  ;;  %4236 = vmatmul.mubr.msk.bf16.gmra.mxu1 %vm991_vm3, %v5983_v2 }
 0x156   : > { %v5474_v53 = vadd.f32 %v1681_v21, %v1422_v28  ;;  %v1443_v37 = vadd.f32 %v4033_v45, %v5985_v15  ;;  %v4068_v23 = vpop.f32.mrf.mxu0  ;;  %4239 = vmatprep.mubr.msk.bf16.mxu1 %vm991_vm3, %v5986_v51  ;;  %v5990_v21 = vld [vmem:[#allocation8_spill] sm:$0xff] }
 0x157   : > { %v1434_v10 = vpop.f32.mrf.mxu1  ;;  %v5992_v28 = vld [vmem:[#allocation4_spill] sm:$0xff] }
 0x158   : > { %v5481_v57 = vadd.f32 %v4067_v1, %v1443_v37  ;;  %v1435_v41 = vadd.f32 %v1434_v10, %v5987_v7  ;;  %v1697_v9 = vpop.f32.mrf.mxu0 }
 0x159   : > { %v4034_v16 = vpop.f32.mrf.mxu1 }
 0x15a   : > { %v5484_v19 = vadd.f32 %v1694_v29, %v1435_v41  ;;  %v1446_v56 = vadd.f32 %v4034_v16, %v5988_v20  ;;  %v4071_v11 = vpop.f32.mrf.mxu0  ;;  %4274 = vmatmul.mubr.msk.bf16.gmra.mxu0 %vm991_vm3, %v3638_v61 }
 0x15b   : > { %v1437_v63 = vpop.f32.mrf.mxu1 }
 0x15c   : > { %v5488_v14 = vadd.f32 %v4068_v23, %v1446_v56  ;;  %v1438_v27 = vadd.f32 %v1437_v63, %v5989_v5  ;;  %v1710_v6 = vpop.f32.mrf.mxu0 }
 0x15d   : > { %v4037_v26 = vpop.f32.mrf.mxu1  ;;  %4240 = vmatmul.mubr.msk.bf16.gmra.mxu1 %vm991_vm3, %v3620_v18 }
 0x15e   : > { %v5492_v50 = vadd.f32 %v1697_v9, %v1438_v27  ;;  %v1459_v46 = vadd.f32 %v4037_v26, %v5990_v21  ;;  %v4072_v60 = vpop.f32.mrf.mxu0 }
 0x15f   : > { %v1450_v52 = vpop.f32.mrf.mxu1 }
 0x160   : > { %v5495_v1 = vadd.f32 %v4071_v11, %v1459_v46  ;;  %v1451_v39 = vadd.f32 %v1450_v52, %v5991_v8  ;;  %v1713_v34 = vpop.f32.mrf.mxu0 }
 0x161   : > { %v4038_v3 = vpop.f32.mrf.mxu1 }
 0x162   : > { %v5498_v12 = vadd.f32 %v1710_v6, %v1451_v39  ;;  %v1462_v29 = vadd.f32 %v4038_v3, %v5992_v28  ;;  %v4111_v45 = vpop.f32.mrf.mxu0 }
 0x163   : > { %v1453_v2 = vpop.f32.mrf.mxu1 }
 0x164   : > { %v5501_v58 = vadd.f32 %v4072_v60, %v1462_v29  ;;  %v1454_v15 = vadd.f32 %v1453_v2, %v5993_v54  ;;  %v2006_v37 = vpop.f32.mrf.mxu0 }
 0x165   : > { %v4077_v23 = vpop.f32.mrf.mxu1 }
 0x166   : > { %v5504_v51 = vadd.f32 %v1713_v34, %v1454_v15  ;;  %v1933_v0 = vadd.f32 %v4077_v23, %v5346_v13  ;;  %v4112_v61 = vpop.f32.mrf.mxu0 }
 0x167   : > { %v1804_v10 = vpop.f32.mrf.mxu1 }
 0x168   : > { %v5507_v7 = vadd.f32 %v4111_v45, %v1933_v0  ;;  %v1931_v41 = vadd.f32 %v1804_v10, %v5349_v35  ;;  %v2009_v9 = vpop.f32.mrf.mxu0 }
 0x169   : > { %v4078_v16 = vpop.f32.mrf.mxu1 }
 0x16a   : > { %v5510_v18 = vadd.f32 %v2006_v37, %v1931_v41  ;;  %v1934_v20 = vadd.f32 %v4078_v16, %v5356_v49  ;;  %v4115_v56 = vpop.f32.mrf.mxu0 }
 0x16b   : > { %v1807_v11 = vpop.f32.mrf.mxu1 }
 0x16c   : > { %v5513_v63 = vadd.f32 %v4112_v61, %v1934_v20  ;;  %v1932_v5 = vadd.f32 %v1807_v11, %v5361_v59  ;;  %v2022_v27 = vpop.f32.mrf.mxu0 }
 0x16d   : > { %v4081_v13 = vpop.f32.mrf.mxu1 }
 0x16e   : > { %v5516_v6 = vadd.f32 %v2009_v9, %v1932_v5  ;;  %v1937_v26 = vadd.f32 %v4081_v13, %v5366_v55  ;;  %v4116_v21 = vpop.f32.mrf.mxu0 }
 0x16f   : > { %v1820_v35 = vpop.f32.mrf.mxu1 }
 0x170   : > { %v5519_v46 = vadd.f32 %v4115_v56, %v1937_v26  ;;  %v1935_v60 = vadd.f32 %v1820_v35, %v5369_v17  ;;  %v2025_v52 = vpop.f32.mrf.mxu0 }
 0x171   : > { %v4082_v49 = vpop.f32.mrf.mxu1 }
 0x172   : > { %v5522_v8 = vadd.f32 %v2022_v27, %v1935_v60  ;;  %v1938_v39 = vadd.f32 %v4082_v49, %v5376_v42  ;;  %v4119_v34 = vpop.f32.mrf.mxu0 }
 0x173   : > { %v1823_v59 = vpop.f32.mrf.mxu1 }
 0x174   : > { %v5525_v3 = vadd.f32 %v4116_v21, %v1938_v39  ;;  %v1936_v28 = vadd.f32 %v1823_v59, %v5381_v22  ;;  %v2038_v29 = vpop.f32.mrf.mxu0 }
 0x175   : > { %v4085_v55 = vpop.f32.mrf.mxu1 }
 0x176   : > { %v5528_v45 = vadd.f32 %v2025_v52, %v1936_v28  ;;  %v1941_v2 = vadd.f32 %v4085_v55, %v5386_v30  ;;  %v4120_v54 = vpop.f32.mrf.mxu0 }
 0x177   : > { %v1836_v17 = vpop.f32.mrf.mxu1 }
 0x178   : > { %v5531_v15 = vadd.f32 %v4119_v34, %v1941_v2  ;;  %v1939_v37 = vadd.f32 %v1836_v17, %v5389_v4  ;;  %v2041_v23 = vpop.f32.mrf.mxu0 }
 0x179   : > { %v4086_v42 = vpop.f32.mrf.mxu1 }
 0x17a   : > { %v5534_v0 = vadd.f32 %v2038_v29, %v1939_v37  ;;  %v1942_v61 = vadd.f32 %v4086_v42, %v5396_v40  ;;  %v4123_v10 = vpop.f32.mrf.mxu0 }
 0x17b   : > { %v1839_v22 = vpop.f32.mrf.mxu1 }
 0x17c   : > { %v5537_v41 = vadd.f32 %v4120_v54, %v1942_v61  ;;  %v1940_v9 = vadd.f32 %v1839_v22, %v5401_v43  ;;  %v2054_v16 = vpop.f32.mrf.mxu0 }
 0x17d   : > { %v4089_v30 = vpop.f32.mrf.mxu1 }
 0x17e   : > { %v5540_v20 = vadd.f32 %v2041_v23, %v1940_v9  ;;  %v1945_v56 = vadd.f32 %v4089_v30, %v5406_v48  ;;  %v4124_v11 = vpop.f32.mrf.mxu0 }
 0x17f   : > { %v1852_v4 = vpop.f32.mrf.mxu1 }
 0x180   : > { %v5543_v5 = vadd.f32 %v4123_v10, %v1945_v56  ;;  %v1943_v27 = vadd.f32 %v1852_v4, %v5409_v24  ;;  %v2057_v13 = vpop.f32.mrf.mxu0 }
 0x181   : > { %v4090_v40 = vpop.f32.mrf.mxu1 }
 0x182   : > { %v5546_v26 = vadd.f32 %v2054_v16, %v1943_v27  ;;  %v1946_v21 = vadd.f32 %v4090_v40, %v5416_v44  ;;  %v4127_v35 = vpop.f32.mrf.mxu0 }
 0x183   : > { %v1855_v43 = vpop.f32.mrf.mxu1 }
 0x184   : > { %v5549_v60 = vadd.f32 %v4124_v11, %v1946_v21  ;;  %v1944_v52 = vadd.f32 %v1855_v43, %v5425_v36  ;;  %v2070_v49 = vpop.f32.mrf.mxu0 }
 0x185   : > { %v4093_v48 = vpop.f32.mrf.mxu1 }
 0x186   : > { %v5552_v39 = vadd.f32 %v2057_v13, %v1944_v52  ;;  %v1949_v34 = vadd.f32 %v4093_v48, %v5430_v31  ;;  %v4128_v59 = vpop.f32.mrf.mxu0 }
 0x187   : > { %v1868_v24 = vpop.f32.mrf.mxu1 }
 0x188   : > { %v5555_v28 = vadd.f32 %v4127_v35, %v1949_v34  ;;  %v1947_v29 = vadd.f32 %v1868_v24, %v5433_v33  ;;  %v2073_v55 = vpop.f32.mrf.mxu0 }
 0x189   : > { %v4094_v44 = vpop.f32.mrf.mxu1 }
 0x18a   : > { %v5558_v2 = vadd.f32 %v2070_v49, %v1947_v29  ;;  %v1950_v54 = vadd.f32 %v4094_v44, %v5442_v47  ;;  %v4131_v17 = vpop.f32.mrf.mxu0 }
 0x18b   : > { %v1871_v36 = vpop.f32.mrf.mxu1 }
 0x18c   : > { %v5561_v37 = vadd.f32 %v4128_v59, %v1950_v54  ;;  %v1948_v23 = vadd.f32 %v1871_v36, %v5447_v62  ;;  %v2086_v42 = vpop.f32.mrf.mxu0 }
 0x18d   : > { %v4097_v31 = vpop.f32.mrf.mxu1 }
 0x18e   : > { %v5564_v61 = vadd.f32 %v2073_v55, %v1948_v23  ;;  %v1953_v10 = vadd.f32 %v4097_v31, %v5453_v25  ;;  %v4132_v22 = vpop.f32.mrf.mxu0 }
 0x18f   : > { %v1884_v33 = vpop.f32.mrf.mxu1 }
 0x190   : > { %v5567_v9 = vadd.f32 %v4131_v17, %v1953_v10  ;;  %v1951_v16 = vadd.f32 %v1884_v33, %v5456_v38  ;;  %v2089_v30 = vpop.f32.mrf.mxu0 }
 0x191   : > { %v4098_v47 = vpop.f32.mrf.mxu1 }
 0x192   : > { %v5570_v56 = vadd.f32 %v2086_v42, %v1951_v16  ;;  %v1954_v11 = vadd.f32 %v4098_v47, %v5467_v32  ;;  %v4135_v4 = vpop.f32.mrf.mxu0 }
 0x193   : > { %v1887_v62 = vpop.f32.mrf.mxu1 }
 0x194   : > { %5994 = vst [vmem:[#allocation9_spill] sm:$0xff] %v5570_v56  ;;  %v5573_v27 = vadd.f32 %v4132_v22, %v1954_v11  ;;  %v1952_v13 = vadd.f32 %v1887_v62, %v5474_v53  ;;  %v2102_v40 = vpop.f32.mrf.mxu0 }
 0x195   : > { %v4101_v25 = vpop.f32.mrf.mxu1 }
 0x196   : > { %5995 = vst [vmem:[#allocation7_spill] sm:$0xff] %v5573_v27  ;;  %v5576_v21 = vadd.f32 %v2089_v30, %v1952_v13  ;;  %v1957_v35 = vadd.f32 %v4101_v25, %v5481_v57  ;;  %v4136_v43 = vpop.f32.mrf.mxu0 }
 0x197   : > { %v1900_v38 = vpop.f32.mrf.mxu1 }
 0x198   : > { %5996 = vst [vmem:[#allocation11_spill] sm:$0xff] %v5576_v21  ;;  %v5579_v52 = vadd.f32 %v4135_v4, %v1957_v35  ;;  %v1955_v49 = vadd.f32 %v1900_v38, %v5484_v19  ;;  %v2105_v48 = vpop.f32.mrf.mxu0 }
 0x199   : > { %v4102_v32 = vpop.f32.mrf.mxu1 }
 0x19a   : > { %v5582_v34 = vadd.f32 %v2102_v40, %v1955_v49  ;;  %v1958_v59 = vadd.f32 %v4102_v32, %v5488_v14  ;;  %v4139_v24 = vpop.f32.mrf.mxu0 }
 0x19b   : > { %v1903_v53 = vpop.f32.mrf.mxu1 }
 0x19c   : > { %5997 = vst [vmem:[#allocation13_spill] sm:$0xff] %v5582_v34  ;;  %v5585_v29 = vadd.f32 %v4136_v43, %v1958_v59  ;;  %v1956_v55 = vadd.f32 %v1903_v53, %v5492_v50  ;;  %v2118_v44 = vpop.f32.mrf.mxu0 }
 0x19d   : > { %v4105_v57 = vpop.f32.mrf.mxu1 }
 0x19e   : > { %5998 = vst [vmem:[#allocation15_spill] sm:$0xff] %v5585_v29  ;;  %v5588_v54 = vadd.f32 %v2105_v48, %v1956_v55  ;;  %v1961_v17 = vadd.f32 %v4105_v57, %v5495_v1  ;;  %v4140_v36 = vpop.f32.mrf.mxu0 }
 0x19f   : > { %v1916_v19 = vpop.f32.mrf.mxu1 }
 0x1a0   : > { %5999 = vst [vmem:[#allocation19_spill] sm:$0xff] %v5588_v54  ;;  %v5591_v23 = vadd.f32 %v4139_v24, %v1961_v17  ;;  %v1959_v42 = vadd.f32 %v1916_v19, %v5498_v12  ;;  %v2121_v31 = vpop.f32.mrf.mxu0 }
 0x1a1   : > { %v4106_v14 = vpop.f32.mrf.mxu1 }
 0x1a2   : > { %v5594_v10 = vadd.f32 %v2118_v44, %v1959_v42  ;;  %v1962_v22 = vadd.f32 %v4106_v14, %v5501_v58  ;;  %v4179_v33 = vpop.f32.mrf.mxu0 }
 0x1a3   : > { %v1919_v50 = vpop.f32.mrf.mxu1 }
 0x1a4   : > { %6000 = vst [vmem:[#allocation24_spill] sm:$0xff] %v5594_v10  ;;  %v5597_v16 = vadd.f32 %v4140_v36, %v1962_v22  ;;  %v1960_v30 = vadd.f32 %v1919_v50, %v5504_v51  ;;  %v2414_v47 = vpop.f32.mrf.mxu0 }
 0x1a5   : > { %v4145_v1 = vpop.f32.mrf.mxu1 }
 0x1a6   : > { %6001 = vst [vmem:[#allocation5_spill] sm:$0xff] %v5597_v16  ;;  %v5600_v11 = vadd.f32 %v2121_v31, %v1960_v30  ;;  %v2341_v4 = vadd.f32 %v4145_v1, %v5507_v7  ;;  %v5603_v62 = vpop.f32.mrf.mxu0 }
 0x1a7   : > { %v2212_v12 = vpop.f32.mrf.mxu1 }
 0x1a8   : > { %6002 = vst [vmem:[#allocation10_spill] sm:$0xff] %v5600_v11  ;;  %v5605_v13 = vadd.f32 %v4179_v33, %v2341_v4  ;;  %v2339_v40 = vadd.f32 %v2212_v12, %v5510_v18  ;;  %v5608_v58 = vpop.f32.mrf.mxu0 }
 0x1a9   : > { %v5610_v25 = vpop.f32.mrf.mxu1 }
 0x1aa   : > { %v5612_v35 = vadd.f32 %v2414_v47, %v2339_v40  ;;  %v4183_v51 = vpop.f32.mrf.mxu0 }
 0x1ab   : > { %v5614_v43 = vpop.f32.mrf.mxu1 }
 0x1ac   : > { %v5616_v38 = vpop.f32.mrf.mxu0 }
 0x1ad   : > { %v4149_v49 = vpop.f32.mrf.mxu1 }
 0x1ae   : > { %v2345_v7 = vadd.f32 %v4149_v49, %v5519_v46  ;;  %v5619_v48 = vpop.f32.mrf.mxu0 }
 0x1af   : > { %v5621_v32 = vpop.f32.mrf.mxu1 }
 0x1b0   : > { %v5623_v59 = vadd.f32 %v4183_v51, %v2345_v7  ;;  %v5625_v18 = vpop.f32.mrf.mxu0 }
 0x1b1   : > { %v5627_v24 = vpop.f32.mrf.mxu1 }
 0x1b2   : > { %v4187_v53 = vpop.f32.mrf.mxu0 }
 0x1b3   : > { %v5629_v55 = vpop.f32.mrf.mxu1 }
 0x1b4   : > { %v5631_v44 = vpop.f32.mrf.mxu0 }
 0x1b5   : > { %v4153_v57 = vpop.f32.mrf.mxu1 }
 0x1b6   : > { %v2349_v17 = vadd.f32 %v4153_v57, %v5531_v15  ;;  %v5634_v36 = vpop.f32.mrf.mxu0 }
 0x1b7   : > { %v5636_v46 = vpop.f32.mrf.mxu1 }
 0x1b8   : > { %v5638_v19 = vadd.f32 %v4187_v53, %v2349_v17  ;;  %v5640_v42 = vpop.f32.mrf.mxu0 }
 0x1b9   : > { %v5642_v31 = vpop.f32.mrf.mxu1 }
 0x1ba   : > { %v4191_v14 = vpop.f32.mrf.mxu0 }
 0x1bb   : > { %v5644_v22 = vpop.f32.mrf.mxu1 }
 0x1bc   : > { %v5646_v33 = vpop.f32.mrf.mxu0 }
 0x1bd   : > { %v4157_v50 = vpop.f32.mrf.mxu1 }
 0x1be   : > { %v2353_v30 = vadd.f32 %v4157_v50, %v5543_v5  ;;  %v5649_v47 = vpop.f32.mrf.mxu0 }
 0x1bf   : > { %v5651_v15 = vpop.f32.mrf.mxu1 }
 0x1c0   : > { %v5653_v1 = vadd.f32 %v4191_v14, %v2353_v30  ;;  %v5655_v4 = vpop.f32.mrf.mxu0 }
 0x1c1   : > { %v5657_v12 = vpop.f32.mrf.mxu1 }
 0x1c2   : > { %v4195_v40 = vpop.f32.mrf.mxu0 }
 0x1c3   : > { %v5659_v51 = vpop.f32.mrf.mxu1 }
 0x1c4   : > { %v5661_v49 = vpop.f32.mrf.mxu0 }
 0x1c5   : > { %v4161_v7 = vpop.f32.mrf.mxu1 }
 0x1c6   : > { %v2357_v53 = vadd.f32 %v4161_v7, %v5555_v28  ;;  %v5664_v57 = vpop.f32.mrf.mxu0 }
 0x1c7   : > { %v5666_v5 = vpop.f32.mrf.mxu1 }
 0x1c8   : > { %v5668_v17 = vadd.f32 %v4195_v40, %v2357_v53  ;;  %v5670_v14 = vpop.f32.mrf.mxu0 }
 0x1c9   : > { %6003 = vst [vmem:[#allocation12_spill] sm:$0xff] %v5670_v14  ;;  %v5672_v50 = vpop.f32.mrf.mxu1 }
 0x1ca   : > { %v4199_v30 = vpop.f32.mrf.mxu0 }
 0x1cb   : > { %v5674_v11 = vpop.f32.mrf.mxu1 }
 0x1cc   : > { %v5676_v16 = vpop.f32.mrf.mxu0 }
 0x1cd   : > { %6004 = vst [vmem:[#allocation14_spill] sm:$0xff] %v5676_v16  ;;  %v4165_v10 = vpop.f32.mrf.mxu1 }
 0x1ce   : > { %v2361_v54 = vadd.f32 %v4165_v10, %v5567_v9  ;;  %v5679_v29 = vpop.f32.mrf.mxu0 }
 0x1cf   : > { %6005 = vst [vmem:[#allocation17_spill] sm:$0xff] %v5679_v29  ;;  %v5681_v28 = vpop.f32.mrf.mxu1 }
 0x1d0   : > { %v5683_v7 = vadd.f32 %v4199_v30, %v2361_v54  ;;  %v5685_v40 = vpop.f32.mrf.mxu0 }
 0x1d1   : > { %6007 = vst [vmem:[#allocation25_spill] sm:$0xff] %v5685_v40  ;;  %v5687_v53 = vpop.f32.mrf.mxu1 }
 0x1d2   : > { %6006 = vst [vmem:[#allocation22_spill] sm:$0xff] %v5683_v7  ;;  %6008 = vst [vmem:[#allocation2_spill] sm:$0xff] %v5687_v53  ;;  %v4203_v34 = vpop.f32.mrf.mxu0 }
 0x1d3   : > { %v5689_v21 = vpop.f32.mrf.mxu1 }
 0x1d4   : > { %6009 = vst [vmem:[#allocation20_spill] sm:$0xff] %v5689_v21  ;;  %v5691_v27 = vpop.f32.mrf.mxu0 }
 0x1d5   : > { %6010 = vst [vmem:[#allocation16_spill] sm:$0xff] %v5691_v27  ;;  %v4169_v56 = vpop.f32.mrf.mxu1 }
 0x1d6   : > { %v2365_v16 = vadd.f32 %v4169_v56, %v5579_v52  ;;  %v5694_v14 = vpop.f32.mrf.mxu0 }
 0x1d7   : > { %6011 = vst [vmem:[#allocation18_spill] sm:$0xff] %v5694_v14  ;;  %v5696_v9 = vpop.f32.mrf.mxu1 }
 0x1d8   : > { %v5698_v10 = vadd.f32 %v4203_v34, %v2365_v16  ;;  %v5700_v54 = vpop.f32.mrf.mxu0 }
 0x1d9   : > { %6013 = vst [vmem:[#allocation23_spill] sm:$0xff] %v5700_v54  ;;  %v5702_v30 = vpop.f32.mrf.mxu1 }
 0x1da   : > { %6012 = vst [vmem:[#allocation21_spill] sm:$0xff] %v5698_v10  ;;  %6014 = vst [vmem:[#allocation8_spill] sm:$0xff] %v5702_v30  ;;  %v4207_v40 = vpop.f32.mrf.mxu0  ;;  %v2342_v10 = vadd.f32 %v5610_v25, %v5513_v63 }
 0x1db   : > { %v5704_v29 = vpop.f32.mrf.mxu1 }
 0x1dc   : > { %6015 = vst [vmem:[#allocation3_spill] sm:$0xff] %v5704_v29  ;;  %v5706_v7 = vpop.f32.mrf.mxu0 }
 0x1dd   : > { %6016 = vst [vmem:[#allocation4_spill] sm:$0xff] %v5706_v7  ;;  %v4173_v21 = vpop.f32.mrf.mxu1 }
 0x1de   : > { %v2369_v27 = vadd.f32 %v4173_v21, %v5591_v23  ;;  %v5709_v53 = vpop.f32.mrf.mxu0  ;;  %v2340_v21 = vadd.f32 %v5614_v43, %v5516_v6  ;;  %v2343_v6 = vadd.f32 %v5621_v32, %v5522_v8 }
 0x1df   : > { %6017 = vst [vmem:[#allocation6_spill] sm:$0xff] %v5709_v53  ;;  %v5711_v56 = vpop.f32.mrf.mxu1 }
 0x1e0   : > { %6018 = vst [vmem:[#allocation26_spill] sm:$0xff] %v5711_v56  ;;  %v5713_v52 = vadd.f32 %v4207_v40, %v2369_v27  ;;  %v5715_v34 = vpop.f32.mrf.mxu0 }
 0x1e1   : > { %6020 = vst [vmem:[#allocation28_spill] sm:$0xff] %v5715_v34  ;;  %v5717_v16 = vpop.f32.mrf.mxu1  ;;  %v2544_v34 = vadd.f32 %v5603_v62, %v2342_v10 }
 0x1e2   : > { %6019 = vst [vmem:[#allocation27_spill] sm:$0xff] %v5713_v52  ;;  %6021 = vst [vmem:[#allocation29_spill] sm:$0xff] %v5717_v16  ;;  %v4247_v54 = vpop.f32.mrf.mxu0 }
 0x1e3   : > { %v5719_v14 = vpop.f32.mrf.mxu1 }
 0x1e4   : > { %6022 = vst [vmem:[#allocation30_spill] sm:$0xff] %v5719_v14  ;;  %v2822_v7 = vpop.f32.mrf.mxu0  ;;  %v2542_v14 = vadd.f32 %v5608_v58, %v2340_v21  ;;  %v2346_v58 = vadd.f32 %v5627_v24, %v5525_v3 }
 0x1e5   : > { %v4213_v29 = vpop.f32.mrf.mxu1 }
 0x1e6   : > { %v2749_v23 = vadd.f32 %v4213_v29, %v5605_v13  ;;  %v4248_v27 = vpop.f32.mrf.mxu0  ;;  %v5734_v29 = vld [vmem:[%s5873_s2] ss:$0 sm:$0xff] }
 0x1e7   : > { %v2620_v40 = vpop.f32.mrf.mxu1 }
 0x1e8   : > { %v2747_v53 = vadd.f32 %v2620_v40, %v5612_v35  ;;  %v2825_v52 = vpop.f32.mrf.mxu0  ;;  %v2951_v56 = vadd.f32 %v4247_v54, %v2749_v23 }
 0x1e9   : > { %v4214_v16 = vpop.f32.mrf.mxu1 }
 0x1ea   : > { %v2949_v63 = vadd.f32 %v2822_v7, %v2747_v53  ;;  %v2750_v25 = vadd.f32 %v4214_v16, %v2544_v34  ;;  %v4251_v30 = vpop.f32.mrf.mxu0  ;;  %v2344_v7 = vadd.f32 %v5629_v55, %v5528_v45  ;;  %v2990_v10 = vadd.f32 %v5734_v29, %v2951_v56 }
 0x1eb   : > { %v2623_v13 = vpop.f32.mrf.mxu1  ;;  %v2545_v16 = vadd.f32 %v5616_v38, %v2343_v6  ;;  %v2548_v56 = vadd.f32 %v5619_v48, %v2346_v58 }
 0x1ec   : > { %v2952_v62 = vadd.f32 %v4248_v27, %v2750_v25  ;;  %v2748_v35 = vadd.f32 %v2623_v13, %v2542_v14  ;;  %v2838_v43 = vpop.f32.mrf.mxu0  ;;  %v2988_v8 = vadd.f32 %v5734_v29, %v2949_v63 }
 0x1ed   : > { %v4217_v53 = vpop.f32.mrf.mxu1 }
 0x1ee   : > { %v2991_v32 = vadd.f32 %v5734_v29, %v2952_v62  ;;  %v2950_v54 = vadd.f32 %v2825_v52, %v2748_v35  ;;  %v4252_v34 = vpop.f32.mrf.mxu0  ;;  %v2753_v3 = vadd.f32 %v4217_v53, %v5623_v59  ;;  %v2546_v52 = vadd.f32 %v5625_v18, %v2344_v7 }
 0x1ef   : > { %v2636_v45 = vpop.f32.mrf.mxu1  ;;  %v3217_v23 = vmul.f32 %v2988_v8, %v2988_v8  ;;  %v2347_v59 = vadd.f32 %v5636_v46, %v5534_v0  ;;  %v3219_v53 = vmul.f32 %v2990_v10, %v2990_v10 }
 0x1f0   : > { %v3731_v24 = vpack.c.bf16 %v2991_v32, %v2990_v10  ;;  %v2989_v55 = vadd.f32 %v5734_v29, %v2950_v54  ;;  %v2841_v14 = vpop.f32.mrf.mxu0  ;;  %v2751_v21 = vadd.f32 %v2636_v45, %v2545_v16  ;;  %v2955_v6 = vadd.f32 %v4251_v30, %v2753_v3 }
 0x1f1   : > { %v4218_v38 = vpop.f32.mrf.mxu1  ;;  %v2350_v54 = vadd.f32 %v5642_v31, %v5537_v41  ;;  %v3220_v46 = vmul.f32 %v2991_v32, %v2991_v32 }
 0x1f2   : > { %3803 = vst [vmem:[%s5748_s12 + $0x8] sm:$0xff] %v3731_v24   ;;  %v3726_v27 = vpack.c.bf16 %v2989_v55, %v2988_v8  ;;  %v3180_v40 = vadd.f32 %v2989_v55, %v2988_v8  ;;  %v3218_v63 = vmul.f32 %v2989_v55, %v2989_v55  ;;  %v4255_v25 = vpop.f32.mrf.mxu0  ;;  %v2953_v13 = vadd.f32 %v2838_v43, %v2751_v21 }
 0x1f3   : > { %v2754_v62 = vadd.f32 %v4218_v38, %v2548_v56  ;;  %v2639_v35 = vpop.f32.mrf.mxu1  ;;  %v2348_v8 = vadd.f32 %v5644_v22, %v5540_v20  ;;  %v2994_v55 = vadd.f32 %v5734_v29, %v2955_v6  ;;  %v2351_v6 = vadd.f32 %v5651_v15, %v5546_v26 }
 0x1f4   : > { %3727 = vst [vmem:[%s5748_s12] sm:$0xff] %v3726_v27   ;;  %v3181_v48 = vadd.f32 %v3180_v40, %v2990_v10  ;;  %v3249_v58 = vadd.f32 %v3218_v63, %v3217_v23  ;;  %v2752_v18 = vadd.f32 %v2639_v35, %v2546_v52  ;;  %v2854_v7 = vpop.f32.mrf.mxu0  ;;  %v2992_v16 = vadd.f32 %v5734_v29, %v2953_v13 }
 0x1f5   : > { %v2956_v45 = vadd.f32 %v4252_v34, %v2754_v62  ;;  %v4221_v0 = vpop.f32.mrf.mxu1  ;;  %v2549_v10 = vadd.f32 %v5631_v44, %v2347_v59 }
 0x1f6   : > { %v3250_v30 = vadd.f32 %v3249_v58, %v3219_v53  ;;  %v3182_v43 = vadd.f32 %v3181_v48, %v2991_v32  ;;  %v2954_v3 = vadd.f32 %v2841_v14, %v2752_v18  ;;  %v4256_v24 = vpop.f32.mrf.mxu0  ;;  %v2757_v41 = vadd.f32 %v4221_v0, %v5638_v19 }
 0x1f7   : > { %v2995_v56 = vadd.f32 %v5734_v29, %v2956_v45  ;;  %v2652_v31 = vpop.f32.mrf.mxu1  ;;  %v3221_v20 = vmul.f32 %v2992_v16, %v2992_v16  ;;  %v2552_v32 = vadd.f32 %v5634_v36, %v2350_v54  ;;  %v2550_v14 = vadd.f32 %v5640_v42, %v2348_v8 }
 0x1f8   : > { %v3183_v52 = vadd.f32 %v3182_v43, %v2992_v16  ;;  %v3251_v22 = vadd.f32 %v3250_v30, %v3220_v46  ;;  %v2993_v34 = vadd.f32 %v5734_v29, %v2954_v3  ;;  %v2857_v21 = vpop.f32.mrf.mxu0  ;;  %v2755_v38 = vadd.f32 %v2652_v31, %v2549_v10 }
 0x1f9   : > { %v3741_v44 = vpack.c.bf16 %v2995_v56, %v2994_v55  ;;  %v4222_v23 = vpop.f32.mrf.mxu1  ;;  %v2959_v13 = vadd.f32 %v4255_v25, %v2757_v41  ;;  %v3223_v36 = vmul.f32 %v2994_v55, %v2994_v55  ;;  %v2354_v54 = vadd.f32 %v5657_v12, %v5549_v60 }
 0x1fa   : > { %v3252_v27 = vadd.f32 %v3251_v22, %v3221_v20  ;;  %v3736_v40 = vpack.c.bf16 %v2993_v34, %v2992_v16  ;;  %v3184_v63 = vadd.f32 %v3183_v52, %v2993_v34  ;;  %v3222_v19 = vmul.f32 %v2993_v34, %v2993_v34  ;;  %v4259_v59 = vpop.f32.mrf.mxu0 }
 0x1fb   : > { %3805 = vst [vmem:[%s5748_s12 + $0x18] sm:$0xff] %v3741_v44   ;;  %v2957_v62 = vadd.f32 %v2854_v7, %v2755_v38  ;;  %v2758_v35 = vadd.f32 %v4222_v23, %v2552_v32  ;;  %v2655_v53 = vpop.f32.mrf.mxu1  ;;  %v2352_v8 = vadd.f32 %v5659_v51, %v5552_v39  ;;  %v3224_v25 = vmul.f32 %v2995_v56, %v2995_v56 }
 0x1fc   : > { %3804 = vst [vmem:[%s5748_s12 + $0x10] sm:$0xff] %v3736_v40   ;;  %v3185_v42 = vadd.f32 %v3184_v63, %v2994_v55  ;;  %v3253_v48 = vadd.f32 %v3252_v27, %v3222_v19  ;;  %v2756_v58 = vadd.f32 %v2655_v53, %v2550_v14  ;;  %v2870_v18 = vpop.f32.mrf.mxu0  ;;  %v2553_v30 = vadd.f32 %v5646_v33, %v2351_v6 }
 0x1fd   : > { %v2996_v16 = vadd.f32 %v5734_v29, %v2957_v62  ;;  %v2960_v26 = vadd.f32 %v4256_v24, %v2758_v35  ;;  %v4225_v15 = vpop.f32.mrf.mxu1  ;;  %v2998_v43 = vadd.f32 %v5734_v29, %v2959_v13  ;;  %v2554_v41 = vadd.f32 %v5655_v4, %v2352_v8 }
 0x1fe   : > { %v3254_v7 = vadd.f32 %v3253_v48, %v3223_v36  ;;  %v3186_v45 = vadd.f32 %v3185_v42, %v2995_v56  ;;  %v2958_v0 = vadd.f32 %v2857_v21, %v2756_v58  ;;  %v4260_v46 = vpop.f32.mrf.mxu0  ;;  %v2761_v60 = vadd.f32 %v4225_v15, %v5653_v1 }
 0x1ff   : > { %v2999_v3 = vadd.f32 %v5734_v29, %v2960_v26  ;;  %v2668_v12 = vpop.f32.mrf.mxu1  ;;  %v3225_v39 = vmul.f32 %v2996_v16, %v2996_v16  ;;  %v2556_v56 = vadd.f32 %v5649_v47, %v2354_v54  ;;  %v2355_v32 = vadd.f32 %v5666_v5, %v5558_v2  ;;  %v6023_v26 = vld [vmem:[#allocation12_spill] sm:$0xff] }
 0x200   : > { %v3187_v10 = vadd.f32 %v3186_v45, %v2996_v16  ;;  %v3255_v51 = vadd.f32 %v3254_v7, %v3224_v25  ;;  %v2997_v24 = vadd.f32 %v5734_v29, %v2958_v0  ;;  %v2873_v55 = vpop.f32.mrf.mxu0  ;;  %v2759_v31 = vadd.f32 %v2668_v12, %v2553_v30 }
 0x201   : > { %v3751_v33 = vpack.c.bf16 %v2999_v3, %v2998_v43  ;;  %v4226_v52 = vpop.f32.mrf.mxu1  ;;  %v2963_v14 = vadd.f32 %v4259_v59, %v2761_v60  ;;  %v3227_v47 = vmul.f32 %v2998_v43, %v2998_v43  ;;  %v2358_v19 = vadd.f32 %v5672_v50, %v5561_v37 }
 0x202   : > { %v3256_v20 = vadd.f32 %v3255_v51, %v3225_v39  ;;  %v3746_v22 = vpack.c.bf16 %v2997_v24, %v2996_v16  ;;  %v3188_v34 = vadd.f32 %v3187_v10, %v2997_v24  ;;  %v3226_v1 = vmul.f32 %v2997_v24, %v2997_v24  ;;  %v4263_v21 = vpop.f32.mrf.mxu0 }
 0x203   : > { %3807 = vst [vmem:[%s5748_s12 + $0x28] sm:$0xff] %v3751_v33   ;;  %v2961_v44 = vadd.f32 %v2870_v18, %v2759_v31  ;;  %v2762_v38 = vadd.f32 %v4226_v52, %v2556_v56  ;;  %v2671_v23 = vpop.f32.mrf.mxu1  ;;  %v2356_v6 = vadd.f32 %v5674_v11, %v5564_v61  ;;  %v3228_v59 = vmul.f32 %v2999_v3, %v2999_v3  ;;  %v6026_v33 = vld [vmem:[#allocation2_spill] sm:$0xff]  ;;  %v6027_v52 = vld [vmem:[#allocation11_spill] sm:$0xff] }
 0x204   : > { %3806 = vst [vmem:[%s5748_s12 + $0x20] sm:$0xff] %v3746_v22   ;;  %v3189_v4 = vadd.f32 %v3188_v34, %v2998_v43  ;;  %v3257_v27 = vadd.f32 %v3256_v20, %v3226_v1  ;;  %v2760_v40 = vadd.f32 %v2671_v23, %v2554_v41  ;;  %v2886_v63 = vpop.f32.mrf.mxu0  ;;  %v2557_v42 = vadd.f32 %v5661_v49, %v2355_v32  ;;  %v6024_v43 = vld [vmem:[#allocation9_spill] sm:$0xff]  ;;  %v6025_v41 = vld [vmem:[#allocation7_spill] sm:$0xff]  ;;  %v6028_v20 = vld [vmem:[#allocation20_spill] sm:$0xff] }
 0x205   : > { %v3000_v13 = vadd.f32 %v5734_v29, %v2961_v44  ;;  %v2964_v2 = vadd.f32 %v4260_v46, %v2762_v38  ;;  %v4229_v5 = vpop.f32.mrf.mxu1  ;;  %v3002_v48 = vadd.f32 %v5734_v29, %v2963_v14  ;;  %v2560_v16 = vadd.f32 %v5664_v57, %v2358_v19  ;;  %v6029_v23 = vld [vmem:[#allocation14_spill] sm:$0xff] }
 0x206   : > { %v3258_v62 = vadd.f32 %v3257_v27, %v3227_v47  ;;  %v3190_v35 = vadd.f32 %v3189_v4, %v2999_v3  ;;  %v2962_v53 = vadd.f32 %v2873_v55, %v2760_v40  ;;  %v4264_v36 = vpop.f32.mrf.mxu0  ;;  %v2765_v37 = vadd.f32 %v4229_v5, %v5668_v17  ;;  %v6030_v40 = vld [vmem:[#allocation22_spill] sm:$0xff] }
 0x207   : > { %v3003_v58 = vadd.f32 %v5734_v29, %v2964_v2  ;;  %v2684_v50 = vpop.f32.mrf.mxu1  ;;  %v3229_v61 = vmul.f32 %v3000_v13, %v3000_v13  ;;  %v2558_v15 = vadd.f32 %v6023_v26, %v2356_v6  ;;  %v2359_v3 = vadd.f32 %v5681_v28, %v6024_v43  ;;  %v6035_v43 = vld [vmem:[#allocation8_spill] sm:$0xff] }
 0x208   : > { %v3191_v18 = vadd.f32 %v3190_v35, %v3000_v13  ;;  %v3259_v11 = vadd.f32 %v3258_v62, %v3228_v59  ;;  %v3001_v54 = vadd.f32 %v5734_v29, %v2962_v53  ;;  %v2889_v8 = vpop.f32.mrf.mxu0  ;;  %v2763_v25 = vadd.f32 %v2684_v50, %v2557_v42  ;;  %v6031_v62 = vld [vmem:[#allocation17_spill] sm:$0xff] }
 0x209   : > { %v3761_v49 = vpack.c.bf16 %v3003_v58, %v3002_v48  ;;  %v4230_v7 = vpop.f32.mrf.mxu1  ;;  %v2967_v60 = vadd.f32 %v4263_v21, %v2765_v37  ;;  %v3231_v57 = vmul.f32 %v3002_v48, %v3002_v48  ;;  %v2362_v31 = vadd.f32 %v6026_v33, %v6025_v41  ;;  %v6032_v53 = vld [vmem:[#allocation25_spill] sm:$0xff]  ;;  %v6038_v41 = vld [vmem:[#allocation16_spill] sm:$0xff] }
 0x20a   : > { %v3260_v45 = vadd.f32 %v3259_v11, %v3229_v61  ;;  %v3756_v0 = vpack.c.bf16 %v3001_v54, %v3000_v13  ;;  %v3192_v46 = vadd.f32 %v3191_v18, %v3001_v54  ;;  %v3230_v17 = vmul.f32 %v3001_v54, %v3001_v54  ;;  %v4267_v30 = vpop.f32.mrf.mxu0  ;;  %v6033_v54 = vld [vmem:[#allocation13_spill] sm:$0xff] }
 0x20b   : > { %3809 = vst [vmem:[%s5748_s12 + $0x38] sm:$0xff] %v3761_v49   ;;  %v2965_v12 = vadd.f32 %v2886_v63, %v2763_v25  ;;  %v2766_v10 = vadd.f32 %v4230_v7, %v2560_v16  ;;  %v2687_v39 = vpop.f32.mrf.mxu1  ;;  %v2360_v22 = vadd.f32 %v6028_v20, %v6027_v52  ;;  %v3232_v21 = vmul.f32 %v3003_v58, %v3003_v58  ;;  %v6039_v20 = vld [vmem:[#allocation21_spill] sm:$0xff] }
 0x20c   : > { %3808 = vst [vmem:[%s5748_s12 + $0x30] sm:$0xff] %v3756_v0   ;;  %v3193_v51 = vadd.f32 %v3192_v46, %v3002_v48  ;;  %v3261_v24 = vadd.f32 %v3260_v45, %v3230_v17  ;;  %v2764_v55 = vadd.f32 %v2687_v39, %v2558_v15  ;;  %v2902_v56 = vpop.f32.mrf.mxu0  ;;  %v2561_v47 = vadd.f32 %v6029_v23, %v2359_v3  ;;  %v6034_v17 = vld [vmem:[#allocation15_spill] sm:$0xff] }
 0x20d   : > { %v3004_v34 = vadd.f32 %v5734_v29, %v2965_v12  ;;  %v2968_v28 = vadd.f32 %v4264_v36, %v2766_v10  ;;  %v4233_v1 = vpop.f32.mrf.mxu1  ;;  %v3006_v4 = vadd.f32 %v5734_v29, %v2967_v60  ;;  %v2564_v35 = vadd.f32 %v6031_v62, %v2362_v31  ;;  %v6036_v60 = vld [vmem:[#allocation19_spill] sm:$0xff] }
 0x20e   : > { %v3262_v32 = vadd.f32 %v3261_v24, %v3231_v57  ;;  %v3194_v14 = vadd.f32 %v3193_v51, %v3003_v58  ;;  %v2966_v44 = vadd.f32 %v2889_v8, %v2764_v55  ;;  %v4268_v38 = vpop.f32.mrf.mxu0  ;;  %v2769_v63 = vadd.f32 %v4233_v1, %v6030_v40  ;;  %v6037_v12 = vld [vmem:[#allocation3_spill] sm:$0xff] }
 0x20f   : > { %v3007_v27 = vadd.f32 %v5734_v29, %v2968_v28  ;;  %v2700_v19 = vpop.f32.mrf.mxu1  ;;  %v3233_v13 = vmul.f32 %v3004_v34, %v3004_v34  ;;  %v2562_v36 = vadd.f32 %v6032_v53, %v2360_v22  ;;  %v2363_v8 = vadd.f32 %v5696_v9, %v6033_v54  ;;  %v6041_v23 = vld [vmem:[#allocation23_spill] sm:$0xff] }
 0x210   : > { %v3195_v6 = vadd.f32 %v3194_v14, %v3004_v34  ;;  %v3263_v2 = vadd.f32 %v3262_v32, %v3232_v21  ;;  %v3005_v5 = vadd.f32 %v5734_v29, %v2966_v44  ;;  %v2905_v59 = vpop.f32.mrf.mxu0  ;;  %v2767_v48 = vadd.f32 %v2700_v19, %v2561_v47  ;;  %v6040_v44 = vld [vmem:[#allocation18_spill] sm:$0xff] }
 0x211   : > { %v3771_v42 = vpack.c.bf16 %v3007_v27, %v3006_v4  ;;  %v4234_v58 = vpop.f32.mrf.mxu1  ;;  %v2971_v16 = vadd.f32 %v4267_v30, %v2769_v63  ;;  %v3235_v25 = vmul.f32 %v3006_v4, %v3006_v4  ;;  %v2366_v3 = vadd.f32 %v6035_v43, %v6034_v17  ;;  %v6048_v17 = vld [vmem:[#allocation4_spill] sm:$0xff] }
 0x212   : > { %v3264_v37 = vadd.f32 %v3263_v2, %v3233_v13  ;;  %v3766_v50 = vpack.c.bf16 %v3005_v5, %v3004_v34  ;;  %v3196_v18 = vadd.f32 %v3195_v6, %v3005_v5  ;;  %v3234_v61 = vmul.f32 %v3005_v5, %v3005_v5  ;;  %v4271_v11 = vpop.f32.mrf.mxu0  ;;  %v6042_v5 = vld [vmem:[#allocation24_spill] sm:$0xff] }
 0x213   : > { %3811 = vst [vmem:[%s5748_s12 + $0x48] sm:$0xff] %v3771_v42   ;;  %v2969_v26 = vadd.f32 %v2902_v56, %v2767_v48  ;;  %v2770_v15 = vadd.f32 %v4234_v58, %v2564_v35  ;;  %v2703_v49 = vpop.f32.mrf.mxu1  ;;  %v2364_v10 = vadd.f32 %v6037_v12, %v6036_v60  ;;  %v3236_v30 = vmul.f32 %v3007_v27, %v3007_v27  ;;  %v6049_v12 = vld [vmem:[#allocation27_spill] sm:$0xff] }
 0x214   : > { %3810 = vst [vmem:[%s5748_s12 + $0x40] sm:$0xff] %v3766_v50   ;;  %v3197_v7 = vadd.f32 %v3196_v18, %v3006_v4  ;;  %v3265_v45 = vadd.f32 %v3264_v37, %v3234_v61  ;;  %v2768_v0 = vadd.f32 %v2703_v49, %v2562_v36  ;;  %v2918_v46 = vpop.f32.mrf.mxu0  ;;  %v2565_v33 = vadd.f32 %v6038_v41, %v2363_v8  ;;  %v6044_v18 = vld [vmem:[#allocation5_spill] sm:$0xff]  ;;  %v6046_v8 = vld [vmem:[#allocation10_spill] sm:$0xff] }
 0x215   : > { %v3008_v39 = vadd.f32 %v5734_v29, %v2969_v26  ;;  %v2972_v9 = vadd.f32 %v4268_v38, %v2770_v15  ;;  %v4237_v57 = vpop.f32.mrf.mxu1  ;;  %v3010_v31 = vadd.f32 %v5734_v29, %v2971_v16  ;;  %v2568_v38 = vadd.f32 %v6040_v44, %v2366_v3  ;;  %v6045_v61 = vld [vmem:[#allocation29_spill] sm:$0xff]  ;;  %v6047_v16 = vld [vmem:[#allocation30_spill] sm:$0xff] }
 0x216   : > { %v3266_v51 = vadd.f32 %v3265_v45, %v3235_v25  ;;  %v3198_v24 = vadd.f32 %v3197_v7, %v3007_v27  ;;  %v2970_v55 = vadd.f32 %v2905_v59, %v2768_v0  ;;  %v4272_v56 = vpop.f32.mrf.mxu0  ;;  %v2773_v22 = vadd.f32 %v4237_v57, %v6039_v20  ;;  %v6043_v59 = vld [vmem:[#allocation26_spill] sm:$0xff] }
 0x217   : > { %v3011_v52 = vadd.f32 %v5734_v29, %v2972_v9  ;;  %v2716_v34 = vpop.f32.mrf.mxu1  ;;  %v3237_v1 = vmul.f32 %v3008_v39, %v3008_v39  ;;  %v2566_v47 = vadd.f32 %v6041_v23, %v2364_v10  ;;  %v2367_v62 = vadd.f32 %v6043_v59, %v6042_v5 }
 0x218   : > { %v3199_v28 = vadd.f32 %v3198_v24, %v3008_v39  ;;  %v3267_v21 = vadd.f32 %v3266_v51, %v3236_v30  ;;  %v3009_v32 = vadd.f32 %v5734_v29, %v2970_v55  ;;  %v2921_v14 = vpop.f32.mrf.mxu0  ;;  %v2771_v27 = vadd.f32 %v2716_v34, %v2565_v33  ;;  %v6050_v24 = vld [vmem:[#allocation6_spill] sm:$0xff] }
 0x219   : > { %v3781_v4 = vpack.c.bf16 %v3011_v52, %v3010_v31  ;;  %v4238_v40 = vpop.f32.mrf.mxu1  ;;  %v2975_v35 = vadd.f32 %v4271_v11, %v2773_v22  ;;  %v3239_v48 = vmul.f32 %v3010_v31, %v3010_v31  ;;  %v2370_v54 = vadd.f32 %v6045_v61, %v6044_v18 }
 0x21a   : > { %v3268_v63 = vadd.f32 %v3267_v21, %v3237_v1  ;;  %v3776_v19 = vpack.c.bf16 %v3009_v32, %v3008_v39  ;;  %v3200_v6 = vadd.f32 %v3199_v28, %v3009_v32  ;;  %v3238_v13 = vmul.f32 %v3009_v32, %v3009_v32  ;;  %v4275_v2 = vpop.f32.mrf.mxu0 }
 0x21b   : > { %3813 = vst [vmem:[%s5748_s12 + $0x58] sm:$0xff] %v3781_v4   ;;  %v2973_v53 = vadd.f32 %v2918_v46, %v2771_v27  ;;  %v2774_v36 = vadd.f32 %v4238_v40, %v2568_v38  ;;  %v2719_v42 = vpop.f32.mrf.mxu1  ;;  %v2368_v26 = vadd.f32 %v6047_v16, %v6046_v8  ;;  %v3240_v11 = vmul.f32 %v3011_v52, %v3011_v52 }
 0x21c   : > { %3812 = vst [vmem:[%s5748_s12 + $0x50] sm:$0xff] %v3776_v19   ;;  %v3201_v58 = vadd.f32 %v3200_v6, %v3010_v31  ;;  %v3269_v37 = vadd.f32 %v3268_v63, %v3238_v13  ;;  %v2772_v50 = vadd.f32 %v2719_v42, %v2566_v47  ;;  %v2934_v7 = vpop.f32.mrf.mxu0  ;;  %v2569_v43 = vadd.f32 %v6048_v17, %v2367_v62 }
 0x21d   : > { %v3012_v15 = vadd.f32 %v5734_v29, %v2973_v53  ;;  %v2976_v49 = vadd.f32 %v4272_v56, %v2774_v36  ;;  %v4241_v25 = vpop.f32.mrf.mxu1  ;;  %v3014_v3 = vadd.f32 %v5734_v29, %v2975_v35  ;;  %v2572_v55 = vadd.f32 %v6050_v24, %v2370_v54  ;;  %v6051_v56 = vld [vmem:[#allocation28_spill] sm:$0xff] }
 0x21e   : > { %v3270_v45 = vadd.f32 %v3269_v37, %v3239_v48  ;;  %v3202_v0 = vadd.f32 %v3201_v58, %v3011_v52  ;;  %v2974_v46 = vadd.f32 %v2921_v14, %v2772_v50  ;;  %v2777_v10 = vadd.f32 %v4241_v25, %v6049_v12  ;;  %v4276_v20 = vpop.f32.mrf.mxu0 }
 0x21f   : > { %v3015_v60 = vadd.f32 %v5734_v29, %v2976_v49  ;;  %v2732_v39 = vpop.f32.mrf.mxu1  ;;  %v3241_v57 = vmul.f32 %v3012_v15, %v3012_v15  ;;  %v2570_v41 = vadd.f32 %v6051_v56, %v2368_v26  ;;  %v3243_v38 = vmul.f32 %v3014_v3, %v3014_v3 }
 0x220   : > { %v3203_v9 = vadd.f32 %v3202_v0, %v3012_v15  ;;  %v3271_v30 = vadd.f32 %v3270_v45, %v3240_v11  ;;  %v3013_v51 = vadd.f32 %v5734_v29, %v2974_v46  ;;  %v2775_v31 = vadd.f32 %v2732_v39, %v2569_v43  ;;  %v2937_v63 = vpop.f32.mrf.mxu0 }
 0x221   : > { %v3791_v33 = vpack.c.bf16 %v3015_v60, %v3014_v3  ;;  %v4242_v52 = vpop.f32.mrf.mxu1  ;;  %v2979_v21 = vadd.f32 %v4275_v2, %v2777_v10  ;;  %v3244_v19 = vmul.f32 %v3015_v60, %v3015_v60 }
 0x222   : > { %v3272_v22 = vadd.f32 %v3271_v30, %v3241_v57  ;;  %v3786_v34 = vpack.c.bf16 %v3013_v51, %v3012_v15  ;;  %v3204_v28 = vadd.f32 %v3203_v9, %v3013_v51  ;;  %v3242_v1 = vmul.f32 %v3013_v51, %v3013_v51 }
 0x223   : > { %3815 = vst [vmem:[%s5748_s12 + $0x68] sm:$0xff] %v3791_v33   ;;  %v2977_v32 = vadd.f32 %v2934_v7, %v2775_v31  ;;  %v2778_v14 = vadd.f32 %v4242_v52, %v2572_v55  ;;  %v2735_v44 = vpop.f32.mrf.mxu1  ;;  %v3018_v2 = vadd.f32 %v5734_v29, %v2979_v21 }
 0x224   : > { %3814 = vst [vmem:[%s5748_s12 + $0x60] sm:$0xff] %v3786_v34   ;;  %v3205_v23 = vadd.f32 %v3204_v28, %v3014_v3  ;;  %v3273_v47 = vadd.f32 %v3272_v22, %v3242_v1  ;;  %v2776_v4 = vadd.f32 %v2735_v44, %v2570_v41 }
 0x225   : > { %v3016_v27 = vadd.f32 %v5734_v29, %v2977_v32  ;;  %v2980_v40 = vadd.f32 %v4276_v20, %v2778_v14  ;;  %v3247_v18 = vmul.f32 %v3018_v2, %v3018_v2 }
 0x226   : > { %v3274_v6 = vadd.f32 %v3273_v47, %v3243_v38  ;;  %v3206_v13 = vadd.f32 %v3205_v23, %v3015_v60  ;;  %v2978_v5 = vadd.f32 %v2937_v63, %v2776_v4 }
 0x227   : > { %v3019_v59 = vadd.f32 %v5734_v29, %v2980_v40  ;;  %v3245_v35 = vmul.f32 %v3016_v27, %v3016_v27 }
 0x228   : > { %v3207_v62 = vadd.f32 %v3206_v13, %v3016_v27  ;;  %v3275_v53 = vadd.f32 %v3274_v6, %v3244_v19  ;;  %v3017_v36 = vadd.f32 %v5734_v29, %v2978_v5 }
 0x229   : > { %v3801_v42 = vpack.c.bf16 %v3019_v59, %v3018_v2  ;;  %v3248_v8 = vmul.f32 %v3019_v59, %v3019_v59 }
 0x22a   : > { %v3276_v48 = vadd.f32 %v3275_v53, %v3245_v35  ;;  %v3796_v58 = vpack.c.bf16 %v3017_v36, %v3016_v27  ;;  %v3208_v37 = vadd.f32 %v3207_v62, %v3017_v36  ;;  %v3246_v50 = vmul.f32 %v3017_v36, %v3017_v36 }
 0x22b   : > { %3817 = vst [vmem:[%s5748_s12 + $0x78] sm:$0xff] %v3801_v42  }
 0x22c   : > { %3816 = vst [vmem:[%s5748_s12 + $0x70] sm:$0xff] %v3796_v58   ;;  %v3209_v61 = vadd.f32 %v3208_v37, %v3018_v2  ;;  %v3277_v54 = vadd.f32 %v3276_v48, %v3246_v50 }
 0x22e   : > { %v3210_v16 = vadd.f32 %v3209_v61, %v3019_v59  ;;  %v3278_v26 = vadd.f32 %v3277_v54, %v3247_v18 }
 0x230   : > { %v3211_v15 = vrot.slane %v3210_v16, 4  ;;  %v3279_v49 = vadd.f32 %v3278_v26, %v3248_v8 }
 0x232   : > { %v3212_v25 = vadd.f32 %v3211_v15, %v3210_v16  ;;  %v3280_v7 = vrot.slane %v3279_v49, 4 }
 0x234   : > { %v3213_v11 = vrot.slane %v3212_v25, 2  ;;  %v3281_v29 = vadd.f32 %v3280_v7, %v3279_v49 }
 0x236   : > { %v3214_v45 = vadd.f32 %v3213_v11, %v3212_v25  ;;  %v3282_v0 = vrot.slane %v3281_v29, 2 }
 0x238   : > { %v3215_v46 = vrot.slane %v3214_v45, 1  ;;  %v3283_v17 = vadd.f32 %v3282_v0, %v3281_v29 }
 0x23a   : > { %v3284_v43 = vrot.slane %v3283_v17, 1  ;;  %v3216_v3 = vadd.f32 %v3215_v46, %v3214_v45 }
 0x23c   : > { %v3285_v60 = vadd.f32 %v3284_v43, %v3283_v17 }
 0x23e   : > { %v3287_v12 = vsel %vm3286_vm8, %v3216_v3, %v3285_v60 }
 0x23f   : > { %3288 = vst [vmem:[%s260_s20] sm:$0x3] %v3287_v12 }
 0x240 PF: > { %s15_s17 = sadd.s32 1, %s4358_s17   ;;  %s6052_s15 = smov %s4354_s16 }
 0x241   : > { %p12_p5 = scmp.ge.s32.totalorder %s15_s17, 4   ;;  %s6053_s16 = smov %s6055_s18 }
 0x243   :  { %14 = sbr.rel (!%p12_p5) target bundleno = 2 (0x2), region = 74 }

// kernel: unet_conv2d.6
= control target key start
LH: loop header
LB: loop body
LE: loop exit
PB: predicated region body
PF: predicated region fallthrough
CT: control target
= control target key end

     0   :  { %s3972_s15 = smov 0   ;;  %s3974_s16 = smov 0   ;;  %s5418_s0 = inlined_call_operand.vmem [shape: bf16[2,18,18,128], index: 0, kind: input, shape index: {}]   ;;  %s5419_s1 = inlined_call_operand.vmem [shape: bf16[1152,128], index: 1, kind: input, shape index: {}]   ;;  %s5420_s2 = inlined_call_operand.vmem [shape: f32[1,128], index: 2, kind: input, shape index: {}]   ;;  %s5421_s3 = inlined_call_operand.vmem [shape: bf16[2,16,16,128], index: 3, kind: output, shape index: {0}]   ;;  %s5422_s4 = inlined_call_operand.vmem [shape: f32[2,1,2,128], index: 4, kind: output, shape index: {1}]  }
   0x1   :  { %s3976_s17 = smov 0  }
   0x2 LB: > { %s27_s18 = sadd.s32 1, %s3941_s16  ;;  %p2948_p0 = scmp.ge.s32.totalorder %s3945_s17, 1  ;;  %s3945_s17 = sphi %s3976_s17, %s15_s17   ;;  %s3941_s16 = sphi %s3974_s16, %s5475_s16   ;;  %s3937_s15 = sphi %s3972_s15, %s5474_s15  }
   0x3   : > { %p29_p1 = scmp.ge.s32.totalorder %s27_s18, 2  ;;  %p189_p2 = scmp.lt.s32.totalorder %s3945_s17, 3 }
   0x5   : > { %s5477_s18 = smov (%p29_p1, %s27_s18), 0  ;;  %p190_p3 = pnand %p2948_p0, %p189_p2 }
   0x7   : > { %193 = sbr.rel (%p190_p3) target bundleno = 554 (0x22a), region = 32 }
   0xc   : > { %v3821_v0 = vld [vmem:[%s5419_s1 + $0x78] sm:$0xff]   ;;  %p233_p4 = scmp.lt.s32.totalorder %s3937_s15, 1  ;;  %v3823_v2 = vld [vmem:[%s5419_s1 + $0x70] sm:$0xff]   ;;  %v3825_v4 = vld [vmem:[%s5419_s1 + $0x68] sm:$0xff]   ;;  %vm316_vm0 = vsmask.f32 3328 }
   0xd   : > { %v3822_v1 = vld [vmem:[%s5419_s1 + $0x38] sm:$0xff]   ;;  %3260 = vmatprep.subr.bf16.mxu0 %v3821_v0  ;;  %3780 = vmatprep.subr.bf16.mxu1 %v3821_v0  ;;  %v3824_v3 = vld [vmem:[%s5419_s1 + $0x30] sm:$0xff]   ;;  %v3826_v5 = vld [vmem:[%s5419_s1 + $0x28] sm:$0xff]   ;;  %vm317_vm1 = vsmask.f32 7440  ;;  %vm751_vm3 = vcmask 1042432  }
   0xe   : > { %3261 = vmatpush3.bf16.msra.mxu0 %v3822_v1  ;;  %3788 = vmatpush3.bf16.msra.mxu1 %v3822_v1  ;;  %s5479_s15 = smov (!%p233_p4, %s3937_s15), 1  ;;  %v3827_v6 = vld [vmem:[%s5419_s1 + $0x60] sm:$0xff]   ;;  %v3829_v8 = vld [vmem:[%s5419_s1 + $0x58] sm:$0xff]   ;;  %v3831_v10 = vld [vmem:[%s5419_s1 + $0x50] sm:$0xff]   ;;  %vm752_vm4 = vcmask 1046532   ;;  %vm2804_vm6 = vcmask 1040384  }
   0xf   : > { %3262 = vmatprep.subr.bf16.mxu0 %v3823_v2  ;;  %3781 = vmatprep.subr.bf16.mxu1 %v3823_v2  ;;  %s3796_s7 = smul.u32 216, %s5479_s15  ;;  %v3828_v7 = vld [vmem:[%s5419_s1 + $0x20] sm:$0xff]   ;;  %v3830_v9 = vld [vmem:[%s5419_s1 + $0x18] sm:$0xff]   ;;  %v3832_v16 = vld [vmem:[%s5419_s1 + $0x10] sm:$0xff]   ;;  %s2952_s24 = sshll.u32 %s5479_s15, 1 }
  0x10   : > { %v3833_v21 = vld [vmem:[%s5419_s1 + $0x48] sm:$0xff]   ;;  %v3835_v36 = vld [vmem:[%s5419_s1 + $0x40] sm:$0xff]   ;;  %vm4068_vm2 = vmor %vm316_vm0, %vm317_vm1  ;;  %s260_s27 = scalar_lea.vmem %s5422_s4, %s2952_s24 }
  0x11   : > { %s4023_s14 = scalar_lea.vmem %s5418_s0, %s3796_s7  ;;  %v3834_v31 = vld [vmem:[%s5419_s1 + $0x8] sm:$0xff]   ;;  %v3836_v50 = vld [vmem:[%s5419_s1] sm:$0xff]   ;;  %v3839_v57 = vld [vmem:[%s5419_s1 + $0xf8] sm:$0xff]  }
  0x12   : > { %3263 = vmatpush3.bf16.msra.mxu0 %v3824_v3  ;;  %3789 = vmatpush3.bf16.msra.mxu1 %v3824_v3  ;;  %v4032_v11 = vld [vmem:[%s4023_s14] sm:$0xf]  ;;  %v4035_v12 = vld [vmem:[%s4023_s14 + $0x4] sm:$0xf]  ;;  %v4038_v13 = vld [vmem:[%s4023_s14 + $0x8] sm:$0x1] }
  0x13   : > { %3264 = vmatprep.subr.bf16.mxu0 %v3825_v4  ;;  %3782 = vmatprep.subr.bf16.mxu1 %v3825_v4  ;;  %v320_v14 = vshrl.u32 %v4032_v11, 16  ;;  %v323_v15 = vshll.u32 %v4032_v11, 16  ;;  %v329_v17 = vshll.u32 %v4035_v12, 16  ;;  %v333_v18 = vshrl.u32 %v4035_v12, 16  ;;  %v4049_v20 = vld [vmem:[%s4023_s14 + $0x90] sm:$0xf]  ;;  %vm4261_vm5 = vmor %vm751_vm3, %vm752_vm4 }
  0x14   : > { %v339_v19 = vshll.u32 %v4038_v13, 16  ;;  %v2953_v24 = vrot.slane %v4032_v11, 9  ;;  %v299_v25 = vld [vmem:[%s4023_s14 + $0x94] sm:$0xf]  ;;  %v756_v28 = vrot.slane %v4035_v12, 5  ;;  %v608_v30 = vshrl.u32 %v4049_v20, 16 }
  0x15   : > { %v322_v22 = vrot.slane %v320_v14, 4  ;;  %v325_v23 = vrot.slane %v323_v15, 5  ;;  %v331_v26 = vrot.slane %v329_v17, 5  ;;  %v335_v27 = vrot.slane %v333_v18, 4  ;;  %v300_v29 = vld [vmem:[%s4023_s14 + $0x98] sm:$0x1] }
  0x16   : > { %3265 = vmatpush3.bf16.msra.mxu0 %v3826_v5  ;;  %3790 = vmatpush3.bf16.msra.mxu1 %v3826_v5  ;;  %v341_v33 = vrot.slane %v339_v19, 5  ;;  %v611_v34 = vshll.u32 %v4049_v20, 16  ;;  %v617_v35 = vshll.u32 %v299_v25, 16  ;;  %v610_v39 = vrot.slane %v608_v30, 4  ;;  %v3840_v60 = vld [vmem:[%s5419_s1 + $0x178] sm:$0xff]  }
  0x17   : > { %3266 = vmatprep.subr.bf16.mxu0 %v3827_v6  ;;  %3783 = vmatprep.subr.bf16.mxu1 %v3827_v6  ;;  %v326_v32 = vor.u32 %v325_v23, %v322_v22  ;;  %v336_v38 = vor.u32 %v335_v27, %v331_v26  ;;  %v621_v40 = vshrl.u32 %v299_v25, 16  ;;  %v627_v41 = vshll.u32 %v300_v29, 16  ;;  %v4093_v61 = vld [vmem:[%s4023_s14 + $0xc] sm:$0xf]  ;;  %v4096_v62 = vld [vmem:[%s4023_s14 + $0x10] sm:$0xf] }
  0x18   : > { %v759_v43 = vrot.slane %v4038_v13, 5  ;;  %v613_v44 = vrot.slane %v611_v34, 5  ;;  %v619_v45 = vrot.slane %v617_v35, 5  ;;  %v4075_v47 = vrot.slane %v756_v28, 4  ;;  %v3841_v0 = vld [vmem:[%s5419_s1 + $0xb8] sm:$0xff]   ;;  %v3847_v35 = vld [vmem:[%s5419_s1 + $0xe8] sm:$0xff]  }
  0x19   : > { %v327_v42 = vrot.slane %v326_v32, 4  ;;  %v337_v46 = vrot.slane %v336_v38, 4  ;;  %v623_v48 = vrot.slane %v621_v40, 4  ;;  %v629_v49 = vrot.slane %v627_v41, 5  ;;  %v3842_v1 = vld [vmem:[%s5419_s1 + $0x138] sm:$0xff]   ;;  %v3871_v13 = vld [vmem:[%s5419_s1 + $0x120] sm:$0xff]  }
  0x1a   : > { %3267 = vmatpush3.bf16.msra.mxu0 %v3828_v7  ;;  %3791 = vmatpush3.bf16.msra.mxu1 %v3828_v7  ;;  %v614_v52 = vor.u32 %v613_v44, %v610_v39  ;;  %v2971_v59 = vcombine.low %v4032_v11, %v4035_v12  ;;  %v4107_v2 = vld [vmem:[%s4023_s14 + $0x14] sm:$0x1]  ;;  %v344_v3 = vshrl.u32 %v4093_v61, 16  ;;  %v347_v4 = vshll.u32 %v4093_v61, 16  ;;  %v302_v14 = vld [vmem:[%s4023_s14 + $0xa0] sm:$0xf] }
  0x1b   : > { %3268 = vmatprep.subr.bf16.mxu0 %v3829_v8  ;;  %3784 = vmatprep.subr.bf16.mxu1 %v3829_v8  ;;  %v332_v51 = vsel %vm4068_vm2, %v327_v42, %v331_v26  ;;  %v342_v53 = vsel %vm4068_vm2, %v337_v46, %v341_v33  ;;  %v624_v54 = vor.u32 %v623_v48, %v619_v45  ;;  %v353_v5 = vshll.u32 %v4096_v62, 16  ;;  %v3844_v26 = vld [vmem:[%s5419_s1 + $0xb0] sm:$0xff]  }
  0x1c   : > { %v2987_v55 = vcombine.low %v332_v51, %v342_v53  ;;  %v615_v56 = vrot.slane %v614_v52, 4  ;;  %v4115_v7 = vcombine.low %v4049_v20, %v299_v25  ;;  %v357_v8 = vshrl.u32 %v4096_v62, 16  ;;  %v3850_v44 = vld [vmem:[%s5419_s1 + $0x170] sm:$0xff]   ;;  %v3848_v51 = vld [vmem:[%s5419_s1 + $0xa8] sm:$0xff]  }
  0x1d   : > { %v625_v58 = vrot.slane %v624_v54, 4  ;;  %v346_v17 = vrot.slane %v344_v3, 4  ;;  %v349_v18 = vrot.slane %v347_v4, 5  ;;  %v355_v19 = vrot.slane %v353_v5, 5  ;;  %v3852_v54 = vld [vmem:[%s5419_s1 + $0x130] sm:$0xff]  }
  0x1e   : > { %3269 = vmatpush3.bf16.msra.mxu0 %v3830_v9  ;;  %3792 = vmatpush3.bf16.msra.mxu1 %v3830_v9  ;;  %v620_v63 = vsel %vm4068_vm2, %v615_v56, %v619_v45  ;;  %v363_v9 = vshll.u32 %v4107_v2, 16  ;;  %v359_v20 = vrot.slane %v357_v8, 4  ;;  %v641_v29 = vshll.u32 %v302_v14, 16  ;;  %v4158_v56 = vld [vmem:[%s4023_s14 + $0x1c] sm:$0xf] }
  0x1f   : > { %3270 = vmatprep.subr.bf16.mxu0 %v3831_v10  ;;  %3785 = vmatprep.subr.bf16.mxu1 %v3831_v10  ;;  %v630_v6 = vsel %vm4068_vm2, %v625_v58, %v629_v49  ;;  %v301_v10 = vld [vmem:[%s4023_s14 + $0x9c] sm:$0xf]  ;;  %v350_v27 = vor.u32 %v349_v18, %v346_v17  ;;  %v645_v30 = vshrl.u32 %v302_v14, 16  ;;  %v3849_v58 = vld [vmem:[%s5419_s1 + $0xe0] sm:$0xff]   ;;  %v381_v4 = vshrl.u32 %v4158_v56, 16 }
  0x20   : > { %1765 = vmatprep.mubr.bf16.mxu0 %v2987_v55  ;;  %v4121_v15 = vcombine.low %v620_v63, %v630_v6  ;;  %v365_v22 = vrot.slane %v363_v9, 5  ;;  %v632_v23 = vshrl.u32 %v301_v10, 16  ;;  %v635_v25 = vshll.u32 %v301_v10, 16  ;;  %v4155_v55 = vld [vmem:[%s4023_s14 + $0x18] sm:$0xf] }
  0x21   : > { %v360_v32 = vor.u32 %v359_v20, %v355_v19  ;;  %v643_v38 = vrot.slane %v641_v29, 5  ;;  %v647_v39 = vrot.slane %v645_v30, 4  ;;  %v371_v63 = vshll.u32 %v4155_v55, 16  ;;  %v304_v6 = vld [vmem:[%s4023_s14 + $0xa8] sm:$0xf]  ;;  %v3855_v29 = vld [vmem:[%s5419_s1 + $0xd8] sm:$0xff]  }
  0x22   : > { %3271 = vmatpush3.bf16.msra.mxu0 %v3832_v16  ;;  %3793 = vmatpush3.bf16.msra.mxu1 %v3832_v16  ;;  %5436 = vst [vmem:[#allocation2_spill] sm:$0xff] %v4121_v15  ;;  %v3843_v16 = vld [vmem:[%s5419_s1 + $0xf0] sm:$0xff]   ;;  %v634_v33 = vrot.slane %v632_v23, 4  ;;  %v637_v34 = vrot.slane %v635_v25, 5  ;;  %v4174_v3 = vcombine.low %v301_v10, %v302_v14  ;;  %v305_v8 = vld [vmem:[%s4023_s14 + $0xac] sm:$0xf] }
  0x23   : > { %3272 = vmatprep.subr.bf16.mxu0 %v3833_v21  ;;  %3786 = vmatprep.subr.bf16.mxu1 %v3833_v21  ;;  %v303_v21 = vld [vmem:[%s4023_s14 + $0xa4] sm:$0x1]  ;;  %v361_v41 = vrot.slane %v360_v32, 4  ;;  %v648_v46 = vor.u32 %v647_v39, %v643_v38  ;;  %v373_v18 = vrot.slane %v371_v63, 5  ;;  %v306_v10 = vld [vmem:[%s4023_s14 + $0xb0] sm:$0x1] }
  0x24   : > { %1861 = vmatprep.mubr.bf16.mxu1 %v4121_v15  ;;  %v638_v42 = vor.u32 %v637_v34, %v634_v33  ;;  %v383_v14 = vrot.slane %v381_v4, 4  ;;  %v656_v20 = vshrl.u32 %v304_v6, 16  ;;  %v665_v25 = vshll.u32 %v305_v8, 16  ;;  %v3856_v33 = vld [vmem:[%s5419_s1 + $0x98] sm:$0xff]   ;;  %v4602_v15 = vld [vmem:[%s4023_s14 + $0x8c] sm:$0x1] }
  0x25   : > { %v366_v48 = vsel %vm4068_vm2, %v361_v41, %v365_v22  ;;  %v649_v53 = vrot.slane %v648_v46, 4  ;;  %v659_v22 = vshll.u32 %v304_v6, 16  ;;  %v4204_v46 = vcombine.low %v304_v6, %v305_v8  ;;  %v3862_v6 = vld [vmem:[%s5419_s1 + $0x168] sm:$0xff]  }
  0x26   : > { %3273 = vmatpush3.bf16.msra.mxu0 %v3834_v31  ;;  %3794 = vmatpush3.bf16.msra.mxu1 %v3834_v31  ;;  %v651_v31 = vshll.u32 %v303_v21, 16  ;;  %v639_v49 = vrot.slane %v638_v42, 4 }
  0x27   : > { %3274 = vmatprep.subr.bf16.mxu0 %v3835_v36  ;;  %3787 = vmatprep.subr.bf16.mxu1 %v3835_v36  ;;  %v351_v36 = vrot.slane %v350_v27, 4  ;;  %v675_v27 = vshll.u32 %v306_v10, 16  ;;  %v661_v32 = vrot.slane %v659_v22, 5  ;;  %v3861_v10 = vld [vmem:[%s5419_s1 + $0xc8] sm:$0xff]   ;;  %v309_v22 = vld [vmem:[%s4023_s14 + $0xbc] sm:$0x1] }
  0x28   : > { %v653_v40 = vrot.slane %v651_v31, 5  ;;  %v658_v31 = vrot.slane %v656_v20, 4 }
  0x29   : > { %v356_v45 = vsel %vm4068_vm2, %v351_v36, %v355_v19  ;;  %v677_v41 = vrot.slane %v675_v27, 5 }
  0x2a   : > { %3275 = vmatpush3.bf16.msra.mxu0 %v3836_v50  ;;  %3795 = vmatpush3.bf16.msra.mxu1 %v3836_v50  ;;  %v4144_v50 = vcombine.low %v4093_v61, %v4096_v62  ;;  %v4149_v52 = vcombine.low %v356_v45, %v366_v48  ;;  %v4202_v45 = vcombine.low %v4155_v55, %v4158_v56  ;;  %v4207_v48 = vld [vmem:[%s4023_s14 + $0x24] sm:$0xf] }
  0x2b   : > { %3372 = vmatprep.subr.bf16.mxu1 %v3839_v57  ;;  %3484 = vmatprep.subr.bf16.mxu0 %v3840_v60  ;;  %v644_v57 = vsel %vm4068_vm2, %v639_v49, %v643_v38  ;;  %v368_v60 = vshrl.u32 %v4155_v55, 16  ;;  %v3857_v38 = vld [vmem:[%s5419_s1 + $0xd0] sm:$0xff]   ;;  %v4210_v49 = vld [vmem:[%s4023_s14 + $0x28] sm:$0xf] }
  0x2c   : > { %v405_v4 = vshrl.u32 %v4210_v49, 16 }
  0x2d   : > { %1766 = vmatmul.mubr.bf16.vlgmr.msra.gmra.mxu0 %v2971_v59  ;;  %1862 = vmatmul.mubr.bf16.vlgmr.msra.gmra.mxu1 %v4115_v7  ;;  %v4166_v59 = vld [vmem:[%s4023_s14 + $0x20] sm:$0x1]  ;;  %v370_v17 = vrot.slane %v368_v60, 4  ;;  %v395_v60 = vshll.u32 %v4207_v48, 16 }
  0x2e   : > { %3373 = vmatpush3.bf16.msra.mxu1 %v3841_v0  ;;  %3485 = vmatpush3.bf16.msra.mxu0 %v3842_v1  ;;  %v377_v0 = vshll.u32 %v4158_v56, 16  ;;  %v654_v1 = vsel %vm4068_vm2, %v649_v53, %v653_v40  ;;  %v387_v5 = vshll.u32 %v4166_v59, 16  ;;  %v662_v40 = vor.u32 %v661_v32, %v658_v31 }
  0x2f   : > { %3374 = vmatprep.subr.bf16.mxu1 %v3843_v16  ;;  %3486 = vmatprep.subr.bf16.mxu0 %v3850_v44  ;;  %v4180_v9 = vcombine.low %v644_v57, %v654_v1  ;;  %v3851_v16 = vld [vmem:[%s5419_s1 + $0xa0] sm:$0xff]   ;;  %v374_v23 = vor.u32 %v373_v18, %v370_v17  ;;  %v4218_v57 = vld [vmem:[%s4023_s14 + $0x2c] sm:$0x1]  ;;  %v401_v1 = vshll.u32 %v4210_v49, 16  ;;  %v397_v17 = vrot.slane %v395_v60, 5 }
  0x30   : > { %1773 = vmatprep.mubr.bf16.mxu0 %v4149_v52  ;;  %v379_v19 = vrot.slane %v377_v0, 5  ;;  %v389_v21 = vrot.slane %v387_v5, 5  ;;  %v663_v53 = vrot.slane %v662_v40, 4  ;;  %v4227_v5 = vld [vmem:[%s4023_s14 + $0xb4] sm:$0xf]  ;;  %v411_v18 = vshll.u32 %v4218_v57, 16 }
  0x31   : > { %5437 = vst [vmem:[#allocation3_spill] sm:$0xff] %v4180_v9  ;;  %1869 = vmatprep.mubr.bf16.mxu1 %v4180_v9  ;;  %v375_v34 = vrot.slane %v374_v23, 4  ;;  %v407_v20 = vrot.slane %v405_v4, 4  ;;  %v680_v23 = vshrl.u32 %v4227_v5, 16  ;;  %v3866_v60 = vld [vmem:[%s5419_s1 + $0x80] sm:$0xff]   ;;  %v4278_v4 = vcombine.low %v4207_v48, %v4210_v49 }
  0x32   : > { %3375 = vmatpush3.bf16.msra.mxu1 %v3844_v26  ;;  %3487 = vmatpush3.bf16.msra.mxu0 %v3852_v54  ;;  %v669_v26 = vshrl.u32 %v305_v8, 16  ;;  %v384_v30 = vor.u32 %v383_v14, %v379_v19  ;;  %v3858_v54 = vld [vmem:[%s5419_s1 + $0x90] sm:$0xff]  }
  0x33   : > { %3376 = vmatprep.subr.bf16.mxu1 %v3847_v35  ;;  %v667_v35 = vrot.slane %v665_v25, 5  ;;  %v380_v42 = vsel %vm4068_vm2, %v375_v34, %v379_v19  ;;  %v4236_v19 = vld [vmem:[%s4023_s14 + $0xb8] sm:$0xf]  ;;  %v3864_v25 = vld [vmem:[%s5419_s1 + $0x128] sm:$0xff]   ;;  %3488 = vmatprep.subr.bf16.mxu0 %v3862_v6  ;;  %v682_v32 = vrot.slane %v680_v23, 4  ;;  %5441 = vst [vmem:[#allocation5_spill] sm:$0xff] %v4278_v4 }
  0x34   : > { %v671_v36 = vrot.slane %v669_v26, 4  ;;  %v385_v39 = vrot.slane %v384_v30, 4  ;;  %v683_v30 = vshll.u32 %v4227_v5, 16  ;;  %v693_v34 = vshrl.u32 %v4236_v19, 16  ;;  %v3868_v6 = vld [vmem:[%s5419_s1 + $0x1f8] sm:$0xff]  }
  0x35   : > { %1774 = vmatmul.mubr.bf16.gmra.mxu0 %v4144_v50  ;;  %1870 = vmatmul.mubr.bf16.gmra.mxu1 %v4174_v3  ;;  %v668_v8 = vsel %vm4068_vm2, %v663_v53, %v667_v35  ;;  %v4329_v23 = vcombine.low %v4227_v5, %v4236_v19 }
  0x36   : > { %3377 = vmatpush3.bf16.msra.mxu1 %v3848_v51  ;;  %v672_v44 = vor.u32 %v671_v36, %v667_v35  ;;  %v390_v51 = vsel %vm4068_vm2, %v385_v39, %v389_v21  ;;  %v403_v21 = vrot.slane %v401_v1, 5  ;;  %3489 = vmatpush3.bf16.msra.mxu0 %v3864_v25  ;;  %v685_v36 = vrot.slane %v683_v30, 5  ;;  %v3863_v39 = vld [vmem:[%s5419_s1 + $0x88] sm:$0xff]  }
  0x37   : > { %3378 = vmatprep.subr.bf16.mxu1 %v3849_v58  ;;  %v392_v58 = vshrl.u32 %v4207_v48, 16  ;;  %v4222_v63 = vcombine.low %v380_v42, %v390_v51  ;;  %v3865_v51 = vld [vmem:[%s5419_s1 + $0xc0] sm:$0xff]  }
  0x38   : > { %v673_v0 = vrot.slane %v672_v44, 4  ;;  %v408_v31 = vor.u32 %v407_v20, %v403_v21  ;;  %v695_v44 = vrot.slane %v693_v34, 4  ;;  %v4307_v20 = vsel %vm4261_vm5, %v2953_v24, %v756_v28  ;;  %v3874_v24 = vld [vmem:[%s5419_s1 + $0x158] sm:$0xff]  }
  0x39   : > { %1781 = vmatprep.mubr.bf16.mxu0 %v4222_v63 }
  0x3a   : > { %3379 = vmatpush3.bf16.msra.mxu1 %v3851_v16  ;;  %v394_v16 = vrot.slane %v392_v58, 4  ;;  %v678_v14 = vsel %vm4068_vm2, %v673_v0, %v677_v41  ;;  %v409_v41 = vrot.slane %v408_v31, 4 }
  0x3b   : > { %3380 = vmatprep.subr.bf16.mxu1 %v3855_v29  ;;  %v4249_v26 = vcombine.low %v668_v8, %v678_v14  ;;  %v413_v29 = vrot.slane %v411_v18, 5  ;;  %v4293_v18 = vsel %vm4261_vm5, %v4075_v47, %v759_v43  ;;  %v4296_v14 = vld [vmem:[%s4023_s14 + $0x30] sm:$0xf]  ;;  %v4316_v47 = vld [vmem:[%s4023_s14 + $0x38] sm:$0x1] }
  0x3c   : > { %v398_v27 = vor.u32 %v397_v17, %v394_v16  ;;  %v3870_v17 = vld [vmem:[%s5419_s1 + $0x160] sm:$0xff]   ;;  %v419_v12 = vshll.u32 %v4296_v14, 16 }
  0x3d   : > { %5438 = vst [vmem:[#allocation4_spill] sm:$0xff] %v4249_v26  ;;  %1782 = vmatmul.mubr.bf16.gmra.mxu0 %v4202_v45  ;;  %1877 = vmatprep.mubr.bf16.mxu1 %v4249_v26  ;;  %v414_v0 = vsel %vm4068_vm2, %v409_v41, %v413_v29 }
  0x3e   : > { %3381 = vmatpush3.bf16.msra.mxu1 %v3856_v33  ;;  %v689_v33 = vshll.u32 %v4236_v19, 16  ;;  %v399_v35 = vrot.slane %v398_v27, 4  ;;  %3490 = vmatprep.subr.bf16.mxu0 %v3870_v17  ;;  %v435_v27 = vshll.u32 %v4316_v47, 16  ;;  %v421_v31 = vrot.slane %v419_v12, 5  ;;  %v4376_v12 = vld [vmem:[%s4023_s14 + $0x50] sm:$0x1] }
  0x3f   : > { %3382 = vmatprep.subr.bf16.mxu1 %v3857_v38  ;;  %v699_v38 = vshll.u32 %v309_v22, 16  ;;  %1878 = vmatmul.mubr.bf16.gmra.mxu1 %v4204_v46  ;;  %v416_v22 = vshrl.u32 %v4296_v14, 16 }
  0x40   : > { %v691_v42 = vrot.slane %v689_v33, 5  ;;  %v404_v53 = vsel %vm4068_vm2, %v399_v35, %v403_v21  ;;  %v4299_v21 = vld [vmem:[%s4023_s14 + $0x34] sm:$0xf]  ;;  %3491 = vmatpush3.bf16.msra.mxu0 %v3871_v13  ;;  %v437_v34 = vrot.slane %v435_v27, 5  ;;  %v3003_v35 = vcombine.low %v4307_v20, %v4293_v18 }
  0x41   : > { %v701_v58 = vrot.slane %v699_v38, 5  ;;  %v4283_v8 = vcombine.low %v404_v53, %v414_v0  ;;  %v425_v11 = vshll.u32 %v4299_v21, 16  ;;  %v429_v25 = vshrl.u32 %v4299_v21, 16  ;;  %3492 = vmatprep.subr.bf16.mxu0 %v3874_v24  ;;  %v4343_v38 = vld [vmem:[%s4023_s14 + $0x40] sm:$0xf] }
  0x42   : > { %3383 = vmatpush3.bf16.msra.mxu1 %v3858_v54  ;;  %v686_v54 = vor.u32 %v685_v36, %v682_v32  ;;  %v696_v1 = vor.u32 %v695_v44, %v691_v42  ;;  %v418_v30 = vrot.slane %v416_v22, 4  ;;  %v4340_v36 = vld [vmem:[%s4023_s14 + $0x3c] sm:$0xf]  ;;  %v4359_v0 = vld [vmem:[%s4023_s14 + $0x48] sm:$0xf]  ;;  %v2954_v22 = vrot.slane %v4093_v61, 9 }
  0x43   : > { %3384 = vmatprep.subr.bf16.mxu1 %v3861_v10  ;;  %1789 = vmatprep.mubr.bf16.mxu0 %v4283_v8  ;;  %v427_v32 = vrot.slane %v425_v11, 5  ;;  %v431_v33 = vrot.slane %v429_v25, 4  ;;  %v443_v44 = vshll.u32 %v4340_v36, 16  ;;  %v3879_v11 = vld [vmem:[%s5419_s1 + $0x150] sm:$0xff]   ;;  %v763_v25 = vrot.slane %v4096_v62, 5 }
  0x44   : > { %v687_v16 = vrot.slane %v686_v54, 4  ;;  %v697_v10 = vrot.slane %v696_v1, 4  ;;  %v422_v5 = vor.u32 %v421_v31, %v418_v30  ;;  %v4354_v54 = vcombine.low %v4296_v14, %v4299_v21 }
  0x45   : > { %1790 = vmatmul.mubr.bf16.gmra.mxu0 %v4278_v4  ;;  %v432_v19 = vor.u32 %v431_v33, %v427_v32  ;;  %v445_v17 = vrot.slane %v443_v44, 5  ;;  %v766_v27 = vrot.slane %v4107_v2, 5  ;;  %v464_v31 = vshrl.u32 %v4359_v0, 16  ;;  %v3875_v33 = vld [vmem:[%s5419_s1 + $0x1f0] sm:$0xff]  }
  0x46   : > { %3385 = vmatpush3.bf16.msra.mxu1 %v3863_v39  ;;  %v692_v43 = vsel %vm4068_vm2, %v687_v16, %v691_v42  ;;  %v702_v28 = vsel %vm4068_vm2, %v697_v10, %v701_v58  ;;  %v4346_v39 = vld [vmem:[%s4023_s14 + $0x44] sm:$0x1]  ;;  %v423_v41 = vrot.slane %v422_v5, 4  ;;  %v440_v42 = vshrl.u32 %v4340_v36, 16  ;;  %5443 = vst [vmem:[#allocation7_spill] sm:$0xff] %v4354_v54 }
  0x47   : > { %3386 = vmatprep.subr.bf16.mxu1 %v3865_v51  ;;  %v4333_v29 = vcombine.low %v692_v43, %v702_v28  ;;  %v449_v51 = vshll.u32 %v4343_v38, 16  ;;  %v433_v53 = vrot.slane %v432_v19, 4  ;;  %v453_v58 = vshrl.u32 %v4343_v38, 16  ;;  %v4370_v10 = vld [vmem:[%s4023_s14 + $0x4c] sm:$0xf]  ;;  %v3877_v19 = vld [vmem:[%s5419_s1 + $0x1b0] sm:$0xff]  }
  0x48   : > { %v428_v1 = vsel %vm4068_vm2, %v423_v41, %v427_v32  ;;  %v442_v16 = vrot.slane %v440_v42, 4  ;;  %v467_v32 = vshll.u32 %v4359_v0, 16  ;;  %v473_v61 = vshll.u32 %v4370_v10, 16  ;;  %v3880_v41 = vld [vmem:[%s5419_s1 + $0x110] sm:$0xff]  }
  0x49   : > { %5442 = vst [vmem:[#allocation6_spill] sm:$0xff] %v4333_v29  ;;  %1885 = vmatprep.mubr.bf16.mxu1 %v4333_v29  ;;  %v451_v18 = vrot.slane %v449_v51, 5  ;;  %v438_v20 = vsel %vm4068_vm2, %v433_v53, %v437_v34  ;;  %v455_v13 = vrot.slane %v453_v58, 4  ;;  %v764_v62 = vsel %vm4261_vm5, %v2954_v22, %v763_v25 }
  0x4a   : > { %3387 = vmatpush3.bf16.msra.mxu1 %v3866_v60  ;;  %v459_v60 = vshll.u32 %v4346_v39, 16  ;;  %v4381_v24 = vcombine.low %v428_v1, %v438_v20  ;;  %v446_v28 = vor.u32 %v445_v17, %v442_v16  ;;  %v765_v5 = vrot.slane %v763_v25, 4  ;;  %v4420_v20 = vld [vmem:[%s4023_s14 + $0x58] sm:$0xf]  ;;  %v4429_v25 = vld [vmem:[%s4023_s14 + $0x5c] sm:$0x1] }
  0x4b   : > { %3596 = vmatprep.subr.bf16.mxu1 %v3868_v6  ;;  %1886 = vmatmul.mubr.bf16.gmra.mxu1 %v4329_v23  ;;  %v3869_v6 = vld [vmem:[%s5419_s1 + $0x1b8] sm:$0xff]   ;;  %v456_v30 = vor.u32 %v455_v13, %v451_v18  ;;  %v477_v2 = vshrl.u32 %v4370_v10, 16  ;;  %v466_v44 = vrot.slane %v464_v31, 4  ;;  %v469_v51 = vrot.slane %v467_v32, 5  ;;  %v3882_v13 = vld [vmem:[%s5419_s1 + $0x1e8] sm:$0xff]  }
  0x4c   : > { %1926 = vmatprep.mubr.bf16.mxu1 %v4144_v50  ;;  %v3876_v50 = vld [vmem:[%s5419_s1 + $0x118] sm:$0xff]   ;;  %v461_v43 = vrot.slane %v459_v60, 5  ;;  %1797 = vmatprep.mubr.bf16.mxu0 %v4381_v24  ;;  %v447_v34 = vrot.slane %v446_v28, 4  ;;  %v475_v53 = vrot.slane %v473_v61, 5  ;;  %v767_v60 = vsel %vm4261_vm5, %v765_v5, %v766_v27 }
  0x4d   : > { %3493 = vmatpush3.bf16.msra.mxu0 %v3876_v50  ;;  %v457_v42 = vrot.slane %v456_v30, 4  ;;  %v479_v50 = vrot.slane %v477_v2, 4  ;;  %v483_v1 = vshll.u32 %v4376_v12, 16  ;;  %v4412_v16 = vcombine.low %v4340_v36, %v4343_v38  ;;  %v4441_v2 = vld [vmem:[%s4023_s14 + $0x60] sm:$0xf] }
  0x4e   : > { %3494 = vmatprep.subr.bf16.mxu0 %v3879_v11  ;;  %1798 = vmatmul.mubr.bf16.gmra.mxu0 %v4354_v54  ;;  %v452_v58 = vsel %vm4068_vm2, %v447_v34, %v451_v18  ;;  %v470_v17 = vor.u32 %v469_v51, %v466_v44  ;;  %v4417_v18 = vld [vmem:[%s4023_s14 + $0x54] sm:$0xf]  ;;  %v2955_v28 = vrot.slane %v4155_v55, 9  ;;  %v770_v30 = vrot.slane %v4158_v56, 5  ;;  %v4446_v44 = vld [vmem:[%s4023_s14 + $0x64] sm:$0xf] }
  0x4f   : > { %5444 = vst [vmem:[#allocation8_spill] sm:$0xff] %v4412_v16  ;;  %v480_v11 = vor.u32 %v479_v50, %v475_v53  ;;  %v773_v31 = vrot.slane %v4166_v59, 5  ;;  %v488_v32 = vshrl.u32 %v4417_v18, 16  ;;  %v497_v55 = vshll.u32 %v4420_v20, 16  ;;  %v3883_v51 = vld [vmem:[%s5419_s1 + $0x1a8] sm:$0xff]  }
  0x50   : > { %v471_v27 = vrot.slane %v470_v17, 4  ;;  %v501_v34 = vshrl.u32 %v4420_v20, 16  ;;  %v772_v5 = vrot.slane %v770_v30, 4  ;;  %v507_v50 = vshll.u32 %v4429_v25, 16 }
  0x51   : > { %3495 = vmatpush3.bf16.msra.mxu0 %v3880_v41  ;;  %v481_v61 = vrot.slane %v480_v11, 4  ;;  %v490_v56 = vrot.slane %v488_v32, 4  ;;  %v2956_v11 = vrot.slane %v4207_v48, 9  ;;  %v4477_v48 = vld [vmem:[%s4023_s14 + $0x68] sm:$0x1] }
  0x53   : > { %1927 = vmatmul.mubr.bf16.vlgmr.msra.gmra.mxu1 %v3003_v35  ;;  %v462_v35 = vsel %vm4068_vm2, %v457_v42, %v461_v43  ;;  %v485_v43 = vrot.slane %v483_v1, 5  ;;  %v499_v42 = vrot.slane %v497_v55, 5  ;;  %v3885_v1 = vld [vmem:[%s5419_s1 + $0x148] sm:$0xff]   ;;  %v521_v55 = vshll.u32 %v4446_v44, 16 }
  0x54   : > { %3597 = vmatpush3.bf16.msra.mxu1 %v3869_v6  ;;  %1934 = vmatprep.mubr.bf16.mxu1 %v4202_v45  ;;  %v4414_v6 = vcombine.low %v764_v62, %v767_v60  ;;  %v4425_v22 = vcombine.low %v452_v58, %v462_v35  ;;  %v476_v62 = vsel %vm4068_vm2, %v471_v27, %v475_v53  ;;  %v777_v27 = vrot.slane %v4210_v49, 5 }
  0x55   : > { %3598 = vmatprep.subr.bf16.mxu1 %v3875_v33  ;;  %v491_v33 = vshll.u32 %v4417_v18, 16  ;;  %v486_v59 = vsel %vm4068_vm2, %v481_v61, %v485_v43  ;;  %v4457_v58 = vcombine.low %v4359_v0, %v4370_v10  ;;  %v771_v60 = vsel %vm4261_vm5, %v2955_v28, %v770_v30  ;;  %v3886_v43 = vld [vmem:[%s5419_s1 + $0x108] sm:$0xff]   ;;  %3496 = vmatprep.subr.bf16.mxu0 %v3885_v1 }
  0x56   : > { %1805 = vmatprep.mubr.bf16.mxu0 %v4425_v22  ;;  %v4453_v53 = vcombine.low %v476_v62, %v486_v59  ;;  %v774_v35 = vsel %vm4261_vm5, %v772_v5, %v773_v31  ;;  %v509_v28 = vrot.slane %v507_v50, 5  ;;  %v780_v30 = vrot.slane %v4218_v57, 5  ;;  %3497 = vmatpush3.bf16.msra.mxu0 %v3886_v43  ;;  %v4488_v57 = vld [vmem:[%s4023_s14 + $0x70] sm:$0xf]  ;;  %v3888_v59 = vld [vmem:[%s5419_s1 + $0x1e0] sm:$0xff]  }
  0x57   : > { %v493_v41 = vrot.slane %v491_v33, 5  ;;  %1806 = vmatmul.mubr.bf16.gmra.mxu0 %v4412_v16  ;;  %v512_v31 = vshrl.u32 %v4441_v2, 16  ;;  %v515_v33 = vshll.u32 %v4441_v2, 16  ;;  %v779_v62 = vrot.slane %v777_v27, 4 }
  0x58   : > { %3599 = vmatpush3.bf16.msra.mxu1 %v3877_v19  ;;  %v503_v19 = vrot.slane %v501_v34, 4  ;;  %1813 = vmatprep.mubr.bf16.mxu0 %v4453_v53  ;;  %v4481_v34 = vcombine.low %v771_v60, %v774_v35  ;;  %v525_v49 = vshrl.u32 %v4446_v44, 16  ;;  %v523_v60 = vrot.slane %v521_v55, 5 }
  0x59   : > { %3600 = vmatprep.subr.bf16.mxu1 %v3882_v13  ;;  %v494_v17 = vor.u32 %v493_v41, %v490_v56  ;;  %v514_v5 = vrot.slane %v512_v31, 4  ;;  %v4485_v56 = vld [vmem:[%s4023_s14 + $0x6c] sm:$0xf]  ;;  %v531_v35 = vshll.u32 %v4477_v48, 16 }
  0x5a   : > { %v504_v13 = vor.u32 %v503_v19, %v499_v42  ;;  %v527_v1 = vrot.slane %v525_v49, 4  ;;  %v539_v55 = vshll.u32 %v4485_v56, 16  ;;  %v549_v49 = vshrl.u32 %v4488_v57, 16 }
  0x5b   : > { %1935 = vmatmul.mubr.bf16.gmra.mxu1 %v4414_v6  ;;  %v495_v32 = vrot.slane %v494_v17, 4  ;;  %v778_v17 = vsel %vm4261_vm5, %v2956_v11, %v777_v27  ;;  %v787_v11 = vrot.slane %v4316_v47, 5  ;;  %v4513_v27 = vld [vmem:[%s4023_s14 + $0x74] sm:$0x1]  ;;  %v4525_v47 = vcombine.low %v4417_v18, %v4420_v20 }
  0x5c   : > { %1942 = vmatprep.mubr.bf16.mxu1 %v4278_v4  ;;  %3601 = vmatpush3.bf16.msra.mxu1 %v3883_v51  ;;  %v505_v61 = vrot.slane %v504_v13, 4  ;;  %v517_v51 = vrot.slane %v515_v33, 5  ;;  %v781_v13 = vsel %vm4261_vm5, %v779_v62, %v780_v30  ;;  %v528_v31 = vor.u32 %v527_v1, %v523_v60 }
  0x5d   : > { %v500_v41 = vsel %vm4068_vm2, %v495_v32, %v499_v42  ;;  %3602 = vmatprep.subr.bf16.mxu1 %v3888_v59  ;;  %v2957_v42 = vrot.slane %v4296_v14, 9  ;;  %v533_v32 = vrot.slane %v531_v35, 5  ;;  %v3890_v14 = vld [vmem:[%s5419_s1 + $0x140] sm:$0xff]   ;;  %v536_v33 = vshrl.u32 %v4485_v56, 16  ;;  %v4529_v59 = vld [vmem:[%s4023_s14 + $0x78] sm:$0xf] }
  0x5e   : > { %v510_v19 = vsel %vm4068_vm2, %v505_v61, %v509_v28  ;;  %v518_v43 = vor.u32 %v517_v51, %v514_v5  ;;  %v3889_v28 = vld [vmem:[%s5419_s1 + $0x1a0] sm:$0xff]   ;;  %v784_v61 = vrot.slane %v4299_v21, 5  ;;  %v545_v21 = vshll.u32 %v4488_v57, 16  ;;  %3498 = vmatprep.subr.bf16.mxu0 %v3890_v14 }
  0x5f   : > { %v4497_v50 = vcombine.low %v500_v41, %v510_v19  ;;  %1814 = vmatmul.mubr.bf16.gmra.mxu0 %v4457_v58  ;;  %v529_v62 = vrot.slane %v528_v31, 4  ;;  %v3891_v41 = vld [vmem:[%s5419_s1 + $0x100] sm:$0xff]   ;;  %v538_v51 = vrot.slane %v536_v33, 4  ;;  %v541_v1 = vrot.slane %v539_v55, 5  ;;  %v3893_v31 = vld [vmem:[%s5419_s1 + $0x1d8] sm:$0xff]  }
  0x60   : > { %v519_v30 = vrot.slane %v518_v43, 4  ;;  %v786_v5 = vrot.slane %v784_v61, 4  ;;  %3603 = vmatpush3.bf16.msra.mxu1 %v3889_v28  ;;  %v547_v35 = vrot.slane %v545_v21, 5  ;;  %v4537_v43 = vld [vmem:[%s4023_s14 + $0x7c] sm:$0xf]  ;;  %v4542_v29 = vcombine.low %v778_v17, %v781_v13  ;;  %3499 = vmatpush3.bf16.msra.mxu0 %v3891_v41 }
  0x61   : > { %1821 = vmatprep.mubr.bf16.mxu0 %v4497_v50  ;;  %v534_v28 = vsel %vm4068_vm2, %v529_v62, %v533_v32  ;;  %v551_v14 = vrot.slane %v549_v49, 4  ;;  %v555_v26 = vshll.u32 %v4513_v27, 16  ;;  %3604 = vmatprep.subr.bf16.mxu1 %v3893_v31  ;;  %v4552_v21 = vld [vmem:[%s5419_s1 + $0x238] sm:$0xff]   ;;  %v4555_v13 = vld [vmem:[%s4023_s14 + $0x80] sm:$0x1]  ;;  %v560_v32 = vshrl.u32 %v4529_v59, 16 }
  0x62   : > { %v524_v19 = vsel %vm4068_vm2, %v519_v30, %v523_v60  ;;  %v542_v30 = vor.u32 %v541_v1, %v538_v51  ;;  %v563_v62 = vshll.u32 %v4529_v59, 16  ;;  %v791_v41 = vrot.slane %v4343_v38, 5  ;;  %v4566_v51 = vld [vmem:[%s4023_s14 + $0x84] sm:$0xf]  ;;  %v3895_v1 = vld [vmem:[%s5419_s1 + $0x198] sm:$0xff]   ;;  %3732 = vmatprep.subr.bf16.mxu0 %v4552_v21 }
  0x63   : > { %1943 = vmatmul.mubr.bf16.gmra.mxu1 %v4481_v34  ;;  %v4547_v60 = vcombine.low %v524_v19, %v534_v28  ;;  %v552_v33 = vor.u32 %v551_v14, %v547_v35  ;;  %v557_v55 = vrot.slane %v555_v26, 5  ;;  %v785_v26 = vsel %vm4261_vm5, %v2957_v42, %v784_v61  ;;  %v4577_v38 = vld [vmem:[%s4023_s14 + $0x88] sm:$0xf]  ;;  %v3896_v14 = vld [vmem:[%s5419_s1 + $0x1d0] sm:$0xff]  }
  0x64   : > { %1950 = vmatprep.mubr.bf16.mxu1 %v4354_v54  ;;  %v543_v17 = vrot.slane %v542_v30, 4  ;;  %v569_v19 = vshll.u32 %v4537_v43, 16  ;;  %v788_v31 = vsel %vm4261_vm5, %v786_v5, %v787_v11  ;;  %v562_v28 = vrot.slane %v560_v32, 4  ;;  %3605 = vmatpush3.bf16.msra.mxu1 %v3895_v1 }
  0x65   : > { %v553_v49 = vrot.slane %v552_v33, 4  ;;  %v565_v42 = vrot.slane %v563_v62, 5  ;;  %v573_v61 = vshrl.u32 %v4537_v43, 16  ;;  %v579_v11 = vshll.u32 %v4555_v13, 16  ;;  %3606 = vmatprep.subr.bf16.mxu1 %v3896_v14 }
  0x66   : > { %v548_v30 = vsel %vm4068_vm2, %v543_v17, %v547_v35  ;;  %v571_v9 = vrot.slane %v569_v19, 5  ;;  %v4590_v5 = vcombine.low %v4441_v2, %v4446_v44  ;;  %v2958_v35 = vrot.slane %v4340_v36, 9 }
  0x67   : > { %1822 = vmatmul.mubr.bf16.gmra.mxu0 %v4525_v47  ;;  %v558_v33 = vsel %vm4068_vm2, %v553_v49, %v557_v55  ;;  %v566_v32 = vor.u32 %v565_v42, %v562_v28  ;;  %v575_v62 = vrot.slane %v573_v61, 4  ;;  %v793_v17 = vrot.slane %v791_v41, 4  ;;  %v3898_v49 = vld [vmem:[%s5419_s1 + $0x190] sm:$0xff]  }
  0x68   : > { %1829 = vmatprep.mubr.bf16.mxu0 %v4547_v60  ;;  %v794_v55 = vrot.slane %v4346_v39, 5  ;;  %v4599_v19 = vcombine.low %v548_v30, %v558_v33  ;;  %v584_v28 = vshrl.u32 %v4566_v51, 16  ;;  %v581_v36 = vrot.slane %v579_v11, 5  ;;  %3607 = vmatpush3.bf16.msra.mxu1 %v3898_v49  ;;  %v3901_v33 = vld [vmem:[%s5419_s1 + $0x188] sm:$0xff]   ;;  %v3902_v49 = vld [vmem:[%s5419_s1 + $0x1c0] sm:$0xff]  }
  0x69   : > { %v576_v1 = vor.u32 %v575_v62, %v571_v9  ;;  %v587_v42 = vshll.u32 %v4566_v51, 16  ;;  %v593_v39 = vshll.u32 %v4577_v38, 16  ;;  %v597_v30 = vshrl.u32 %v4577_v38, 16 }
  0x6a   : > { %v586_v14 = vrot.slane %v584_v28, 4  ;;  %v798_v11 = vrot.slane %v4370_v10, 5  ;;  %v795_v28 = vsel %vm4261_vm5, %v793_v17, %v794_v55  ;;  %v603_v54 = vshll.u32 %v4602_v15, 16 }
  0x6b   : > { %1951 = vmatmul.mubr.bf16.gmra.mxu1 %v4542_v29  ;;  %v577_v61 = vrot.slane %v576_v1, 4  ;;  %v595_v62 = vrot.slane %v593_v39, 5  ;;  %v792_v1 = vsel %vm4261_vm5, %v2958_v35, %v791_v41  ;;  %v3904_v41 = vld [vmem:[%s5419_s1 + $0x180] sm:$0xff]   ;;  %v4636_v35 = vcombine.low %v4485_v56, %v4488_v57 }
  0x6c   : > { %1958 = vmatprep.mubr.bf16.mxu1 %v4412_v16  ;;  %v4592_v16 = vcombine.low %v785_v26, %v788_v31  ;;  %v3899_v26 = vld [vmem:[%s5419_s1 + $0x1c8] sm:$0xff]   ;;  %v567_v31 = vrot.slane %v566_v32, 4  ;;  %v589_v32 = vrot.slane %v587_v42, 5  ;;  %v4638_v17 = vcombine.low %v792_v1, %v795_v28 }
  0x6d   : > { %3608 = vmatprep.subr.bf16.mxu1 %v3899_v26  ;;  %v599_v26 = vrot.slane %v597_v30, 4  ;;  %v582_v42 = vsel %vm4068_vm2, %v577_v61, %v581_v36  ;;  %v2959_v55 = vrot.slane %v4359_v0, 9  ;;  %v801_v36 = vrot.slane %v4376_v12, 5 }
  0x6e   : > { %v572_v10 = vsel %vm4068_vm2, %v567_v31, %v571_v9  ;;  %v590_v39 = vor.u32 %v589_v32, %v586_v14  ;;  %3609 = vmatpush3.bf16.msra.mxu1 %v3901_v33  ;;  %v800_v31 = vrot.slane %v798_v11, 4  ;;  %v605_v61 = vrot.slane %v603_v54, 5 }
  0x6f   : > { %1830 = vmatmul.mubr.bf16.gmra.mxu0 %v4590_v5  ;;  %v600_v4 = vor.u32 %v599_v26, %v595_v62  ;;  %3610 = vmatprep.subr.bf16.mxu1 %v3902_v49  ;;  %v4641_v9 = vcombine.low %v572_v10, %v582_v42  ;;  %v799_v0 = vsel %vm4261_vm5, %v2959_v55, %v798_v11  ;;  %v805_v12 = vrot.slane %v4420_v20, 5 }
  0x70   : > { %1837 = vmatprep.mubr.bf16.mxu0 %v4599_v19  ;;  %v591_v14 = vrot.slane %v590_v39, 4  ;;  %v802_v33 = vsel %vm4261_vm5, %v800_v31, %v801_v36  ;;  %v4659_v32 = vcombine.low %v4529_v59, %v4537_v43  ;;  %v2960_v1 = vrot.slane %v4417_v18, 9 }
  0x71   : > { %v601_v30 = vrot.slane %v600_v4, 4  ;;  %v4661_v49 = vcombine.low %v799_v0, %v802_v33  ;;  %v807_v28 = vrot.slane %v805_v12, 4  ;;  %v808_v26 = vrot.slane %v4429_v25, 5 }
  0x72   : > { %3611 = vmatpush3.bf16.msra.mxu1 %v3904_v41  ;;  %v596_v4 = vsel %vm4068_vm2, %v591_v14, %v595_v62  ;;  %v806_v20 = vsel %vm4261_vm5, %v2960_v1, %v805_v12  ;;  %v812_v18 = vrot.slane %v4446_v44, 5  ;;  %v4678_v10 = vcombine.low %v4566_v51, %v4577_v38  ;;  %v3897_v14 = vld [vmem:[%s5419_s1 + $0x230] sm:$0xff]   ;;  %v3906_v12 = vld [vmem:[%s5419_s1 + $0x218] sm:$0xff]  }
  0x73   : > { %1959 = vmatmul.mubr.bf16.gmra.mxu1 %v4592_v16  ;;  %v606_v54 = vsel %vm4068_vm2, %v601_v30, %v605_v61  ;;  %v809_v62 = vsel %vm4261_vm5, %v807_v28, %v808_v26  ;;  %v2961_v42 = vrot.slane %v4441_v2, 9  ;;  %v815_v41 = vrot.slane %v4477_v48, 5  ;;  %v3911_v26 = vld [vmem:[%s4023_s14 + $0x94] sm:$0xf] }
  0x74   : > { %1966 = vmatprep.mubr.bf16.mxu1 %v4457_v58  ;;  %v4664_v11 = vcombine.low %v596_v4, %v606_v54  ;;  %v4680_v25 = vcombine.low %v806_v20, %v809_v62  ;;  %v814_v39 = vrot.slane %v812_v18, 4  ;;  %v819_v31 = vrot.slane %v4488_v57, 5  ;;  %v3908_v62 = vld [vmem:[%s5419_s1 + $0x208] sm:$0xff]  }
  0x75   : > { %v813_v44 = vsel %vm4261_vm5, %v2961_v42, %v812_v18  ;;  %v2962_v48 = vrot.slane %v4485_v56, 9  ;;  %v822_v61 = vrot.slane %v4513_v27, 5  ;;  %v826_v57 = vrot.slane %v4537_v43, 5  ;;  %v3900_v27 = vld [vmem:[%s5419_s1 + $0x228] sm:$0xff]   ;;  %v3903_v43 = vld [vmem:[%s5419_s1 + $0x220] sm:$0xff]  }
  0x76   : > { %v816_v55 = vsel %vm4261_vm5, %v814_v39, %v815_v41  ;;  %v821_v36 = vrot.slane %v819_v31, 4  ;;  %v829_v0 = vrot.slane %v4555_v13, 5  ;;  %v833_v33 = vrot.slane %v4577_v38, 5  ;;  %v3907_v38 = vld [vmem:[%s5419_s1 + $0x210] sm:$0xff]  }
  0x77   : > { %1838 = vmatmul.mubr.bf16.gmra.mxu0 %v4636_v35  ;;  %v4693_v2 = vcombine.low %v813_v44, %v816_v55  ;;  %v828_v30 = vrot.slane %v826_v57, 4  ;;  %v2964_v54 = vrot.slane %v4566_v51, 9  ;;  %v836_v28 = vrot.slane %v4602_v15, 5  ;;  %v3912_v42 = vld [vmem:[%s4023_s14 + $0x90] sm:$0xf] }
  0x78   : > { %1845 = vmatprep.mubr.bf16.mxu0 %v4641_v9  ;;  %v823_v56 = vsel %vm4261_vm5, %v821_v36, %v822_v61  ;;  %v835_v1 = vrot.slane %v833_v33, 4  ;;  %v840_v20 = vrot.slane %v3911_v26, 5  ;;  %v2965_v39 = vrot.slane %v3912_v42, 9  ;;  %v3913_v44 = vld [vmem:[%s4023_s14 + $0x98] sm:$0x1] }
  0x79   : > { %v830_v13 = vsel %vm4261_vm5, %v828_v30, %v829_v0  ;;  %v834_v51 = vsel %vm4261_vm5, %v2964_v54, %v833_v33  ;;  %v843_v55 = vrot.slane %v3913_v44, 5  ;;  %v3914_v61 = vld [vmem:[%s4023_s14 + $0xa0] sm:$0xf]  ;;  %v3920_v26 = vld [vmem:[%s4023_s14 + $0xb8] sm:$0xf] }
  0x7a   : > { %v837_v15 = vsel %vm4261_vm5, %v835_v1, %v836_v28  ;;  %v842_v41 = vrot.slane %v840_v20, 4  ;;  %v3919_v28 = vld [vmem:[%s4023_s14 + $0xb0] sm:$0x1]  ;;  %v4797_v42 = vld [vmem:[%s4023_s14 + $0xc4] sm:$0xf] }
  0x7b   : > { %1967 = vmatmul.mubr.bf16.gmra.mxu1 %v4638_v17  ;;  %v4751_v18 = vcombine.low %v834_v51, %v837_v15  ;;  %v3921_v44 = vld [vmem:[%s4023_s14 + $0xb4] sm:$0xf] }
  0x7c   : > { %1974 = vmatprep.mubr.bf16.mxu1 %v4525_v47  ;;  %v844_v36 = vsel %vm4261_vm5, %v842_v41, %v843_v55  ;;  %v2968_v55 = vrot.slane %v3921_v44, 9  ;;  %v895_v44 = vrot.slane %v4797_v42, 5 }
  0x7f   : > { %1846 = vmatmul.mubr.bf16.gmra.mxu0 %v4659_v32 }
  0x80   : > { %1853 = vmatprep.mubr.bf16.mxu0 %v4664_v11 }
  0x83   : > { %1975 = vmatmul.mubr.bf16.gmra.mxu1 %v4661_v49 }
  0x84   : > { %1982 = vmatprep.mubr.bf16.mxu1 %v4590_v5 }
  0x87   : > { %1854 = vmatmul.mubr.bf16.gmra.mxu0 %v4678_v10 }
  0x88   : > { %2087 = vmatprep.mubr.bf16.mxu0 %v4414_v6  ;;  %v820_v6 = vsel %vm4261_vm5, %v2962_v48, %v819_v31  ;;  %v3909_v31 = vld [vmem:[%s5419_s1 + $0x200] sm:$0xff]   ;;  %v841_v48 = vsel %vm4261_vm5, %v2965_v39, %v840_v20  ;;  %v861_v20 = vrot.slane %v3920_v26, 5  ;;  %v876_v26 = vshll.u32 %v4797_v42, 16 }
  0x8b   : > { %1983 = vmatmul.mubr.bf16.gmra.mxu1 %v4680_v25 }
  0x8c   : > { %1990 = vmatprep.mubr.bf16.mxu1 %v4636_v35 }
  0x8f   : > { %2088 = vmatmul.mubr.bf16.vlgmr.msra.gmra.mxu0 %v4149_v52  ;;  %v4713_v52 = vcombine.low %v820_v6, %v823_v56  ;;  %v4767_v6 = vcombine.low %v841_v48, %v844_v36  ;;  %v3915_v56 = vld [vmem:[%s4023_s14 + $0x9c] sm:$0xf] }
  0x90   : > { %3733 = vmatpush3.bf16.msra.mxu0 %v4552_v21  ;;  %2095 = vmatprep.mubr.bf16.mxu0 %v4481_v34  ;;  %v2963_v21 = vrot.slane %v4529_v59, 9  ;;  %v3922_v48 = vld [vmem:[%s4023_s14 + $0xbc] sm:$0x1] }
  0x91   : > { %3734 = vmatprep.subr.bf16.mxu0 %v3897_v14  ;;  %v864_v36 = vrot.slane %v3922_v48, 5 }
  0x92   : > { %v827_v59 = vsel %vm4261_vm5, %v2963_v21, %v826_v57  ;;  %v2966_v57 = vrot.slane %v3915_v56, 9  ;;  %v3916_v21 = vld [vmem:[%s4023_s14 + $0xa4] sm:$0x1] }
  0x93   : > { %1991 = vmatmul.mubr.bf16.gmra.mxu1 %v4693_v2  ;;  %v4732_v4 = vcombine.low %v827_v59, %v830_v13  ;;  %v850_v30 = vrot.slane %v3916_v21, 5  ;;  %v3917_v59 = vld [vmem:[%s4023_s14 + $0xac] sm:$0xf] }
  0x94   : > { %1998 = vmatprep.mubr.bf16.mxu1 %v4659_v32  ;;  %3735 = vmatpush3.bf16.msra.mxu0 %v3897_v14  ;;  %v847_v14 = vrot.slane %v3914_v61, 5  ;;  %v854_v13 = vrot.slane %v3917_v59, 5  ;;  %v862_v61 = vsel %vm4261_vm5, %v2968_v55, %v861_v20 }
  0x95   : > { %3736 = vmatprep.subr.bf16.mxu0 %v3900_v27 }
  0x96   : > { %v848_v0 = vsel %vm4261_vm5, %v2966_v57, %v847_v14  ;;  %v856_v1 = vrot.slane %v854_v13, 4  ;;  %v5445_v57 = vld [vmem:[#allocation5_spill] sm:$0xff] }
  0x97   : > { %2096 = vmatmul.mubr.bf16.gmra.mxu0 %v4222_v63 }
  0x98   : > { %2103 = vmatprep.mubr.bf16.mxu0 %v4542_v29  ;;  %3737 = vmatpush3.bf16.msra.mxu0 %v3900_v27  ;;  %v849_v27 = vrot.slane %v847_v14, 4 }
  0x99   : > { %3738 = vmatprep.subr.bf16.mxu0 %v3903_v43 }
  0x9b   : > { %1999 = vmatmul.mubr.bf16.gmra.mxu1 %v4713_v52 }
  0x9c   : > { %2006 = vmatprep.mubr.bf16.mxu1 %v4678_v10  ;;  %3739 = vmatpush3.bf16.msra.mxu0 %v3903_v43  ;;  %v851_v43 = vsel %vm4261_vm5, %v849_v27, %v850_v30  ;;  %v5446_v27 = vld [vmem:[#allocation7_spill] sm:$0xff] }
  0x9d   : > { %3740 = vmatprep.subr.bf16.mxu0 %v3906_v12  ;;  %v4780_v33 = vcombine.low %v848_v0, %v851_v43 }
  0x9f   : > { %2104 = vmatmul.mubr.bf16.gmra.mxu0 %v4283_v8 }
  0xa0   : > { %2111 = vmatprep.mubr.bf16.mxu0 %v4592_v16  ;;  %3741 = vmatpush3.bf16.msra.mxu0 %v3906_v12  ;;  %v3918_v12 = vld [vmem:[%s4023_s14 + $0xa8] sm:$0xf] }
  0xa1   : > { %3742 = vmatprep.subr.bf16.mxu0 %v3907_v38  ;;  %v2967_v54 = vrot.slane %v3918_v12, 9 }
  0xa3   : > { %2007 = vmatmul.mubr.bf16.gmra.mxu1 %v4732_v4  ;;  %v855_v51 = vsel %vm4261_vm5, %v2967_v54, %v854_v13 }
  0xa4   : > { %2014 = vmatprep.mubr.bf16.mxu1 %v4115_v7  ;;  %3743 = vmatpush3.bf16.msra.mxu0 %v3907_v38  ;;  %v857_v38 = vrot.slane %v3919_v28, 5  ;;  %v5449_v28 = vld [vmem:[#allocation3_spill] sm:$0xff] }
  0xa5   : > { %3744 = vmatprep.subr.bf16.mxu0 %v3908_v62 }
  0xa6   : > { %v858_v15 = vsel %vm4261_vm5, %v856_v1, %v857_v38 }
  0xa7   : > { %2112 = vmatmul.mubr.bf16.gmra.mxu0 %v4381_v24  ;;  %v4799_v39 = vcombine.low %v855_v51, %v858_v15  ;;  %v880_v15 = vshrl.u32 %v4797_v42, 16 }
  0xa8   : > { %2119 = vmatprep.mubr.bf16.mxu0 %v4638_v17  ;;  %3745 = vmatpush3.bf16.msra.mxu0 %v3908_v62  ;;  %v4794_v62 = vld [vmem:[%s4023_s14 + $0xc0] sm:$0xf] }
  0xa9   : > { %3746 = vmatprep.subr.bf16.mxu0 %v3909_v31  ;;  %v4803_v41 = vcombine.low %v4794_v62, %v4797_v42  ;;  %v867_v38 = vshrl.u32 %v4794_v62, 16  ;;  %v870_v51 = vshll.u32 %v4794_v62, 16  ;;  %v5450_v42 = vld [vmem:[#allocation4_spill] sm:$0xff] }
  0xab   : > { %2015 = vmatmul.mubr.bf16.gmra.mxu1 %v4751_v18 }
  0xac   : > { %2022 = vmatprep.mubr.bf16.mxu1 %v4174_v3  ;;  %3747 = vmatpush3.bf16.msra.mxu0 %v3909_v31  ;;  %v863_v31 = vrot.slane %v861_v20, 4 }
  0xae   : > { %v865_v14 = vsel %vm4261_vm5, %v863_v31, %v864_v36 }
  0xaf   : > { %2120 = vmatmul.mubr.bf16.gmra.mxu0 %v4425_v22  ;;  %v4815_v56 = vcombine.low %v862_v61, %v865_v14  ;;  %v869_v61 = vrot.slane %v867_v38, 4  ;;  %v872_v14 = vrot.slane %v870_v51, 5 }
  0xb0   : > { %2127 = vmatprep.mubr.bf16.mxu0 %v4661_v49 }
  0xb3   : > { %2023 = vmatmul.mubr.bf16.gmra.mxu1 %v4767_v6 }
  0xb4   : > { %2030 = vmatprep.mubr.bf16.mxu1 %v4204_v46 }
  0xb7   : > { %2128 = vmatmul.mubr.bf16.gmra.mxu0 %v4453_v53 }
  0xb8   : > { %2135 = vmatprep.mubr.bf16.mxu0 %v4680_v25 }
  0xbb   : > { %2031 = vmatmul.mubr.bf16.gmra.mxu1 %v4780_v33 }
  0xbc   : > { %2038 = vmatprep.mubr.bf16.mxu1 %v4329_v23 }
  0xbf   : > { %2136 = vmatmul.mubr.bf16.gmra.mxu0 %v4497_v50 }
  0xc0   : > { %2143 = vmatprep.mubr.bf16.mxu0 %v4693_v2 }
  0xc3   : > { %2039 = vmatmul.mubr.bf16.gmra.mxu1 %v4799_v39 }
  0xc4   : > { %2046 = vmatprep.mubr.bf16.mxu1 %v4803_v41 }
  0xc7   : > { %2144 = vmatmul.mubr.bf16.gmra.mxu0 %v4547_v60 }
  0xc8   : > { %2151 = vmatprep.mubr.bf16.mxu0 %v4713_v52 }
  0xcb   : > { %2047 = vmatmul.mubr.bf16.gmra.mxu1 %v4815_v56 }
  0xcc   : > { %2248 = vmatprep.mubr.bf16.mxu1 %v4222_v63  ;;  %v5448_v63 = vld [vmem:[#allocation8_spill] sm:$0xff] }
  0xcf   : > { %2152 = vmatmul.mubr.bf16.gmra.mxu0 %v4599_v19 }
  0xd0   : > { %2159 = vmatprep.mubr.bf16.mxu0 %v4732_v4 }
  0xd3   : > { %2249 = vmatmul.mubr.bf16.vlgmr.msra.gmra.mxu1 %v4202_v45  ;;  %v5447_v45 = vld [vmem:[#allocation2_spill] sm:$0xff] }
  0xd4   : > { %2256 = vmatprep.mubr.bf16.mxu1 %v4283_v8 }
  0xd7   : > { %2160 = vmatmul.mubr.bf16.gmra.mxu0 %v4641_v9 }
  0xd8   : > { %2167 = vmatprep.mubr.bf16.mxu0 %v4751_v18 }
  0xdb   : > { %2257 = vmatmul.mubr.bf16.gmra.mxu1 %v5445_v57  ;;  %v878_v57 = vrot.slane %v876_v26, 5 }
  0xdc   : > { %2264 = vmatprep.mubr.bf16.mxu1 %v4381_v24 }
  0xdf   : > { %2168 = vmatmul.mubr.bf16.gmra.mxu0 %v4664_v11 }
  0xe0   : > { %2175 = vmatprep.mubr.bf16.mxu0 %v4767_v6 }
  0xe3   : > { %2265 = vmatmul.mubr.bf16.gmra.mxu1 %v5446_v27  ;;  %v882_v27 = vrot.slane %v880_v15, 4 }
  0xe4   : > { %2272 = vmatprep.mubr.bf16.mxu1 %v4425_v22 }
  0xe7   : > { %2176 = vmatmul.mubr.bf16.gmra.mxu0 %v5447_v45 }
  0xe8   : > { %2183 = vmatprep.mubr.bf16.mxu0 %v4780_v33 }
  0xeb   : > { %2273 = vmatmul.mubr.bf16.gmra.mxu1 %v5448_v63 }
  0xec   : > { %2280 = vmatprep.mubr.bf16.mxu1 %v4453_v53 }
  0xed   : > { %v3276_v8 = vpop.f32.mrf.mxu0  ;;  %v3348_v21 = vpop.f32.mrf.mxu1 }
  0xef   : > { %v3277_v30 = vpop.f32.mrf.mxu0  ;;  %v3349_v24 = vpop.f32.mrf.mxu1  ;;  %2184 = vmatmul.mubr.bf16.gmra.mxu0 %v5449_v28 }
  0xf0   : > { %v4837_v0 = vadd.f32 %v3277_v30, %v3276_v8  ;;  %v4839_v43 = vadd.f32 %v3349_v24, %v3348_v21  ;;  %2191 = vmatprep.mubr.bf16.mxu0 %v4799_v39  ;;  %v897_v21 = vrot.slane %v895_v44, 4 }
  0xf1   : > { %v3279_v59 = vpop.f32.mrf.mxu0  ;;  %v3351_v13 = vpop.f32.mrf.mxu1 }
  0xf3   : > { %v3280_v12 = vpop.f32.mrf.mxu0  ;;  %v3352_v22 = vpop.f32.mrf.mxu1  ;;  %2281 = vmatmul.mubr.bf16.gmra.mxu1 %v4457_v58  ;;  %v312_v58 = vld [vmem:[%s4023_s14 + $0xc8] sm:$0x1] }
  0xf4   : > { %v4841_v54 = vadd.f32 %v3280_v12, %v3279_v59  ;;  %v4843_v1 = vadd.f32 %v3352_v22, %v3351_v13  ;;  %2288 = vmatprep.mubr.bf16.mxu1 %v4497_v50  ;;  %v2969_v50 = vrot.slane %v4794_v62, 9  ;;  %v898_v30 = vrot.slane %v312_v58, 5 }
  0xf5   : > { %v3282_v53 = vpop.f32.mrf.mxu0  ;;  %v3354_v55 = vpop.f32.mrf.mxu1  ;;  %v873_v12 = vor.u32 %v872_v14, %v869_v61  ;;  %v883_v22 = vor.u32 %v882_v27, %v878_v57 }
  0xf6   : > { %v896_v62 = vsel %vm4261_vm5, %v2969_v50, %v895_v44  ;;  %v899_v51 = vsel %vm4261_vm5, %v897_v21, %v898_v30 }
  0xf7   : > { %v3283_v20 = vpop.f32.mrf.mxu0  ;;  %v3355_v36 = vpop.f32.mrf.mxu1  ;;  %2192 = vmatmul.mubr.bf16.gmra.mxu0 %v5450_v42 }
  0xf8   : > { %v4854_v31 = vadd.f32 %v3283_v20, %v3282_v53  ;;  %v4857_v63 = vadd.f32 %v3355_v36, %v3354_v55  ;;  %2199 = vmatprep.mubr.bf16.mxu0 %v4815_v56  ;;  %v886_v53 = vshll.u32 %v312_v58, 16  ;;  %v4872_v20 = vcombine.low %v896_v62, %v899_v51  ;;  %v5451_v58 = vld [vmem:[#allocation6_spill] sm:$0xff] }
  0xf9   : > { %v3285_v48 = vpop.f32.mrf.mxu0  ;;  %v3357_v24 = vpop.f32.mrf.mxu1  ;;  %v884_v55 = vrot.slane %v883_v22, 4 }
  0xfb   : > { %v3286_v8 = vpop.f32.mrf.mxu0  ;;  %2289 = vmatmul.mubr.bf16.gmra.mxu1 %v4525_v47  ;;  %v3358_v13 = vpop.f32.mrf.mxu1  ;;  %v874_v47 = vrot.slane %v873_v12, 4 }
  0xfc   : > { %v4860_v59 = vadd.f32 %v3286_v8, %v3285_v48  ;;  %2296 = vmatprep.mubr.bf16.mxu1 %v4547_v60  ;;  %v4866_v38 = vadd.f32 %v3358_v13, %v3357_v24  ;;  %v888_v48 = vrot.slane %v886_v53, 5 }
  0xfd   : > { %v3288_v15 = vpop.f32.mrf.mxu0  ;;  %v879_v8 = vsel %vm4068_vm2, %v874_v47, %v878_v57 }
  0xfe   : > { %v889_v50 = vsel %vm4068_vm2, %v884_v55, %v888_v48 }
  0xff   : > { %v3289_v26 = vpop.f32.mrf.mxu0  ;;  %v3360_v36 = vpop.f32.mrf.mxu1  ;;  %2200 = vmatmul.mubr.bf16.gmra.mxu0 %v5451_v58 }
 0x100   : > { %v4874_v60 = vadd.f32 %v3289_v26, %v3288_v15  ;;  %2207 = vmatprep.mubr.bf16.mxu0 %v4872_v20 }
 0x101   : > { %v3291_v61 = vpop.f32.mrf.mxu0  ;;  %v3361_v14 = vpop.f32.mrf.mxu1 }
 0x102   : > { %v4878_v44 = vadd.f32 %v3361_v14, %v3360_v36  ;;  %v4907_v36 = vld [vmem:[%s5420_s2] ss:$0 sm:$0xff] }
 0x103   : > { %2297 = vmatmul.mubr.bf16.gmra.mxu1 %v4590_v5  ;;  %v3292_v27 = vpop.f32.mrf.mxu0  ;;  %v3363_v21 = vpop.f32.mrf.mxu1  ;;  %v4888_v5 = vcombine.low %v879_v8, %v889_v50  ;;  %v1768_v14 = vadd.f32 %v4837_v0, %v4907_v36 }
 0x104   : > { %2304 = vmatprep.mubr.bf16.mxu1 %v4599_v19  ;;  %v4886_v30 = vadd.f32 %v3292_v27, %v3291_v61 }
 0x105   : > { %v3364_v24 = vpop.f32.mrf.mxu1  ;;  %v3294_v13 = vpop.f32.mrf.mxu0 }
 0x106   : > { %v4890_v12 = vadd.f32 %v3364_v24, %v3363_v21 }
 0x107   : > { %v3295_v22 = vpop.f32.mrf.mxu0  ;;  %2208 = vmatmul.mubr.bf16.gmra.mxu0 %v4888_v5 }
 0x108   : > { %v4892_v53 = vadd.f32 %v3295_v22, %v3294_v13  ;;  %3748 = vmatprep.mubr.bf16.mxu0 %v4481_v34 }
 0x109   : > { %v3297_v19 = vpop.f32.mrf.mxu0 }
 0x10b   : > { %v3366_v62 = vpop.f32.mrf.mxu1  ;;  %2305 = vmatmul.mubr.bf16.gmra.mxu1 %v4636_v35  ;;  %v3298_v51 = vpop.f32.mrf.mxu0 }
 0x10c   : > { %2312 = vmatprep.mubr.bf16.mxu1 %v4641_v9  ;;  %v4900_v26 = vadd.f32 %v3298_v51, %v3297_v19 }
 0x10d   : > { %v3367_v57 = vpop.f32.mrf.mxu1 }
 0x10e   : > { %v4898_v15 = vadd.f32 %v3367_v57, %v3366_v62  ;;  %v3300_v35 = vpop.f32.mrf.mxu0 }
 0x10f   : > { %v3369_v47 = vpop.f32.mrf.mxu1  ;;  %3749 = vmatmul.mubr.bf16.vlgmr.msra.gmra.mxu0 %v4542_v29  ;;  %v1771_v29 = vadd.f32 %v4841_v54, %v4907_v36  ;;  %v1776_v54 = vadd.f32 %v4854_v31, %v4907_v36 }
 0x110   : > { %3752 = vmatprep.mubr.bf16.mxu0 %v4592_v16  ;;  %v3301_v34 = vpop.f32.mrf.mxu0 }
 0x111   : > { %v3370_v55 = vpop.f32.mrf.mxu1  ;;  %v4915_v27 = vadd.f32 %v3301_v34, %v3300_v35  ;;  %v1779_v34 = vadd.f32 %v4860_v59, %v4907_v36  ;;  %v1784_v59 = vadd.f32 %v4874_v60, %v4907_v36 }
 0x112   : > { %v4902_v48 = vadd.f32 %v3370_v55, %v3369_v47  ;;  %v3303_v50 = vpop.f32.mrf.mxu0 }
 0x113   : > { %v3388_v61 = vpop.f32.mrf.mxu1  ;;  %2313 = vmatmul.mubr.bf16.gmra.mxu1 %v4659_v32 }
 0x114   : > { %2320 = vmatprep.mubr.bf16.mxu1 %v4664_v11  ;;  %v3304_v13 = vpop.f32.mrf.mxu0 }
 0x115   : > { %v3389_v9 = vpop.f32.mrf.mxu1  ;;  %v4921_v11 = vadd.f32 %v3304_v13, %v3303_v50 }
 0x116   : > { %v3390_v8 = vadd.f32 %v3389_v9, %v3388_v61 }
 0x117   : > { %v3391_v21 = vpop.f32.mrf.mxu1  ;;  %v3306_v22 = vpop.f32.mrf.mxu0  ;;  %3753 = vmatmul.mubr.bf16.gmra.mxu0 %v4638_v17 }
 0x118   : > { %v4917_v24 = vadd.f32 %v3390_v8, %v1768_v14  ;;  %3756 = vmatprep.mubr.bf16.mxu0 %v4661_v49 }
 0x119   : > { %v3392_v32 = vpop.f32.mrf.mxu1  ;;  %v3307_v19 = vpop.f32.mrf.mxu0 }
 0x11a   : > { %v3393_v16 = vadd.f32 %v3392_v32, %v3391_v21  ;;  %v4931_v51 = vadd.f32 %v3307_v19, %v3306_v22  ;;  %v4959_v19 = vld [vmem:[%s4023_s14 + $0xd0] sm:$0xf] }
 0x11b   : > { %v3394_v62 = vpop.f32.mrf.mxu1  ;;  %2321 = vmatmul.mubr.bf16.gmra.mxu1 %v4678_v10  ;;  %v3309_v55 = vpop.f32.mrf.mxu0 }
 0x11c   : > { %v4925_v0 = vadd.f32 %v3393_v16, %v1771_v29  ;;  %2328 = vmatprep.mubr.bf16.mxu1 %v5447_v45 }
 0x11d   : > { %v3395_v57 = vpop.f32.mrf.mxu1  ;;  %v3310_v10 = vpop.f32.mrf.mxu0 }
 0x11e   : > { %v3396_v47 = vadd.f32 %v3395_v57, %v3394_v62  ;;  %v4937_v45 = vadd.f32 %v3310_v10, %v3309_v55  ;;  %v4956_v62 = vld [vmem:[%s4023_s14 + $0xcc] sm:$0xf]  ;;  %v910_v10 = vshll.u32 %v4959_v19, 16 }
 0x11f   : > { %v3397_v35 = vpop.f32.mrf.mxu1  ;;  %v3312_v9 = vpop.f32.mrf.mxu0  ;;  %3757 = vmatmul.mubr.bf16.gmra.mxu0 %v4680_v25  ;;  %v901_v55 = vshrl.u32 %v4956_v62, 16 }
 0x120   : > { %v4933_v61 = vadd.f32 %v3396_v47, %v1776_v54  ;;  %3760 = vmatprep.mubr.bf16.mxu0 %v4693_v2  ;;  %v1811_v37 = vadd.f32 %v4937_v45, %v4907_v36 }
 0x121   : > { %v3398_v17 = vpop.f32.mrf.mxu1  ;;  %v3313_v8 = vpop.f32.mrf.mxu0 }
 0x122   : > { %v3399_v49 = vadd.f32 %v3398_v17, %v3397_v35  ;;  %v4947_v21 = vadd.f32 %v3313_v8, %v3312_v9  ;;  %v904_v35 = vshll.u32 %v4956_v62, 16  ;;  %v914_v17 = vshrl.u32 %v4959_v19, 16 }
 0x123   : > { %v3400_v14 = vpop.f32.mrf.mxu1  ;;  %2329 = vmatmul.mubr.bf16.gmra.mxu1 %v4115_v7  ;;  %v3315_v32 = vpop.f32.mrf.mxu0  ;;  %v903_v8 = vrot.slane %v901_v55, 4  ;;  %v1800_v55 = vadd.f32 %v4915_v27, %v4907_v36 }
 0x124   : > { %v4941_v31 = vadd.f32 %v3399_v49, %v1779_v34  ;;  %2336 = vmatprep.mubr.bf16.mxu1 %v5449_v28  ;;  %v1787_v28 = vadd.f32 %v4886_v30, %v4907_v36 }
 0x125   : > { %v3401_v50 = vpop.f32.mrf.mxu1  ;;  %v3316_v25 = vpop.f32.mrf.mxu0 }
 0x126   : > { %v3402_v13 = vadd.f32 %v3401_v50, %v3400_v14  ;;  %v4953_v22 = vadd.f32 %v3316_v25, %v3315_v32  ;;  %v906_v50 = vrot.slane %v904_v35, 5  ;;  %v1795_v32 = vadd.f32 %v4900_v26, %v4907_v36 }
 0x127   : > { %v3403_v7 = vpop.f32.mrf.mxu1  ;;  %v3318_v60 = vpop.f32.mrf.mxu0  ;;  %3761 = vmatmul.mubr.bf16.gmra.mxu0 %v4713_v52 }
 0x128   : > { %v4949_v29 = vadd.f32 %v3402_v13, %v1784_v59  ;;  %3764 = vmatprep.mubr.bf16.mxu0 %v4732_v4  ;;  %v912_v59 = vrot.slane %v910_v10, 5  ;;  %v916_v13 = vrot.slane %v914_v17, 4  ;;  %v907_v26 = vor.u32 %v906_v50, %v903_v8 }
 0x129   : > { %v3404_v16 = vpop.f32.mrf.mxu1  ;;  %v3319_v30 = vpop.f32.mrf.mxu0  ;;  %v1819_v40 = vadd.f32 %v4953_v22, %v4907_v36 }
 0x12a   : > { %v3405_v2 = vadd.f32 %v3404_v16, %v3403_v7  ;;  %v4973_v52 = vadd.f32 %v3319_v30, %v3318_v60  ;;  %v917_v30 = vor.u32 %v916_v13, %v912_v59  ;;  %v929_v13 = vrot.slane %v4959_v19, 5 }
 0x12b   : > { %v3406_v57 = vpop.f32.mrf.mxu1  ;;  %2337 = vmatmul.mubr.bf16.gmra.mxu1 %v4174_v3  ;;  %v1792_v3 = vadd.f32 %v4892_v53, %v4907_v36  ;;  %v4982_v53 = vld [vmem:[%s4023_s14 + $0xd4] sm:$0x1]  ;;  %s3132_s14 = sshll.u32 %s5479_s15, 7 }
 0x12c   : > { %v4963_v54 = vadd.f32 %v3405_v2, %v1787_v28  ;;  %2344 = vmatprep.mubr.bf16.mxu1 %v5450_v42  ;;  %v3321_v42 = vpop.f32.mrf.mxu0  ;;  %s5306_s23 = scalar_lea.vmem %s5421_s3, %s3132_s14 }
 0x12d   : > { %v3407_v47 = vpop.f32.mrf.mxu1 }
 0x12e   : > { %v3408_v34 = vadd.f32 %v3407_v47, %v3406_v57  ;;  %v3322_v9 = vpop.f32.mrf.mxu0  ;;  %v920_v47 = vshll.u32 %v4982_v53, 16 }
 0x12f   : > { %v3409_v49 = vpop.f32.mrf.mxu1  ;;  %v4979_v7 = vadd.f32 %v3322_v9, %v3321_v42  ;;  %3765 = vmatmul.mubr.bf16.gmra.mxu0 %v4751_v18 }
 0x130   : > { %v4975_v4 = vadd.f32 %v3408_v34, %v1792_v3  ;;  %v3324_v16 = vpop.f32.mrf.mxu0  ;;  %3768 = vmatprep.mubr.bf16.mxu0 %v4767_v6  ;;  %v908_v34 = vrot.slane %v907_v26, 4  ;;  %v918_v6 = vrot.slane %v917_v30, 4  ;;  %v922_v42 = vrot.slane %v920_v47, 5 }
 0x131   : > { %v3410_v14 = vpop.f32.mrf.mxu1  ;;  %v2970_v30 = vrot.slane %v4956_v62, 9  ;;  %v931_v47 = vrot.slane %v929_v13, 4 }
 0x132   : > { %v3411_v25 = vadd.f32 %v3410_v14, %v3409_v49  ;;  %v3325_v60 = vpop.f32.mrf.mxu0  ;;  %v1803_v49 = vadd.f32 %v4921_v11, %v4907_v36  ;;  %v913_v11 = vsel %vm4068_vm2, %v908_v34, %v912_v59 }
 0x133   : > { %v3412_v28 = vpop.f32.mrf.mxu1  ;;  %2345 = vmatmul.mubr.bf16.gmra.mxu1 %v4204_v46  ;;  %v4993_v35 = vadd.f32 %v3325_v60, %v3324_v16  ;;  %v923_v16 = vsel %vm4068_vm2, %v918_v6, %v922_v42  ;;  %v1816_v6 = vadd.f32 %v4947_v21, %v4907_v36 }
 0x134   : > { %v4986_v2 = vadd.f32 %v3411_v25, %v1795_v32  ;;  %2352 = vmatprep.mubr.bf16.mxu1 %v5451_v58  ;;  %v3327_v10 = vpop.f32.mrf.mxu0  ;;  %v3023_v26 = vcombine.low %v913_v11, %v923_v16 }
 0x135   : > { %v3413_v57 = vpop.f32.mrf.mxu1 }
 0x136   : > { %v3414_v46 = vadd.f32 %v3413_v57, %v3412_v28  ;;  %v3328_v3 = vpop.f32.mrf.mxu0 }
 0x137   : > { %v3415_v18 = vpop.f32.mrf.mxu1  ;;  %v4999_v9 = vadd.f32 %v3328_v3, %v3327_v10  ;;  %3769 = vmatmul.mubr.bf16.gmra.mxu0 %v4780_v33  ;;  %v930_v3 = vsel %vm4261_vm5, %v2970_v30, %v929_v13 }
 0x138   : > { %v4995_v17 = vadd.f32 %v3414_v46, %v1800_v55  ;;  %v3330_v8 = vpop.f32.mrf.mxu0  ;;  %3772 = vmatprep.mubr.bf16.mxu0 %v4799_v39  ;;  %v932_v39 = vrot.slane %v4982_v53, 5 }
 0x139   : > { %v3416_v58 = vpop.f32.mrf.mxu1 }
 0x13a   : > { %v3417_v14 = vadd.f32 %v3416_v58, %v3415_v18  ;;  %v3331_v32 = vpop.f32.mrf.mxu0  ;;  %v933_v45 = vsel %vm4261_vm5, %v931_v47, %v932_v39  ;;  %v1827_v47 = vadd.f32 %v4979_v7, %v4907_v36 }
 0x13b   : > { %v3418_v27 = vpop.f32.mrf.mxu1  ;;  %2353 = vmatmul.mubr.bf16.gmra.mxu1 %v4329_v23  ;;  %v1808_v23 = vadd.f32 %v4931_v51, %v4907_v36  ;;  %v5014_v33 = vadd.f32 %v3331_v32, %v3330_v8 }
 0x13c   : > { %v5003_v50 = vadd.f32 %v3417_v14, %v1803_v49  ;;  %2360 = vmatprep.mubr.bf16.mxu1 %v4888_v5  ;;  %v3333_v60 = vpop.f32.mrf.mxu0  ;;  %v3022_v14 = vcombine.low %v4956_v62, %v4959_v19  ;;  %v1824_v62 = vadd.f32 %v4973_v52, %v4907_v36 }
 0x13d   : > { %v3419_v25 = vpop.f32.mrf.mxu1 }
 0x13e   : > { %v3420_v28 = vadd.f32 %v3419_v25, %v3418_v27  ;;  %v3334_v59 = vpop.f32.mrf.mxu0 }
 0x13f   : > { %v3421_v5 = vpop.f32.mrf.mxu1  ;;  %v5022_v46 = vadd.f32 %v3334_v59, %v3333_v60  ;;  %3773 = vmatmul.mubr.bf16.gmra.mxu0 %v4815_v56 }
 0x140   : > { %v5017_v57 = vadd.f32 %v3420_v28, %v1808_v23  ;;  %v3336_v10 = vpop.f32.mrf.mxu0  ;;  %3776 = vmatprep.mubr.bf16.mxu0 %v4872_v20  ;;  %v3024_v20 = vcombine.low %v930_v3, %v933_v45  ;;  %v1832_v3 = vadd.f32 %v4993_v35, %v4907_v36 }
 0x141   : > { %v3422_v55 = vpop.f32.mrf.mxu1 }
 0x142   : > { %v3423_v51 = vadd.f32 %v3422_v55, %v3421_v5  ;;  %v3337_v58 = vpop.f32.mrf.mxu0 }
 0x143   : > { %v3424_v18 = vpop.f32.mrf.mxu1  ;;  %2361 = vmatmul.mubr.bf16.gmra.mxu1 %v4803_v41  ;;  %v5035_v42 = vadd.f32 %v3337_v58, %v3336_v10 }
 0x144   : > { %v5026_v53 = vadd.f32 %v3423_v51, %v1811_v37  ;;  %2368 = vmatprep.mubr.bf16.mxu1 %v3023_v26  ;;  %v3339_v56 = vpop.f32.mrf.mxu0 }
 0x145   : > { %v3425_v34 = vpop.f32.mrf.mxu1 }
 0x146   : > { %v3426_v41 = vadd.f32 %v3425_v34, %v3424_v18  ;;  %v3340_v27 = vpop.f32.mrf.mxu0 }
 0x147   : > { %v3427_v49 = vpop.f32.mrf.mxu1  ;;  %v5043_v32 = vadd.f32 %v3340_v27, %v3339_v56  ;;  %3777 = vmatmul.mubr.bf16.gmra.mxu0 %v3024_v20 }
 0x148   : > { %v5039_v8 = vadd.f32 %v3426_v41, %v1816_v6  ;;  %v3342_v21 = vpop.f32.mrf.mxu0 }
 0x149   : > { %v3428_v13 = vpop.f32.mrf.mxu1 }
 0x14a   : > { %v3429_v25 = vadd.f32 %v3428_v13, %v3427_v49  ;;  %v3343_v23 = vpop.f32.mrf.mxu0 }
 0x14b   : > { %v3430_v11 = vpop.f32.mrf.mxu1  ;;  %2369 = vmatmul.mubr.bf16.gmra.mxu1 %v3022_v14  ;;  %v5049_v19 = vadd.f32 %v3343_v23, %v3342_v21  ;;  %v1835_v14 = vadd.f32 %v4999_v9, %v4907_v36 }
 0x14c   : > { %v5045_v16 = vadd.f32 %v3429_v25, %v1819_v40  ;;  %v3345_v5 = vpop.f32.mrf.mxu0 }
 0x14d   : > { %v3431_v28 = vpop.f32.mrf.mxu1 }
 0x14e   : > { %v3432_v60 = vadd.f32 %v3431_v28, %v3430_v11  ;;  %v3346_v26 = vpop.f32.mrf.mxu0 }
 0x14f   : > { %v3433_v39 = vpop.f32.mrf.mxu1  ;;  %v5055_v59 = vadd.f32 %v3346_v26, %v3345_v5 }
 0x150   : > { %v5051_v22 = vadd.f32 %v3432_v60, %v1824_v62  ;;  %v3500_v51 = vpop.f32.mrf.mxu0 }
 0x151   : > { %v3434_v30 = vpop.f32.mrf.mxu1 }
 0x152   : > { %v3435_v55 = vadd.f32 %v3434_v30, %v3433_v39  ;;  %v3501_v18 = vpop.f32.mrf.mxu0 }
 0x153   : > { %v3436_v37 = vpop.f32.mrf.mxu1  ;;  %v3502_v58 = vadd.f32 %v3501_v18, %v3500_v51 }
 0x154   : > { %v5057_v10 = vadd.f32 %v3435_v55, %v1827_v47  ;;  %v3503_v6 = vpop.f32.mrf.mxu0 }
 0x155   : > { %v3437_v52 = vpop.f32.mrf.mxu1  ;;  %v5064_v7 = vadd.f32 %v3502_v58, %v4917_v24  ;;  %v1840_v24 = vadd.f32 %v5014_v33, %v4907_v36 }
 0x156   : > { %v3438_v45 = vadd.f32 %v3437_v52, %v3436_v37  ;;  %v3504_v49 = vpop.f32.mrf.mxu0 }
 0x157   : > { %v3439_v34 = vpop.f32.mrf.mxu1  ;;  %v3505_v27 = vadd.f32 %v3504_v49, %v3503_v6 }
 0x158   : > { %v5061_v41 = vadd.f32 %v3438_v45, %v1832_v3  ;;  %v3506_v40 = vpop.f32.mrf.mxu0 }
 0x159   : > { %v3440_v56 = vpop.f32.mrf.mxu1  ;;  %v5071_v35 = vadd.f32 %v3505_v27, %v4925_v0  ;;  %v1843_v0 = vadd.f32 %v5022_v46, %v4907_v36 }
 0x15a   : > { %v3441_v20 = vadd.f32 %v3440_v56, %v3439_v34  ;;  %v3507_v11 = vpop.f32.mrf.mxu0 }
 0x15b   : > { %v3442_v13 = vpop.f32.mrf.mxu1  ;;  %v3508_v28 = vadd.f32 %v3507_v11, %v3506_v40 }
 0x15c   : > { %v5068_v25 = vadd.f32 %v3441_v20, %v1835_v14  ;;  %v3509_v60 = vpop.f32.mrf.mxu0 }
 0x15d   : > { %v3443_v21 = vpop.f32.mrf.mxu1  ;;  %v5078_v9 = vadd.f32 %v3508_v28, %v4933_v61  ;;  %v1848_v61 = vadd.f32 %v5035_v42, %v4907_v36 }
 0x15e   : > { %v3444_v23 = vadd.f32 %v3443_v21, %v3442_v13  ;;  %v3510_v26 = vpop.f32.mrf.mxu0 }
 0x15f   : > { %v3445_v62 = vpop.f32.mrf.mxu1  ;;  %v3511_v47 = vadd.f32 %v3510_v26, %v3509_v60 }
 0x160   : > { %v5075_v5 = vadd.f32 %v3444_v23, %v1840_v24  ;;  %v3512_v37 = vpop.f32.mrf.mxu0 }
 0x161   : > { %v3446_v39 = vpop.f32.mrf.mxu1  ;;  %v5085_v33 = vadd.f32 %v3511_v47, %v4941_v31  ;;  %v1851_v31 = vadd.f32 %v5043_v32, %v4907_v36 }
 0x162   : > { %v3447_v30 = vadd.f32 %v3446_v39, %v3445_v62  ;;  %v3513_v18 = vpop.f32.mrf.mxu0 }
 0x163   : > { %v3448_v55 = vpop.f32.mrf.mxu1  ;;  %v3514_v45 = vadd.f32 %v3513_v18, %v3512_v37 }
 0x164   : > { %v5082_v51 = vadd.f32 %v3447_v30, %v1843_v0  ;;  %v3515_v34 = vpop.f32.mrf.mxu0 }
 0x165   : > { %v3449_v52 = vpop.f32.mrf.mxu1  ;;  %v5092_v46 = vadd.f32 %v3514_v45, %v4949_v29  ;;  %v1856_v29 = vadd.f32 %v5049_v19, %v4907_v36 }
 0x166   : > { %v3450_v3 = vadd.f32 %v3449_v52, %v3448_v55  ;;  %v3516_v49 = vpop.f32.mrf.mxu0 }
 0x167   : > { %v3451_v58 = vpop.f32.mrf.mxu1  ;;  %v3517_v20 = vadd.f32 %v3516_v49, %v3515_v34 }
 0x168   : > { %v5089_v6 = vadd.f32 %v3450_v3, %v1848_v61  ;;  %v3518_v13 = vpop.f32.mrf.mxu0 }
 0x169   : > { %v3452_v56 = vpop.f32.mrf.mxu1  ;;  %v5099_v42 = vadd.f32 %v3517_v20, %v4963_v54  ;;  %v1859_v54 = vadd.f32 %v5055_v59, %v4907_v36 }
 0x16a   : > { %v3453_v14 = vadd.f32 %v3452_v56, %v3451_v58  ;;  %v3519_v11 = vpop.f32.mrf.mxu0 }
 0x16b   : > { %v3454_v27 = vpop.f32.mrf.mxu1  ;;  %v3520_v23 = vadd.f32 %v3519_v11, %v3518_v13 }
 0x16c   : > { %v5096_v40 = vadd.f32 %v3453_v14, %v1851_v31  ;;  %v3521_v62 = vpop.f32.mrf.mxu0 }
 0x16d   : > { %v3455_v21 = vpop.f32.mrf.mxu1  ;;  %v5106_v32 = vadd.f32 %v3520_v23, %v4975_v4  ;;  %v1864_v4 = vadd.f32 %v4839_v43, %v4907_v36 }
 0x16e   : > { %v3456_v24 = vadd.f32 %v3455_v21, %v3454_v27  ;;  %v3522_v26 = vpop.f32.mrf.mxu0 }
 0x16f   : > { %v3457_v28 = vpop.f32.mrf.mxu1  ;;  %v3523_v30 = vadd.f32 %v3522_v26, %v3521_v62 }
 0x170   : > { %v5103_v60 = vadd.f32 %v3456_v24, %v1856_v29  ;;  %v3524_v55 = vpop.f32.mrf.mxu0 }
 0x171   : > { %v3458_v39 = vpop.f32.mrf.mxu1  ;;  %v5113_v19 = vadd.f32 %v3523_v30, %v4986_v2  ;;  %v1867_v2 = vadd.f32 %v4843_v1, %v4907_v36 }
 0x172   : > { %v3459_v0 = vadd.f32 %v3458_v39, %v3457_v28  ;;  %v3525_v18 = vpop.f32.mrf.mxu0 }
 0x173   : > { %v3460_v47 = vpop.f32.mrf.mxu1  ;;  %v3526_v3 = vadd.f32 %v3525_v18, %v3524_v55 }
 0x174   : > { %v5110_v37 = vadd.f32 %v3459_v0, %v1859_v54  ;;  %v3527_v58 = vpop.f32.mrf.mxu0 }
 0x175   : > { %v3461_v52 = vpop.f32.mrf.mxu1  ;;  %v5120_v59 = vadd.f32 %v3526_v3, %v4995_v17  ;;  %v1872_v17 = vadd.f32 %v4857_v63, %v4907_v36 }
 0x176   : > { %v3462_v61 = vadd.f32 %v3461_v52, %v3460_v47  ;;  %v3528_v49 = vpop.f32.mrf.mxu0 }
 0x177   : > { %v3463_v45 = vpop.f32.mrf.mxu1  ;;  %v3529_v14 = vadd.f32 %v3528_v49, %v3527_v58 }
 0x178   : > { %v5117_v34 = vadd.f32 %v3462_v61, %v1864_v4  ;;  %v3530_v27 = vpop.f32.mrf.mxu0 }
 0x179   : > { %v3464_v56 = vpop.f32.mrf.mxu1  ;;  %v5127_v43 = vadd.f32 %v3529_v14, %v5003_v50  ;;  %v1875_v50 = vadd.f32 %v4866_v38, %v4907_v36 }
 0x17a   : > { %v3465_v31 = vadd.f32 %v3464_v56, %v3463_v45  ;;  %v3531_v11 = vpop.f32.mrf.mxu0 }
 0x17b   : > { %v3466_v20 = vpop.f32.mrf.mxu1  ;;  %v3532_v24 = vadd.f32 %v3531_v11, %v3530_v27 }
 0x17c   : > { %v5124_v13 = vadd.f32 %v3465_v31, %v1867_v2  ;;  %v3533_v28 = vpop.f32.mrf.mxu0 }
 0x17d   : > { %v3467_v21 = vpop.f32.mrf.mxu1  ;;  %v5134_v1 = vadd.f32 %v3532_v24, %v5017_v57  ;;  %v1880_v57 = vadd.f32 %v4878_v44, %v4907_v36 }
 0x17e   : > { %v3468_v29 = vadd.f32 %v3467_v21, %v3466_v20  ;;  %v3534_v26 = vpop.f32.mrf.mxu0 }
 0x17f   : > { %v3469_v23 = vpop.f32.mrf.mxu1  ;;  %v3535_v0 = vadd.f32 %v3534_v26, %v3533_v28 }
 0x180   : > { %v5131_v62 = vadd.f32 %v3468_v29, %v1872_v17  ;;  %v3536_v47 = vpop.f32.mrf.mxu0 }
 0x181   : > { %v3470_v39 = vpop.f32.mrf.mxu1  ;;  %v5141_v63 = vadd.f32 %v3535_v0, %v5026_v53  ;;  %v1883_v53 = vadd.f32 %v4890_v12, %v4907_v36 }
 0x182   : > { %v3471_v54 = vadd.f32 %v3470_v39, %v3469_v23  ;;  %v3537_v18 = vpop.f32.mrf.mxu0 }
 0x183   : > { %v3472_v30 = vpop.f32.mrf.mxu1  ;;  %v3538_v61 = vadd.f32 %v3537_v18, %v3536_v47 }
 0x184   : > { %v5138_v55 = vadd.f32 %v3471_v54, %v1875_v50  ;;  %v3539_v45 = vpop.f32.mrf.mxu0 }
 0x185   : > { %v3473_v52 = vpop.f32.mrf.mxu1  ;;  %v5148_v38 = vadd.f32 %v3538_v61, %v5039_v8  ;;  %v1888_v8 = vadd.f32 %v4898_v15, %v4907_v36 }
 0x186   : > { %v3474_v4 = vadd.f32 %v3473_v52, %v3472_v30  ;;  %v3540_v49 = vpop.f32.mrf.mxu0 }
 0x187   : > { %v3475_v3 = vpop.f32.mrf.mxu1  ;;  %v3541_v31 = vadd.f32 %v3540_v49, %v3539_v45 }
 0x188   : > { %v5145_v58 = vadd.f32 %v3474_v4, %v1880_v57  ;;  %v3542_v20 = vpop.f32.mrf.mxu0 }
 0x189   : > { %v3476_v56 = vpop.f32.mrf.mxu1  ;;  %v5155_v44 = vadd.f32 %v3541_v31, %v5045_v16  ;;  %v1891_v16 = vadd.f32 %v4902_v48, %v4907_v36 }
 0x18a   : > { %v3477_v2 = vadd.f32 %v3476_v56, %v3475_v3  ;;  %v3543_v11 = vpop.f32.mrf.mxu0 }
 0x18b   : > { %v3478_v14 = vpop.f32.mrf.mxu1  ;;  %v3544_v29 = vadd.f32 %v3543_v11, %v3542_v20 }
 0x18c   : > { %v5152_v27 = vadd.f32 %v3477_v2, %v1883_v53  ;;  %v3545_v23 = vpop.f32.mrf.mxu0 }
 0x18d   : > { %v3479_v21 = vpop.f32.mrf.mxu1  ;;  %v5162_v12 = vadd.f32 %v3544_v29, %v5051_v22 }
 0x18e   : > { %v3480_v17 = vadd.f32 %v3479_v21, %v3478_v14  ;;  %v3546_v26 = vpop.f32.mrf.mxu0 }
 0x18f   : > { %v3481_v24 = vpop.f32.mrf.mxu1  ;;  %v3547_v54 = vadd.f32 %v3546_v26, %v3545_v23 }
 0x190   : > { %v5159_v28 = vadd.f32 %v3480_v17, %v1888_v8  ;;  %v3548_v0 = vpop.f32.mrf.mxu0 }
 0x191   : > { %v3482_v39 = vpop.f32.mrf.mxu1  ;;  %v5169_v15 = vadd.f32 %v3547_v54, %v5057_v10 }
 0x192   : > { %v3483_v50 = vadd.f32 %v3482_v39, %v3481_v24  ;;  %v3549_v52 = vpop.f32.mrf.mxu0 }
 0x193   : > { %v3612_v30 = vpop.f32.mrf.mxu1  ;;  %v3550_v57 = vadd.f32 %v3549_v52, %v3548_v0 }
 0x194   : > { %v5166_v47 = vadd.f32 %v3483_v50, %v1891_v16  ;;  %v3551_v22 = vpop.f32.mrf.mxu0 }
 0x195   : > { %v3613_v18 = vpop.f32.mrf.mxu1  ;;  %v5174_v3 = vadd.f32 %v3550_v57, %v5061_v41 }
 0x196   : > { %v3614_v4 = vadd.f32 %v3613_v18, %v3612_v30  ;;  %v3552_v36 = vpop.f32.mrf.mxu0 }
 0x197   : > { %v5171_v61 = vpop.f32.mrf.mxu1  ;;  %v3553_v56 = vadd.f32 %v3552_v36, %v3551_v22 }
 0x198   : > { %v5177_v48 = vadd.f32 %v3614_v4, %v5064_v7  ;;  %v3554_v49 = vpop.f32.mrf.mxu0 }
 0x199   : > { %v5179_v45 = vpop.f32.mrf.mxu1  ;;  %v5184_v53 = vadd.f32 %v3553_v56, %v5068_v25 }
 0x19a   : > { %v3555_v2 = vpop.f32.mrf.mxu0 }
 0x19b   : > { %v5181_v10 = vpop.f32.mrf.mxu1  ;;  %v3556_v14 = vadd.f32 %v3555_v2, %v3554_v49 }
 0x19c   : > { %v3557_v20 = vpop.f32.mrf.mxu0 }
 0x19d   : > { %v5186_v31 = vpop.f32.mrf.mxu1  ;;  %v5191_v7 = vadd.f32 %v3556_v14, %v5075_v5 }
 0x19e   : > { %v3558_v21 = vpop.f32.mrf.mxu0 }
 0x19f   : > { %v5188_v41 = vpop.f32.mrf.mxu1  ;;  %v3559_v8 = vadd.f32 %v3558_v21, %v3557_v20 }
 0x1a0   : > { %v3560_v17 = vpop.f32.mrf.mxu0 }
 0x1a1   : > { %v5193_v11 = vpop.f32.mrf.mxu1  ;;  %v5198_v25 = vadd.f32 %v3559_v8, %v5082_v51 }
 0x1a2   : > { %v3561_v24 = vpop.f32.mrf.mxu0 }
 0x1a3   : > { %v5195_v29 = vpop.f32.mrf.mxu1  ;;  %v3562_v39 = vadd.f32 %v3561_v24, %v3560_v17 }
 0x1a4   : > { %v3563_v26 = vpop.f32.mrf.mxu0 }
 0x1a5   : > { %v5200_v23 = vpop.f32.mrf.mxu1  ;;  %v5205_v5 = vadd.f32 %v3562_v39, %v5089_v6 }
 0x1a6   : > { %v3564_v50 = vpop.f32.mrf.mxu0 }
 0x1a7   : > { %v5202_v16 = vpop.f32.mrf.mxu1  ;;  %v3565_v0 = vadd.f32 %v3564_v50, %v3563_v26 }
 0x1a8   : > { %v3566_v30 = vpop.f32.mrf.mxu0 }
 0x1a9   : > { %v5207_v54 = vpop.f32.mrf.mxu1  ;;  %v5212_v51 = vadd.f32 %v3565_v0, %v5096_v40 }
 0x1aa   : > { %v3567_v18 = vpop.f32.mrf.mxu0 }
 0x1ab   : > { %v5209_v52 = vpop.f32.mrf.mxu1  ;;  %5452 = vst [vmem:[#allocation5_spill] sm:$0xff] %v5212_v51  ;;  %v3568_v4 = vadd.f32 %v3567_v18, %v3566_v30 }
 0x1ac   : > { %v3569_v22 = vpop.f32.mrf.mxu0 }
 0x1ad   : > { %v5214_v57 = vpop.f32.mrf.mxu1  ;;  %v5219_v6 = vadd.f32 %v3568_v4, %v5103_v60 }
 0x1ae   : > { %v3570_v56 = vpop.f32.mrf.mxu0 }
 0x1af   : > { %v5216_v36 = vpop.f32.mrf.mxu1  ;;  %5453 = vst [vmem:[#allocation7_spill] sm:$0xff] %v5219_v6  ;;  %v3571_v2 = vadd.f32 %v3570_v56, %v3569_v22 }
 0x1b0   : > { %v3572_v14 = vpop.f32.mrf.mxu0 }
 0x1b1   : > { %v5221_v49 = vpop.f32.mrf.mxu1  ;;  %v5226_v40 = vadd.f32 %v3571_v2, %v5110_v37 }
 0x1b2   : > { %v3573_v21 = vpop.f32.mrf.mxu0 }
 0x1b3   : > { %v5223_v20 = vpop.f32.mrf.mxu1  ;;  %5454 = vst [vmem:[#allocation2_spill] sm:$0xff] %v5226_v40  ;;  %v3574_v17 = vadd.f32 %v3573_v21, %v3572_v14 }
 0x1b4   : > { %v3575_v24 = vpop.f32.mrf.mxu0 }
 0x1b5   : > { %v5228_v8 = vpop.f32.mrf.mxu1  ;;  %v5233_v60 = vadd.f32 %v3574_v17, %v5117_v34 }
 0x1b6   : > { %v3576_v26 = vpop.f32.mrf.mxu0 }
 0x1b7   : > { %v5230_v39 = vpop.f32.mrf.mxu1  ;;  %5455 = vst [vmem:[#allocation8_spill] sm:$0xff] %v5233_v60  ;;  %v3577_v0 = vadd.f32 %v3576_v26, %v3575_v24 }
 0x1b8   : > { %v3578_v30 = vpop.f32.mrf.mxu0 }
 0x1b9   : > { %v5235_v50 = vpop.f32.mrf.mxu1  ;;  %v5240_v37 = vadd.f32 %v3577_v0, %v5124_v13 }
 0x1ba   : > { %v3579_v4 = vpop.f32.mrf.mxu0 }
 0x1bb   : > { %v5237_v18 = vpop.f32.mrf.mxu1  ;;  %5456 = vst [vmem:[#allocation3_spill] sm:$0xff] %v5240_v37  ;;  %v3580_v56 = vadd.f32 %v3579_v4, %v3578_v30 }
 0x1bc   : > { %v3581_v2 = vpop.f32.mrf.mxu0 }
 0x1bd   : > { %v5242_v22 = vpop.f32.mrf.mxu1  ;;  %v5247_v34 = vadd.f32 %v3580_v56, %v5131_v62 }
 0x1be   : > { %v3582_v21 = vpop.f32.mrf.mxu0 }
 0x1bf   : > { %v5244_v14 = vpop.f32.mrf.mxu1  ;;  %5457 = vst [vmem:[#allocation4_spill] sm:$0xff] %v5247_v34  ;;  %v3583_v24 = vadd.f32 %v3582_v21, %v3581_v2 }
 0x1c0   : > { %v3584_v26 = vpop.f32.mrf.mxu0 }
 0x1c1   : > { %v5249_v17 = vpop.f32.mrf.mxu1  ;;  %v5254_v13 = vadd.f32 %v3583_v24, %v5138_v55 }
 0x1c2   : > { %v3585_v0 = vpop.f32.mrf.mxu0 }
 0x1c3   : > { %v5251_v60 = vpop.f32.mrf.mxu1  ;;  %5458 = vst [vmem:[#allocation6_spill] sm:$0xff] %v5254_v13  ;;  %v3586_v30 = vadd.f32 %v3585_v0, %v3584_v26 }
 0x1c4   : > { %v3587_v4 = vpop.f32.mrf.mxu0 }
 0x1c5   : > { %v5256_v37 = vpop.f32.mrf.mxu1  ;;  %v5261_v62 = vadd.f32 %v3586_v30, %v5145_v58 }
 0x1c6   : > { %v3588_v56 = vpop.f32.mrf.mxu0 }
 0x1c7   : > { %v5258_v51 = vpop.f32.mrf.mxu1  ;;  %5459 = vst [vmem:[#allocation9_spill] sm:$0xff] %v5261_v62  ;;  %v3589_v2 = vadd.f32 %v3588_v56, %v3587_v4  ;;  %v3620_v4 = vadd.f32 %v5186_v31, %v5181_v10 }
 0x1c8   : > { %v3590_v21 = vpop.f32.mrf.mxu0 }
 0x1c9   : > { %v5263_v34 = vpop.f32.mrf.mxu1  ;;  %v5268_v55 = vadd.f32 %v3589_v2, %v5152_v27  ;;  %v3623_v27 = vadd.f32 %v5193_v11, %v5188_v41 }
 0x1ca   : > { %v3591_v24 = vpop.f32.mrf.mxu0 }
 0x1cb   : > { %v5265_v40 = vpop.f32.mrf.mxu1  ;;  %5460 = vst [vmem:[#allocation10_spill] sm:$0xff] %v5268_v55  ;;  %v3592_v26 = vadd.f32 %v3591_v24, %v3590_v21  ;;  %v3617_v24 = vadd.f32 %v5179_v45, %v5171_v61  ;;  %v2262_v10 = vadd.f32 %v3623_v27, %v5085_v33  ;;  %v3632_v45 = vadd.f32 %v5214_v57, %v5209_v52 }
 0x1cc   : > { %v3593_v0 = vpop.f32.mrf.mxu0 }
 0x1cd   : > { %v5270_v13 = vpop.f32.mrf.mxu1  ;;  %v5275_v58 = vadd.f32 %v3592_v26, %v5159_v28  ;;  %v2254_v61 = vadd.f32 %v3617_v24, %v5071_v35 }
 0x1ce   : > { %v3594_v30 = vpop.f32.mrf.mxu0 }
 0x1cf   : > { %v5272_v6 = vpop.f32.mrf.mxu1  ;;  %5461 = vst [vmem:[#allocation11_spill] sm:$0xff] %v5275_v58  ;;  %v3595_v56 = vadd.f32 %v3594_v30, %v3593_v0  ;;  %v2259_v58 = vadd.f32 %v3620_v4, %v5078_v9 }
 0x1d0   : > { %v3750_v21 = vpop.f32.mrf.mxu0 }
 0x1d1   : > { %v5277_v62 = vpop.f32.mrf.mxu1  ;;  %v5288_v55 = vadd.f32 %v3595_v56, %v5166_v47  ;;  %v2420_v11 = vadd.f32 %v3750_v21, %v2259_v58  ;;  %v3626_v47 = vadd.f32 %v5200_v23, %v5195_v29  ;;  %v3629_v56 = vadd.f32 %v5207_v54, %v5202_v16 }
 0x1d2   : > { %v2411_v26 = vpop.f32.mrf.mxu0  ;;  %v2275_v21 = vadd.f32 %v3632_v45, %v5106_v32 }
 0x1d3   : > { %v5283_v2 = vpop.f32.mrf.mxu1  ;;  %5462 = vst [vmem:[#allocation12_spill] sm:$0xff] %v5288_v55  ;;  %v2412_v0 = vadd.f32 %v2411_v26, %v5177_v48  ;;  %v3635_v48 = vadd.f32 %v5221_v49, %v5216_v36  ;;  %v2267_v36 = vadd.f32 %v3626_v47, %v5092_v46  ;;  %v2737_v26 = vmul.f32 %v2420_v11, %v2420_v11 }
 0x1d4   : > { %v3751_v41 = vpop.f32.mrf.mxu0  ;;  %v3638_v46 = vadd.f32 %v5228_v8, %v5223_v20  ;;  %v3644_v47 = vadd.f32 %v5242_v22, %v5237_v18  ;;  %v2270_v45 = vadd.f32 %v3629_v56, %v5099_v42  ;;  %v3641_v8 = vadd.f32 %v5235_v50, %v5230_v39 }
 0x1d5   : > { %v5290_v28 = vpop.f32.mrf.mxu1  ;;  %v2423_v30 = vadd.f32 %v3751_v41, %v2262_v10  ;;  %v2735_v23 = vmul.f32 %v2412_v0, %v2412_v0 }
 0x1d6   : > { %v2414_v33 = vpop.f32.mrf.mxu0  ;;  %v2283_v42 = vadd.f32 %v3638_v46, %v5120_v59  ;;  %v3650_v59 = vadd.f32 %v5256_v37, %v5251_v60 }
 0x1d7   : > { %v5295_v31 = vpop.f32.mrf.mxu1  ;;  %v3173_v35 = vpack.c.bf16 %v2423_v30, %v2420_v11  ;;  %v2415_v58 = vadd.f32 %v2414_v33, %v2254_v61  ;;  %v2278_v61 = vadd.f32 %v3635_v48, %v5113_v19  ;;  %v2738_v33 = vmul.f32 %v2423_v30, %v2423_v30 }
 0x1d8   : > { %v3754_v29 = vpop.f32.mrf.mxu0 }
 0x1d9   : > { %v5308_v9 = vpop.f32.mrf.mxu1  ;;  %3245 = vst [vmem:[%s5306_s23 + $0x8] sm:$0xff] %v3173_v35   ;;  %v3168_v52 = vpack.c.bf16 %v2415_v58, %v2412_v0  ;;  %v2698_v57 = vadd.f32 %v2415_v58, %v2412_v0  ;;  %v2736_v27 = vmul.f32 %v2415_v58, %v2415_v58  ;;  %v2436_v16 = vadd.f32 %v3754_v29, %v2275_v21 }
 0x1da   : > { %v2427_v49 = vpop.f32.mrf.mxu0 }
 0x1db   : > { %v5312_v4 = vpop.f32.mrf.mxu1  ;;  %3169 = vst [vmem:[%s5306_s23] sm:$0xff] %v3168_v52   ;;  %v2699_v10 = vadd.f32 %v2698_v57, %v2420_v11  ;;  %v2767_v41 = vadd.f32 %v2736_v27, %v2735_v23  ;;  %v2428_v35 = vadd.f32 %v2427_v49, %v2267_v36  ;;  %v3647_v11 = vadd.f32 %v5249_v17, %v5244_v14 }
 0x1dc   : > { %v3755_v58 = vpop.f32.mrf.mxu0  ;;  %v2741_v49 = vmul.f32 %v2436_v16, %v2436_v16 }
 0x1dd   : > { %v5318_v24 = vpop.f32.mrf.mxu1  ;;  %v2768_v55 = vadd.f32 %v2767_v41, %v2737_v26  ;;  %v2700_v54 = vadd.f32 %v2699_v10, %v2423_v30  ;;  %v2439_v32 = vadd.f32 %v3755_v58, %v2278_v61  ;;  %v2739_v52 = vmul.f32 %v2428_v35, %v2428_v35 }
 0x1de   : > { %v2430_v48 = vpop.f32.mrf.mxu0  ;;  %v2294_v36 = vadd.f32 %v3647_v11, %v5141_v63 }
 0x1df   : > { %v5323_v0 = vpop.f32.mrf.mxu1  ;;  %v2701_v23 = vadd.f32 %v2700_v54, %v2428_v35  ;;  %v2769_v29 = vadd.f32 %v2768_v55, %v2738_v33  ;;  %v3183_v30 = vpack.c.bf16 %v2439_v32, %v2436_v16  ;;  %v2431_v57 = vadd.f32 %v2430_v48, %v2270_v45 }
 0x1e0   : > { %v3758_v20 = vpop.f32.mrf.mxu0  ;;  %v2291_v55 = vadd.f32 %v3644_v47, %v5134_v1  ;;  %v2742_v58 = vmul.f32 %v2439_v32, %v2439_v32  ;;  %v3659_v47 = vadd.f32 %v5277_v62, %v5272_v6  ;;  %v2299_v6 = vadd.f32 %v3650_v59, %v5148_v38 }
 0x1e1   : > { %v5331_v19 = vpop.f32.mrf.mxu1  ;;  %v2770_v18 = vadd.f32 %v2769_v29, %v2739_v52  ;;  %3247 = vst [vmem:[%s5306_s23 + $0x18] sm:$0xff] %v3183_v30   ;;  %v3178_v22 = vpack.c.bf16 %v2431_v57, %v2428_v35  ;;  %v2702_v14 = vadd.f32 %v2701_v23, %v2431_v57  ;;  %v2740_v17 = vmul.f32 %v2431_v57, %v2431_v57 }
 0x1e2   : > { %v2443_v56 = vpop.f32.mrf.mxu0  ;;  %v2452_v61 = vadd.f32 %v3758_v20, %v2291_v55  ;;  %v2286_v35 = vadd.f32 %v3641_v8, %v5127_v43  ;;  %v2310_v20 = vadd.f32 %v3659_v47, %v5169_v15  ;;  %v3662_v55 = vadd.f32 %v5290_v28, %v5283_v2 }
 0x1e3   : > { %v5334_v27 = vpop.f32.mrf.mxu1  ;;  %3246 = vst [vmem:[%s5306_s23 + $0x10] sm:$0xff] %v3178_v22   ;;  %v2703_v26 = vadd.f32 %v2702_v14, %v2436_v16  ;;  %v2771_v10 = vadd.f32 %v2770_v18, %v2740_v17  ;;  %v2444_v41 = vadd.f32 %v2443_v56, %v2283_v42  ;;  %v3656_v16 = vadd.f32 %v5270_v13, %v5265_v40 }
 0x1e4   : > { %v3759_v50 = vpop.f32.mrf.mxu0  ;;  %v2745_v8 = vmul.f32 %v2452_v61, %v2452_v61  ;;  %v3668_v15 = vadd.f32 %v5318_v24, %v5312_v4  ;;  %v3665_v28 = vadd.f32 %v5308_v9, %v5295_v31  ;;  %v2315_v24 = vadd.f32 %v3662_v55, %v5174_v3 }
 0x1e5   : > { %v5339_v21 = vpop.f32.mrf.mxu1  ;;  %v2455_v33 = vadd.f32 %v3759_v50, %v2294_v36  ;;  %v2772_v1 = vadd.f32 %v2771_v10, %v2741_v49  ;;  %v2704_v54 = vadd.f32 %v2703_v26, %v2439_v32  ;;  %v2743_v48 = vmul.f32 %v2444_v41, %v2444_v41 }
 0x1e6   : > { %v2446_v46 = vpop.f32.mrf.mxu0  ;;  %v3653_v32 = vadd.f32 %v5263_v34, %v5258_v51  ;;  %v2307_v57 = vadd.f32 %v3656_v16, %v5162_v12  ;;  %v3671_v10 = vadd.f32 %v5331_v19, %v5323_v0  ;;  %v2323_v19 = vadd.f32 %v3668_v15, %v5191_v7  ;;  %v5465_v15 = vld [vmem:[#allocation5_spill] sm:$0xff] }
 0x1e7   : > { %v5345_v39 = vpop.f32.mrf.mxu1  ;;  %v3193_v11 = vpack.c.bf16 %v2455_v33, %v2452_v61  ;;  %v2447_v45 = vadd.f32 %v2446_v46, %v2286_v35  ;;  %v2705_v43 = vadd.f32 %v2704_v54, %v2444_v41  ;;  %v2773_v23 = vadd.f32 %v2772_v1, %v2742_v58 }
 0x1e8   : > { %v3762_v37 = vpop.f32.mrf.mxu0  ;;  %v2302_v56 = vadd.f32 %v3653_v32, %v5155_v44  ;;  %v2746_v38 = vmul.f32 %v2455_v33, %v2455_v33  ;;  %v2326_v46 = vadd.f32 %v3671_v10, %v5198_v25 }
 0x1e9   : > { %v5350_v63 = vpop.f32.mrf.mxu1  ;;  %3249 = vst [vmem:[%s5306_s23 + $0x28] sm:$0xff] %v3193_v11   ;;  %v3188_v52 = vpack.c.bf16 %v2447_v45, %v2444_v41  ;;  %v2744_v29 = vmul.f32 %v2447_v45, %v2447_v45  ;;  %v2774_v30 = vadd.f32 %v2773_v23, %v2743_v48  ;;  %v2706_v40 = vadd.f32 %v2705_v43, %v2447_v45 }
 0x1ea   : > { %v2459_v62 = vpop.f32.mrf.mxu0  ;;  %v2468_v34 = vadd.f32 %v3762_v37, %v2307_v57  ;;  %v2318_v23 = vadd.f32 %v3665_v28, %v5184_v53  ;;  %v3674_v37 = vadd.f32 %v5339_v21, %v5334_v27  ;;  %v3677_v27 = vadd.f32 %v5350_v63, %v5345_v39 }
 0x1eb   : > { %v5356_v60 = vpop.f32.mrf.mxu1  ;;  %3248 = vst [vmem:[%s5306_s23 + $0x20] sm:$0xff] %v3188_v52   ;;  %v2707_v18 = vadd.f32 %v2706_v40, %v2452_v61  ;;  %v2775_v22 = vadd.f32 %v2774_v30, %v2744_v29  ;;  %v2460_v14 = vadd.f32 %v2459_v62, %v2299_v6 }
 0x1ec   : > { %v3763_v51 = vpop.f32.mrf.mxu0  ;;  %v2749_v16 = vmul.f32 %v2468_v34, %v2468_v34  ;;  %v2334_v10 = vadd.f32 %v3677_v27, %v5465_v15 }
 0x1ed   : > { %v3679_v13 = vpop.f32.mrf.mxu1  ;;  %v2471_v42 = vadd.f32 %v3763_v51, %v2310_v20  ;;  %v2776_v36 = vadd.f32 %v2775_v22, %v2745_v8  ;;  %v2708_v49 = vadd.f32 %v2707_v18, %v2455_v33  ;;  %v2747_v44 = vmul.f32 %v2460_v14, %v2460_v14 }
 0x1ee   : > { %v2462_v26 = vpop.f32.mrf.mxu0  ;;  %v3680_v25 = vadd.f32 %v3679_v13, %v5356_v60  ;;  %v2331_v60 = vadd.f32 %v3674_v37, %v5205_v5  ;;  %v5468_v37 = vld [vmem:[#allocation6_spill] sm:$0xff] }
 0x1ef   : > { %v3681_v17 = vpop.f32.mrf.mxu1  ;;  %v3203_v41 = vpack.c.bf16 %v2471_v42, %v2468_v34  ;;  %v2463_v50 = vadd.f32 %v2462_v26, %v2302_v56  ;;  %v2709_v61 = vadd.f32 %v2708_v49, %v2460_v14  ;;  %v2777_v35 = vadd.f32 %v2776_v36, %v2746_v38 }
 0x1f0   : > { %v3766_v2 = vpop.f32.mrf.mxu0  ;;  %v2750_v3 = vmul.f32 %v2471_v42, %v2471_v42 }
 0x1f1   : > { %v3682_v12 = vpop.f32.mrf.mxu1  ;;  %3251 = vst [vmem:[%s5306_s23 + $0x38] sm:$0xff] %v3203_v41   ;;  %v3198_v33 = vpack.c.bf16 %v2463_v50, %v2460_v14  ;;  %v2748_v58 = vmul.f32 %v2463_v50, %v2463_v50  ;;  %v2778_v1 = vadd.f32 %v2777_v35, %v2747_v44  ;;  %v2710_v54 = vadd.f32 %v2709_v61, %v2463_v50 }
 0x1f2   : > { %v2475_v0 = vpop.f32.mrf.mxu0  ;;  %v2484_v9 = vadd.f32 %v3766_v2, %v2323_v19  ;;  %v3683_v30 = vadd.f32 %v3682_v12, %v3681_v17  ;;  %v5463_v17 = vld [vmem:[#allocation7_spill] sm:$0xff] }
 0x1f3   : > { %v3684_v59 = vpop.f32.mrf.mxu1  ;;  %3250 = vst [vmem:[%s5306_s23 + $0x30] sm:$0xff] %v3198_v33   ;;  %v2711_v47 = vadd.f32 %v2710_v54, %v2468_v34  ;;  %v2779_v11 = vadd.f32 %v2778_v1, %v2748_v58  ;;  %v2476_v45 = vadd.f32 %v2475_v0, %v2315_v24  ;;  %v2339_v34 = vadd.f32 %v3680_v25, %v5463_v17 }
 0x1f4   : > { %v3767_v31 = vpop.f32.mrf.mxu0  ;;  %v2753_v55 = vmul.f32 %v2484_v9, %v2484_v9 }
 0x1f5   : > { %v3685_v4 = vpop.f32.mrf.mxu1  ;;  %v2487_v48 = vadd.f32 %v3767_v31, %v2326_v46  ;;  %v2780_v32 = vadd.f32 %v2779_v11, %v2749_v16  ;;  %v2712_v52 = vadd.f32 %v2711_v47, %v2471_v42  ;;  %v2751_v57 = vmul.f32 %v2476_v45, %v2476_v45  ;;  %v5464_v42 = vld [vmem:[#allocation2_spill] sm:$0xff] }
 0x1f6   : > { %v2478_v29 = vpop.f32.mrf.mxu0  ;;  %v2342_v56 = vadd.f32 %v3683_v30, %v5464_v42  ;;  %v3686_v41 = vadd.f32 %v3685_v4, %v3684_v59 }
 0x1f7   : > { %v3687_v43 = vpop.f32.mrf.mxu1  ;;  %v3213_v40 = vpack.c.bf16 %v2487_v48, %v2484_v9  ;;  %v2479_v6 = vadd.f32 %v2478_v29, %v2318_v23  ;;  %v2713_v62 = vadd.f32 %v2712_v52, %v2476_v45  ;;  %v2781_v20 = vadd.f32 %v2780_v32, %v2750_v3 }
 0x1f8   : > { %v3770_v53 = vpop.f32.mrf.mxu0  ;;  %v2754_v50 = vmul.f32 %v2487_v48, %v2487_v48 }
 0x1f9   : > { %v3688_v7 = vpop.f32.mrf.mxu1  ;;  %3253 = vst [vmem:[%s5306_s23 + $0x48] sm:$0xff] %v3213_v40   ;;  %v3208_v21 = vpack.c.bf16 %v2479_v6, %v2476_v45  ;;  %v2752_v18 = vmul.f32 %v2479_v6, %v2479_v6  ;;  %v2782_v22 = vadd.f32 %v2781_v20, %v2751_v57  ;;  %v2714_v14 = vadd.f32 %v2713_v62, %v2479_v6  ;;  %v5466_v45 = vld [vmem:[#allocation8_spill] sm:$0xff]  ;;  %v5469_v6 = vld [vmem:[#allocation3_spill] sm:$0xff] }
 0x1fa   : > { %v2491_v13 = vpop.f32.mrf.mxu0  ;;  %v2500_v63 = vadd.f32 %v3770_v53, %v2339_v34  ;;  %v3689_v46 = vadd.f32 %v3688_v7, %v3687_v43  ;;  %v2347_v31 = vadd.f32 %v3686_v41, %v5466_v45 }
 0x1fb   : > { %v3690_v8 = vpop.f32.mrf.mxu1  ;;  %3252 = vst [vmem:[%s5306_s23 + $0x40] sm:$0xff] %v3208_v21   ;;  %v2715_v38 = vadd.f32 %v2714_v14, %v2484_v9  ;;  %v2783_v36 = vadd.f32 %v2782_v22, %v2752_v18  ;;  %v2492_v49 = vadd.f32 %v2491_v13, %v2331_v60 }
 0x1fc   : > { %v3771_v39 = vpop.f32.mrf.mxu0  ;;  %v2757_v32 = vmul.f32 %v2500_v63, %v2500_v63  ;;  %v2350_v62 = vadd.f32 %v3689_v46, %v5469_v6 }
 0x1fd   : > { %v3691_v51 = vpop.f32.mrf.mxu1  ;;  %v2503_v26 = vadd.f32 %v3771_v39, %v2342_v56  ;;  %v2784_v5 = vadd.f32 %v2783_v36, %v2753_v55  ;;  %v2716_v61 = vadd.f32 %v2715_v38, %v2487_v48  ;;  %v2755_v54 = vmul.f32 %v2492_v49, %v2492_v49  ;;  %v5467_v48 = vld [vmem:[#allocation4_spill] sm:$0xff] }
 0x1fe   : > { %v2494_v35 = vpop.f32.mrf.mxu0  ;;  %v3692_v2 = vadd.f32 %v3691_v51, %v3690_v8 }
 0x1ff   : > { %v3693_v12 = vpop.f32.mrf.mxu1  ;;  %v3223_v28 = vpack.c.bf16 %v2503_v26, %v2500_v63  ;;  %v2495_v58 = vadd.f32 %v2494_v35, %v2334_v10  ;;  %v2717_v1 = vadd.f32 %v2716_v61, %v2492_v49  ;;  %v2785_v24 = vadd.f32 %v2784_v5, %v2754_v50  ;;  %v5471_v61 = vld [vmem:[#allocation11_spill] sm:$0xff]  ;;  %v5472_v35 = vld [vmem:[#allocation10_spill] sm:$0xff] }
 0x200   : > { %v3774_v19 = vpop.f32.mrf.mxu0  ;;  %v2355_v23 = vadd.f32 %v3692_v2, %v5467_v48  ;;  %v2758_v57 = vmul.f32 %v2503_v26, %v2503_v26 }
 0x201   : > { %v3694_v44 = vpop.f32.mrf.mxu1  ;;  %3255 = vst [vmem:[%s5306_s23 + $0x58] sm:$0xff] %v3223_v28   ;;  %v3218_v16 = vpack.c.bf16 %v2495_v58, %v2492_v49  ;;  %v2756_v59 = vmul.f32 %v2495_v58, %v2495_v58  ;;  %v2786_v4 = vadd.f32 %v2785_v24, %v2755_v54  ;;  %v2718_v47 = vadd.f32 %v2717_v1, %v2495_v58  ;;  %v5470_v49 = vld [vmem:[#allocation9_spill] sm:$0xff] }
 0x202   : > { %v3695_v33 = vadd.f32 %v3694_v44, %v3693_v12  ;;  %v2507_v9 = vpop.f32.mrf.mxu0  ;;  %v2516_v7 = vadd.f32 %v3774_v19, %v2355_v23 }
 0x203   : > { %v3696_v0 = vpop.f32.mrf.mxu1  ;;  %3254 = vst [vmem:[%s5306_s23 + $0x50] sm:$0xff] %v3218_v16   ;;  %v2719_v52 = vadd.f32 %v2718_v47, %v2500_v63  ;;  %v2787_v29 = vadd.f32 %v2786_v4, %v2756_v59  ;;  %v2508_v25 = vadd.f32 %v2507_v9, %v2347_v31  ;;  %v5473_v4 = vld [vmem:[#allocation12_spill] sm:$0xff] }
 0x204   : > { %v2358_v3 = vadd.f32 %v3695_v33, %v5468_v37  ;;  %v3775_v43 = vpop.f32.mrf.mxu0 }
 0x205   : > { %v3697_v11 = vpop.f32.mrf.mxu1  ;;  %v2788_v20 = vadd.f32 %v2787_v29, %v2757_v32  ;;  %v2720_v53 = vadd.f32 %v2719_v52, %v2503_v26  ;;  %v2759_v51 = vmul.f32 %v2508_v25, %v2508_v25  ;;  %v2761_v26 = vmul.f32 %v2516_v7, %v2516_v7 }
 0x206   : > { %v2519_v40 = vadd.f32 %v3775_v43, %v2358_v3  ;;  %v3698_v8 = vadd.f32 %v3697_v11, %v3696_v0  ;;  %v2510_v21 = vpop.f32.mrf.mxu0 }
 0x207   : > { %v3699_v30 = vpop.f32.mrf.mxu1  ;;  %v2511_v22 = vadd.f32 %v2510_v21, %v2350_v62  ;;  %v2721_v14 = vadd.f32 %v2720_v53, %v2508_v25  ;;  %v2789_v60 = vadd.f32 %v2788_v20, %v2758_v57 }
 0x208   : > { %v3233_v18 = vpack.c.bf16 %v2519_v40, %v2516_v7  ;;  %v3778_v17 = vpop.f32.mrf.mxu0  ;;  %v2363_v12 = vadd.f32 %v3698_v8, %v5470_v49  ;;  %v2762_v28 = vmul.f32 %v2519_v40, %v2519_v40 }
 0x209   : > { %v3700_v27 = vpop.f32.mrf.mxu1  ;;  %v3228_v42 = vpack.c.bf16 %v2511_v22, %v2508_v25  ;;  %v2760_v56 = vmul.f32 %v2511_v22, %v2511_v22  ;;  %v2790_v55 = vadd.f32 %v2789_v60, %v2759_v51  ;;  %v2722_v38 = vadd.f32 %v2721_v14, %v2511_v22 }
 0x20a   : > { %3257 = vst [vmem:[%s5306_s23 + $0x68] sm:$0xff] %v3233_v18   ;;  %v3701_v34 = vadd.f32 %v3700_v27, %v3699_v30  ;;  %v2523_v39 = vpop.f32.mrf.mxu0 }
 0x20b   : > { %v3702_v13 = vpop.f32.mrf.mxu1  ;;  %3256 = vst [vmem:[%s5306_s23 + $0x60] sm:$0xff] %v3228_v42   ;;  %v2723_v15 = vadd.f32 %v2722_v38, %v2516_v7  ;;  %v2791_v10 = vadd.f32 %v2790_v55, %v2760_v56  ;;  %v2524_v41 = vadd.f32 %v2523_v39, %v2363_v12 }
 0x20c   : > { %v3779_v5 = vpop.f32.mrf.mxu0  ;;  %v2366_v2 = vadd.f32 %v3701_v34, %v5472_v35 }
 0x20d   : > { %v3703_v36 = vpop.f32.mrf.mxu1  ;;  %v2792_v33 = vadd.f32 %v2791_v10, %v2761_v26  ;;  %v2724_v58 = vadd.f32 %v2723_v15, %v2519_v40  ;;  %v2763_v16 = vmul.f32 %v2524_v41, %v2524_v41 }
 0x20e   : > { %v3704_v63 = vadd.f32 %v3703_v36, %v3702_v13  ;;  %v2526_v54 = vpop.f32.mrf.mxu0 }
 0x20f   : > { %v3705_v50 = vpop.f32.mrf.mxu1  ;;  %v2527_v0 = vadd.f32 %v2526_v54, %v2366_v2  ;;  %v2725_v46 = vadd.f32 %v2724_v58, %v2524_v41  ;;  %v2793_v59 = vadd.f32 %v2792_v33, %v2762_v28 }
 0x210   : > { %v2371_v44 = vadd.f32 %v3704_v63, %v5471_v61 }
 0x211   : > { %v3706_v1 = vpop.f32.mrf.mxu1  ;;  %v3238_v11 = vpack.c.bf16 %v2527_v0, %v2524_v41  ;;  %v2764_v45 = vmul.f32 %v2527_v0, %v2527_v0  ;;  %v2794_v31 = vadd.f32 %v2793_v59, %v2763_v16  ;;  %v2726_v9 = vadd.f32 %v2725_v46, %v2527_v0 }
 0x212   : > { %v3707_v24 = vadd.f32 %v3706_v1, %v3705_v50  ;;  %v2532_v19 = vadd.f32 %v3778_v17, %v2371_v44 }
 0x213   : > { %3258 = vst [vmem:[%s5306_s23 + $0x70] sm:$0xff] %v3238_v11   ;;  %v2795_v3 = vadd.f32 %v2794_v31, %v2764_v45 }
 0x214   : > { %v2374_v47 = vadd.f32 %v3707_v24, %v5473_v4  ;;  %v2765_v23 = vmul.f32 %v2532_v19, %v2532_v19  ;;  %v2727_v37 = vadd.f32 %v2726_v9, %v2532_v19 }
 0x216   : > { %v2535_v48 = vadd.f32 %v3779_v5, %v2374_v47  ;;  %v2796_v25 = vadd.f32 %v2795_v3, %v2765_v23 }
 0x218   : > { %v3243_v32 = vpack.c.bf16 %v2535_v48, %v2532_v19  ;;  %v2766_v52 = vmul.f32 %v2535_v48, %v2535_v48  ;;  %v2728_v29 = vadd.f32 %v2727_v37, %v2535_v48 }
 0x21a   : > { %3259 = vst [vmem:[%s5306_s23 + $0x78] sm:$0xff] %v3243_v32   ;;  %v2729_v30 = vrot.slane %v2728_v29, 4  ;;  %v2797_v43 = vadd.f32 %v2796_v25, %v2766_v52 }
 0x21c   : > { %v2730_v7 = vadd.f32 %v2729_v30, %v2728_v29  ;;  %v2798_v40 = vrot.slane %v2797_v43, 4 }
 0x21e   : > { %v2731_v6 = vrot.slane %v2730_v7, 2  ;;  %v2799_v62 = vadd.f32 %v2798_v40, %v2797_v43 }
 0x220   : > { %v2732_v57 = vadd.f32 %v2731_v6, %v2730_v7  ;;  %v2800_v20 = vrot.slane %v2799_v62, 2 }
 0x222   : > { %v2733_v8 = vrot.slane %v2732_v57, 1  ;;  %v2801_v53 = vadd.f32 %v2800_v20, %v2799_v62 }
 0x224   : > { %v2802_v27 = vrot.slane %v2801_v53, 1  ;;  %v2734_v21 = vadd.f32 %v2733_v8, %v2732_v57 }
 0x226   : > { %v2803_v18 = vadd.f32 %v2802_v27, %v2801_v53 }
 0x228   : > { %v2805_v22 = vsel %vm2804_vm6, %v2734_v21, %v2803_v18 }
 0x229   : > { %2806 = vst [vmem:[%s260_s27] sm:$0x3] %v2805_v22 }
 0x22a PF: > { %s15_s17 = sadd.s32 1, %s3945_s17   ;;  %s5474_s15 = smov %s3941_s16 }
 0x22b   : > { %p12_p5 = scmp.ge.s32.totalorder %s15_s17, 4   ;;  %s5475_s16 = smov %s5477_s18 }
 0x22d   :  { %14 = sbr.rel (!%p12_p5) target bundleno = 2 (0x2), region = 74 }

</bundles_post_ra>
